<compile_context>
chip_gen: v5e
topology: v5e:2x2
jax: 0.10.0
libtpu: 0.0.40
codegen_flags: <defaults>
</compile_context>

<pallas_src>
import jax
import jax.numpy as jnp
from jax.experimental import pallas as pl
from jax.experimental.pallas import tpu as pltpu

# ---- hyper-parameters from the PyTorch script ------------------------------
DIM_CAPSULE = 5
NUM_CAPSULE = 5
ROUTINGS = 4
T_EPSILON = 1e-07
HIDDEN_SIZE = 60          # gru_len
EMBED_DIM = 300
DROPOUT_P = 0.25

HP = 128                  # hidden size padded to one full vreg lane width per gate
SUBLANE = 8               # batch padded to a full sublane


# =============================================================================
# Fused bidirectional GRU kernel.
#   grid=(2,) over direction (fwd / bwd), marked "parallel" (dual-TC on v7x).
#   Per direction: one hoisted (T*Bp, F) @ (F, 3*Hp) input projection, then an
#   in-kernel fori_loop over T carrying h in vregs.
# =============================================================================
def make_bigru_kernel(T, Bp, Hp):
    def kernel(x_ref, wih_ref, whh_ref, bih_ref, bhh_ref, o_ref, gx_ref):
        d = pl.program_id(0)                       # 0 = forward, 1 = backward

        # Hoisted input projection: one big MXU matmul for all timesteps.
        gx_ref[...] = (
            jnp.dot(x_ref[...], wih_ref[0], preferred_element_type=jnp.float32)
            + bih_ref[0]
        )                                           # (T*Bp, 3*Hp)

        whh = whh_ref[0]                            # (Hp, 3*Hp)
        bhh = bhh_ref[0]                            # (1, 3*Hp)

        def step(s, h):
            # forward reads/writes time s; backward reads/writes T-1-s
            idx = d * (T - 1) + (1 - 2 * d) * s
            row = pl.multiple_of(idx * Bp, Bp)                     # sublane-aligned
            gx_t = gx_ref[pl.ds(row, Bp), :]                       # (Bp, 3*Hp)
            gh = jnp.dot(h, whh, preferred_element_type=jnp.float32) + bhh
            # PyTorch GRU gate order: [r, z, n]; gates are lane-aligned (width Hp).
            r = jax.nn.sigmoid(gx_t[:, 0 * Hp:1 * Hp] + gh[:, 0 * Hp:1 * Hp])
            z = jax.nn.sigmoid(gx_t[:, 1 * Hp:2 * Hp] + gh[:, 1 * Hp:2 * Hp])
            n = jnp.tanh(gx_t[:, 2 * Hp:3 * Hp] + r * gh[:, 2 * Hp:3 * Hp])
            h_new = (1.0 - z) * n + z * h
            o_ref[pl.ds(row, Bp), :] = h_new
            return h_new

        jax.lax.fori_loop(0, T, step, jnp.zeros((Bp, Hp), jnp.float32), unroll=True)

    return kernel


def bigru_fused(x_flat, wih, whh, bih, bhh, T, Bp):
    """x_flat: (T*Bp, F) f32 -> (T*Bp, 2*Hp) f32, fwd in lanes [0,Hp), bwd in [Hp,2Hp)."""
    TB, F = x_flat.shape
    Hp = whh.shape[1]
    kernel = make_bigru_kernel(T, Bp, Hp)
    return pl.pallas_call(
        kernel,
        out_shape=jax.ShapeDtypeStruct((TB, 2 * Hp), jnp.float32),
        grid_spec=pltpu.PrefetchScalarGridSpec(
            num_scalar_prefetch=0,
            grid=(2,),
            in_specs=[
                pl.BlockSpec((TB, F), lambda d: (0, 0)),
                pl.BlockSpec((1, F, 3 * Hp), lambda d: (d, 0, 0)),
                pl.BlockSpec((1, Hp, 3 * Hp), lambda d: (d, 0, 0)),
                pl.BlockSpec((1, 1, 3 * Hp), lambda d: (d, 0, 0)),
                pl.BlockSpec((1, 1, 3 * Hp), lambda d: (d, 0, 0)),
            ],
            out_specs=pl.BlockSpec((TB, Hp), lambda d: (0, d)),
            scratch_shapes=[pltpu.VMEM((TB, 3 * Hp), jnp.float32)],
        ),
        compiler_params=pltpu.CompilerParams(dimension_semantics=("parallel",)),
    )(x_flat, wih, whh, bih, bhh)


# =============================================================================
# Capsule routing + dense head, fully batched over the T "capsule batches".
# Flat layout: u[t*Bp+n, i*DC + k] == u_hat_vecs[t, i, n, k] of the torch code.
# One-hot selectors R/RT (capsule groups) and S/ST (per-t sums) keep everything
# as small matmuls -- no awkward (T, NC, B, DC) reshapes on-chip.  S only selects
# the B real input capsules per time step, so the Bp padding never leaks into the
# routing result.
# =============================================================================
def make_caps_dense_kernel(T, B, Bp):
    NC, DC = NUM_CAPSULE, DIM_CAPSULE
    M = NC * DC

    def kernel(g_ref, wc_ref, mask_ref, dw_ref, db_ref, o_ref):
        TB = g_ref.shape[0]                 # T * Bp

        # u_hat for every (t, input-capsule n): one MXU matmul for the whole batch.
        u = jnp.dot(g_ref[...], wc_ref[...], preferred_element_type=jnp.float32)  # (TB, M)

        def sel(nr, nc, fn):
            ri = jax.lax.broadcasted_iota(jnp.int32, (nr, nc), 0)
            ci = jax.lax.broadcasted_iota(jnp.int32, (nr, nc), 1)
            return fn(ri, ci).astype(jnp.float32)

        # Built once per invocation (not per routing iteration / grid step).
        R = sel(NC, M, lambda r, c: (c // DC) == r)      # (NC, M) capsule-group one-hot
        RT = sel(M, NC, lambda r, c: (r // DC) == c)     # (M, NC)
        # Sum over *real* input capsules only (mask out batch padding rows).
        S = sel(T, TB, lambda r, c: ((c // Bp) == r) & ((c % Bp) < B))   # (T, TB)
        ST = sel(TB, T, lambda r, c: (r // Bp) == c)     # (TB, T) broadcast back over n

        b_log = jnp.zeros((TB, NC), jnp.float32)         # routing logits b[t, n, i]
        out_flat = jnp.zeros((T, M), jnp.float32)

        for it in range(ROUTINGS):
            # softmax over output-capsule axis i (torch softmax(dim=2) after permute)
            b_max = jnp.max(b_log, axis=1, keepdims=True)
            e = jnp.exp(b_log - b_max)
            cpl = e / jnp.sum(e, axis=1, keepdims=True)                         # (TB, NC)
            cu = jnp.dot(cpl, R, preferred_element_type=jnp.float32) * u        # (TB, M)
            # outputs[t, i*DC+k] = sum_n c[t,n,i] * u[t,n,i*DC+k]   (real n only)
            out_flat = jnp.dot(S, cu, preferred_element_type=jnp.float32)       # (T, M)
            # squash: x / sqrt(sum_k x^2 + eps)
            grp = jnp.dot(out_flat * out_flat, RT,
                          preferred_element_type=jnp.float32)                   # (T, NC)
            scale = jax.lax.rsqrt(grp + T_EPSILON)
            out_flat = out_flat * jnp.dot(scale, R, preferred_element_type=jnp.float32)
            if it < ROUTINGS - 1:
                # b[t,n,i] = sum_k outputs[t,i,k] * u[t,n,i*DC+k]
                out_rep = jnp.dot(ST, out_flat, preferred_element_type=jnp.float32)  # (TB, M)
                b_log = jnp.dot(u * out_rep, RT, preferred_element_type=jnp.float32)  # (TB, NC)

        # Fused dense head: Dropout(mask precomputed) -> Linear(25, 1) -> Sigmoid.
        flat = out_flat * mask_ref[...]                                          # (T, M)
        logits = jnp.sum(flat * dw_ref[...], axis=1, keepdims=True) + db_ref[...]
        o_ref[...] = jax.nn.sigmoid(logits)

    return kernel


def caps_dense_head(g, wc, mask, dw, db, T, B, Bp):
    TB, Dp = g.shape
    M = wc.shape[1]
    kernel = make_caps_dense_kernel(T, B, Bp)
    return pl.pallas_call(
        kernel,
        out_shape=jax.ShapeDtypeStruct((T, 1), jnp.float32),
        grid_spec=pltpu.PrefetchScalarGridSpec(
            num_scalar_prefetch=0,
            grid=(1,),
            in_specs=[
                pl.BlockSpec((TB, Dp), lambda i: (0, 0)),
                pl.BlockSpec((Dp, M), lambda i: (0, 0)),
                pl.BlockSpec((T, M), lambda i: (0, 0)),
                pl.BlockSpec((1, M), lambda i: (0, 0)),
                pl.BlockSpec((1, 1), lambda i: (0, 0)),
            ],
            out_specs=pl.BlockSpec((T, 1), lambda i: (0, 0)),
        ),
        compiler_params=pltpu.CompilerParams(dimension_semantics=("arbitrary",)),
    )(g, wc, mask, dw, db)


# =============================================================================
# Glue: embedding, dropout, full forward
# =============================================================================
def dropout_mask(key, shape, p):
    keep = jax.random.bernoulli(key, 1.0 - p, shape)
    return keep.astype(jnp.float32) / (1.0 - p)


def capsule_main_forward(content, params, key):
    k_emb, k_dense = jax.random.split(key, 2)
    T, B = content.shape
    Bp = ((B + SUBLANE - 1) // SUBLANE) * SUBLANE

    # Embed_Layer: embedding lookup + Dropout(p=0.25)  (nn.Dropout constructed in
    # forward() -> always active; reproduced with a fixed key).
    emb = jnp.take(params["embedding"], content, axis=0)          # (T, B, 300)
    emb = emb * dropout_mask(k_emb, emb.shape, DROPOUT_P)
    emb = jnp.pad(emb, ((0, 0), (0, Bp - B), (0, 0)))             # sublane-pad batch
    x_flat = emb.reshape(T * Bp, EMBED_DIM)

    # GRU_Layer: fused bidirectional GRU -> (T*Bp, 2*Hp), lane/sublane padded
    gru_out = bigru_fused(x_flat, params["wih"], params["whh"],
                          params["bih"], params["bhh"], T, Bp)

    # Caps_Layer + Dense head fused: (T*Bp, 2*Hp) -> (T, 1)
    # TODO(synk): Dense_Layer is not defined in the source module; implemented as the
    # standard reference head Dropout(0.25) -> Linear(NUM_CAPSULE*DIM_CAPSULE, 1) -> Sigmoid.
    mask = dropout_mask(k_dense, (T, NUM_CAPSULE * DIM_CAPSULE), DROPOUT_P)
    return caps_dense_head(gru_out, params["caps_W_pad"], mask,
                           params["dense_W"], params["dense_b"], T, B, Bp)


def init_params(key, vocab_size):
    ks = jax.random.split(key, 10)
    H, F, Hp = HIDDEN_SIZE, EMBED_DIM, HP
    M = NUM_CAPSULE * DIM_CAPSULE
    caps_in = 2 * H

    def nrm(k, shape, scale):
        return jax.random.normal(k, shape, dtype=jnp.float32) * scale

    def pad_gate_cols(w):     # (Din, 3H) -> (Din, 3Hp): gate g at columns [g*Hp, g*Hp+H)
        out = jnp.zeros((w.shape[0], 3 * Hp), jnp.float32)
        for g in range(3):
            out = out.at[:, g * Hp:g * Hp + H].set(w[:, g * H:(g + 1) * H])
        return out

    def pad_rows(w):          # (H, C) -> (Hp, C) zero-padded rows
        return jnp.zeros((Hp, w.shape[1]), jnp.float32).at[:H].set(w)

    # GRU weights (pre-transposed, gate order [r, z, n]), then lane-padded per gate.
    wih_f = nrm(ks[1], (F, 3 * H), 0.05)
    wih_b = nrm(ks[2], (F, 3 * H), 0.05)
    whh_f = nrm(ks[3], (H, 3 * H), 0.08)
    whh_b = nrm(ks[4], (H, 3 * H), 0.08)

    wih = jnp.stack([pad_gate_cols(wih_f), pad_gate_cols(wih_b)])          # (2, F, 3Hp)
    whh = jnp.stack([pad_rows(pad_gate_cols(whh_f)),
                     pad_rows(pad_gate_cols(whh_b))])                      # (2, Hp, 3Hp)
    bih = jnp.zeros((2, 1, 3 * Hp), jnp.float32)                           # torch init: 0
    bhh = jnp.zeros((2, 1, 3 * Hp), jnp.float32)

    # Caps W (share_weights=True): logical (2H, NC*DC), zero-scattered into the
    # lane-padded GRU output layout (fwd rows at [0,H), bwd rows at [Hp, Hp+H)).
    caps_w = nrm(ks[5], (caps_in, M), (2.0 / (caps_in + M)) ** 0.5)
    caps_w_pad = jnp.zeros((2 * Hp, M), jnp.float32)
    caps_w_pad = caps_w_pad.at[0:H].set(caps_w[0:H])
    caps_w_pad = caps_w_pad.at[Hp:Hp + H].set(caps_w[H:2 * H])

    return {
        "embedding": nrm(ks[0], (vocab_size + 1, F), 0.48),
        "wih": wih, "whh": whh, "bih": bih, "bhh": bhh,
        "caps_W_pad": caps_w_pad,
        "dense_W": nrm(ks[6], (1, M), 0.2),     # stored as a row -> lane-wise mul+reduce
        "dense_b": jnp.zeros((1, 1), jnp.float32),
    }


if __name__ == "__main__":
    key = jax.random.PRNGKey(0)
    k_param, k_data, k_drop = jax.random.split(key, 3)

    VOCAB = 50
    T, B = 8, 2                       # seq_len=8, batch=2 (time-major, like nn.GRU default)
    content = jax.random.randint(k_data, (T, B), 0, VOCAB + 1, dtype=jnp.int32)

    params = init_params(k_param, VOCAB)
    out = capsule_main_forward(content, params, k_drop)
    out = jax.block_until_ready(out)

    assert out.shape == (T, 1), out.shape
    assert bool(jnp.all(jnp.isfinite(out)))
    print("KERNEL_OK")
</pallas_src>

<mosaic_0001>
module attributes {stable_mosaic.version = 11 : i64} {
  func.func @kernel(%arg0: i32, %arg1: memref<64x300xf32, #tpu.memory_space<vmem>>, %arg2: memref<1x300x384xf32, #tpu.memory_space<vmem>>, %arg3: memref<1x128x384xf32, #tpu.memory_space<vmem>>, %arg4: memref<1x1x384xf32, #tpu.memory_space<vmem>>, %arg5: memref<1x1x384xf32, #tpu.memory_space<vmem>>, %arg6: memref<64x128xf32, #tpu.memory_space<vmem>>, %arg7: memref<64x384xf32, #tpu.memory_space<vmem>>) attributes {dimension_semantics = [#tpu.dimension_semantics<parallel>], iteration_bounds = array<i64: 2>, scalar_prefetch = 0 : i64, scratch_operands = 1 : i64, tpu.core_type = #tpu.core_type<tc>, window_params = [{pipeline_mode = #tpu.pipeline_mode<synchronous>, transform_indices = @transform_0, window_bounds = array<i64: 64, 300>}, {transform_indices = @transform_1, window_bounds = array<i64: 1, 300, 384>}, {transform_indices = @transform_2, window_bounds = array<i64: 1, 128, 384>}, {transform_indices = @transform_3, window_bounds = array<i64: 1, 1, 384>}, {transform_indices = @transform_4, window_bounds = array<i64: 1, 1, 384>}, {transform_indices = @transform_5, window_bounds = array<i64: 64, 128>}]} {
    %c0 = arith.constant 0 : index
    %c0_0 = arith.constant 0 : index
    %0 = vector.load %arg1[%c0, %c0_0] : memref<64x300xf32, #tpu.memory_space<vmem>>, vector<64x300xf32>
    %c0_1 = arith.constant 0 : index
    %c0_2 = arith.constant 0 : index
    %c0_3 = arith.constant 0 : index
    %1 = vector.load %arg2[%c0_1, %c0_2, %c0_3] : memref<1x300x384xf32, #tpu.memory_space<vmem>>, vector<1x300x384xf32>
    %2 = vector.shape_cast %1 : vector<1x300x384xf32> to vector<300x384xf32>
    %cst = arith.constant dense<0.000000e+00> : vector<64x384xf32>
    %3 = tpu.matmul %0, %2, %cst {dimension_numbers = #tpu.dot_dimension_numbers<[1], [0], [0], [1], [0, 0, 1, 1], [], []>} : vector<64x300xf32>, vector<300x384xf32>, vector<64x384xf32> -> vector<64x384xf32>
    %c0_4 = arith.constant 0 : index
    %c0_5 = arith.constant 0 : index
    %c0_6 = arith.constant 0 : index
    %4 = vector.load %arg4[%c0_4, %c0_5, %c0_6] : memref<1x1x384xf32, #tpu.memory_space<vmem>>, vector<1x1x384xf32>
    %5 = vector.shape_cast %4 : vector<1x1x384xf32> to vector<1x384xf32>
    %6 = vector.broadcast %5 : vector<1x384xf32> to vector<64x384xf32>
    %7 = arith.addf %3, %6 : vector<64x384xf32>
    %c0_7 = arith.constant 0 : index
    %c0_8 = arith.constant 0 : index
    %8 = vector.load %arg7[%c0_7, %c0_8] : memref<64x384xf32, #tpu.memory_space<vmem>>, vector<64x384xf32>
    tpu.vector_store %arg7[%c0_7, %c0_8], %7 {strides = array<i32>} : memref<64x384xf32, #tpu.memory_space<vmem>>, vector<64x384xf32>,
    %c0_9 = arith.constant 0 : index
    %c0_10 = arith.constant 0 : index
    %c0_11 = arith.constant 0 : index
    %9 = vector.load %arg3[%c0_9, %c0_10, %c0_11] : memref<1x128x384xf32, #tpu.memory_space<vmem>>, vector<1x128x384xf32>
    %10 = vector.shape_cast %9 : vector<1x128x384xf32> to vector<128x384xf32>
    %c0_12 = arith.constant 0 : index
    %c0_13 = arith.constant 0 : index
    %c0_14 = arith.constant 0 : index
    %11 = vector.load %arg5[%c0_12, %c0_13, %c0_14] : memref<1x1x384xf32, #tpu.memory_space<vmem>>, vector<1x1x384xf32>
    %12 = vector.shape_cast %11 : vector<1x1x384xf32> to vector<1x384xf32>
    %cst_15 = arith.constant 0.000000e+00 : f32
    %13 = vector.broadcast %cst_15 : f32 to vector<8x128xf32>
    %c0_i32 = arith.constant 0 : i32
    %c7_i32 = arith.constant 7 : i32
    %14 = arith.muli %arg0, %c7_i32 : i32
    %c2_i32 = arith.constant 2 : i32
    %15 = arith.muli %c2_i32, %arg0 : i32
    %c1_i32 = arith.constant 1 : i32
    %16 = arith.subi %c1_i32, %15 : i32
    %17 = arith.muli %16, %c0_i32 : i32
    %18 = arith.addi %14, %17 : i32
    %c8_i32 = arith.constant 8 : i32
    %19 = arith.muli %18, %c8_i32 : i32
    %20 = tpu.assume_multiple %19, 8 : i32
    %21 = arith.index_cast %20 : i32 to index
    %c0_16 = arith.constant 0 : index
    %22 = vector.load %arg7[%21, %c0_16] : memref<64x384xf32, #tpu.memory_space<vmem>>, vector<8x384xf32>
    %cst_17 = arith.constant dense<0.000000e+00> : vector<8x384xf32>
    %23 = tpu.matmul %13, %10, %cst_17 {dimension_numbers = #tpu.dot_dimension_numbers<[1], [0], [0], [1], [0, 0, 1, 1], [], []>} : vector<8x128xf32>, vector<128x384xf32>, vector<8x384xf32> -> vector<8x384xf32>
    %24 = vector.broadcast %12 : vector<1x384xf32> to vector<8x384xf32>
    %25 = arith.addf %23, %24 : vector<8x384xf32>
    %26 = vector.extract_strided_slice %22 {offsets = [0, 0], sizes = [8, 128], strides = [1, 1]} : vector<8x384xf32> to vector<8x128xf32>
    %27 = vector.extract_strided_slice %25 {offsets = [0, 0], sizes = [8, 128], strides = [1, 1]} : vector<8x384xf32> to vector<8x128xf32>
    %28 = arith.addf %26, %27 : vector<8x128xf32>
    %29 = arith.negf %28 : vector<8x128xf32>
    %30 = math.exp %29 : vector<8x128xf32>
    %cst_18 = arith.constant 1.000000e+00 : f32
    %31 = vector.broadcast %cst_18 : f32 to vector<8x128xf32>
    %32 = arith.addf %31, %30 : vector<8x128xf32>
    %33 = arith.divf %31, %32 : vector<8x128xf32>
    %34 = vector.extract_strided_slice %22 {offsets = [0, 128], sizes = [8, 128], strides = [1, 1]} : vector<8x384xf32> to vector<8x128xf32>
    %35 = vector.extract_strided_slice %25 {offsets = [0, 128], sizes = [8, 128], strides = [1, 1]} : vector<8x384xf32> to vector<8x128xf32>
    %36 = arith.addf %34, %35 : vector<8x128xf32>
    %37 = arith.negf %36 : vector<8x128xf32>
    %38 = math.exp %37 : vector<8x128xf32>
    %cst_19 = arith.constant 1.000000e+00 : f32
    %39 = vector.broadcast %cst_19 : f32 to vector<8x128xf32>
    %40 = arith.addf %39, %38 : vector<8x128xf32>
    %41 = arith.divf %39, %40 : vector<8x128xf32>
    %42 = vector.extract_strided_slice %22 {offsets = [0, 256], sizes = [8, 128], strides = [1, 1]} : vector<8x384xf32> to vector<8x128xf32>
    %43 = vector.extract_strided_slice %25 {offsets = [0, 256], sizes = [8, 128], strides = [1, 1]} : vector<8x384xf32> to vector<8x128xf32>
    %44 = arith.mulf %33, %43 : vector<8x128xf32>
    %45 = arith.addf %42, %44 : vector<8x128xf32>
    %46 = math.tanh %45 : vector<8x128xf32>
    %cst_20 = arith.constant 1.000000e+00 : f32
    %47 = vector.broadcast %cst_20 : f32 to vector<8x128xf32>
    %48 = arith.subf %47, %41 : vector<8x128xf32>
    %49 = arith.mulf %48, %46 : vector<8x128xf32>
    %50 = arith.mulf %41, %13 : vector<8x128xf32>
    %51 = arith.addf %49, %50 : vector<8x128xf32>
    %52 = arith.index_cast %20 : i32 to index
    %c0_21 = arith.constant 0 : index
    %53 = vector.load %arg6[%52, %c0_21] : memref<64x128xf32, #tpu.memory_space<vmem>>, vector<8x128xf32>
    tpu.vector_store %arg6[%52, %c0_21], %51 {strides = array<i32>} : memref<64x128xf32, #tpu.memory_space<vmem>>, vector<8x128xf32>,
    %c1_i32_22 = arith.constant 1 : i32
    %c7_i32_23 = arith.constant 7 : i32
    %54 = arith.muli %arg0, %c7_i32_23 : i32
    %c2_i32_24 = arith.constant 2 : i32
    %55 = arith.muli %c2_i32_24, %arg0 : i32
    %c1_i32_25 = arith.constant 1 : i32
    %56 = arith.subi %c1_i32_25, %55 : i32
    %57 = arith.muli %56, %c1_i32_22 : i32
    %58 = arith.addi %54, %57 : i32
    %c8_i32_26 = arith.constant 8 : i32
    %59 = arith.muli %58, %c8_i32_26 : i32
    %60 = tpu.assume_multiple %59, 8 : i32
    %61 = arith.index_cast %60 : i32 to index
    %c0_27 = arith.constant 0 : index
    %62 = vector.load %arg7[%61, %c0_27] : memref<64x384xf32, #tpu.memory_space<vmem>>, vector<8x384xf32>
    %cst_28 = arith.constant dense<0.000000e+00> : vector<8x384xf32>
    %63 = tpu.matmul %51, %10, %cst_28 {dimension_numbers = #tpu.dot_dimension_numbers<[1], [0], [0], [1], [0, 0, 1, 1], [], []>} : vector<8x128xf32>, vector<128x384xf32>, vector<8x384xf32> -> vector<8x384xf32>
    %64 = vector.broadcast %12 : vector<1x384xf32> to vector<8x384xf32>
    %65 = arith.addf %63, %64 : vector<8x384xf32>
    %66 = vector.extract_strided_slice %62 {offsets = [0, 0], sizes = [8, 128], strides = [1, 1]} : vector<8x384xf32> to vector<8x128xf32>
    %67 = vector.extract_strided_slice %65 {offsets = [0, 0], sizes = [8, 128], strides = [1, 1]} : vector<8x384xf32> to vector<8x128xf32>
    %68 = arith.addf %66, %67 : vector<8x128xf32>
    %69 = arith.negf %68 : vector<8x128xf32>
    %70 = math.exp %69 : vector<8x128xf32>
    %cst_29 = arith.constant 1.000000e+00 : f32
    %71 = vector.broadcast %cst_29 : f32 to vector<8x128xf32>
    %72 = arith.addf %71, %70 : vector<8x128xf32>
    %73 = arith.divf %71, %72 : vector<8x128xf32>
    %74 = vector.extract_strided_slice %62 {offsets = [0, 128], sizes = [8, 128], strides = [1, 1]} : vector<8x384xf32> to vector<8x128xf32>
    %75 = vector.extract_strided_slice %65 {offsets = [0, 128], sizes = [8, 128], strides = [1, 1]} : vector<8x384xf32> to vector<8x128xf32>
    %76 = arith.addf %74, %75 : vector<8x128xf32>
    %77 = arith.negf %76 : vector<8x128xf32>
    %78 = math.exp %77 : vector<8x128xf32>
    %cst_30 = arith.constant 1.000000e+00 : f32
    %79 = vector.broadcast %cst_30 : f32 to vector<8x128xf32>
    %80 = arith.addf %79, %78 : vector<8x128xf32>
    %81 = arith.divf %79, %80 : vector<8x128xf32>
    %82 = vector.extract_strided_slice %62 {offsets = [0, 256], sizes = [8, 128], strides = [1, 1]} : vector<8x384xf32> to vector<8x128xf32>
    %83 = vector.extract_strided_slice %65 {offsets = [0, 256], sizes = [8, 128], strides = [1, 1]} : vector<8x384xf32> to vector<8x128xf32>
    %84 = arith.mulf %73, %83 : vector<8x128xf32>
    %85 = arith.addf %82, %84 : vector<8x128xf32>
    %86 = math.tanh %85 : vector<8x128xf32>
    %cst_31 = arith.constant 1.000000e+00 : f32
    %87 = vector.broadcast %cst_31 : f32 to vector<8x128xf32>
    %88 = arith.subf %87, %81 : vector<8x128xf32>
    %89 = arith.mulf %88, %86 : vector<8x128xf32>
    %90 = arith.mulf %81, %51 : vector<8x128xf32>
    %91 = arith.addf %89, %90 : vector<8x128xf32>
    %92 = arith.index_cast %60 : i32 to index
    %c0_32 = arith.constant 0 : index
    %93 = vector.load %arg6[%92, %c0_32] : memref<64x128xf32, #tpu.memory_space<vmem>>, vector<8x128xf32>
    tpu.vector_store %arg6[%92, %c0_32], %91 {strides = array<i32>} : memref<64x128xf32, #tpu.memory_space<vmem>>, vector<8x128xf32>,
    %c2_i32_33 = arith.constant 2 : i32
    %c7_i32_34 = arith.constant 7 : i32
    %94 = arith.muli %arg0, %c7_i32_34 : i32
    %c2_i32_35 = arith.constant 2 : i32
    %95 = arith.muli %c2_i32_35, %arg0 : i32
    %c1_i32_36 = arith.constant 1 : i32
    %96 = arith.subi %c1_i32_36, %95 : i32
    %97 = arith.muli %96, %c2_i32_33 : i32
    %98 = arith.addi %94, %97 : i32
    %c8_i32_37 = arith.constant 8 : i32
    %99 = arith.muli %98, %c8_i32_37 : i32
    %100 = tpu.assume_multiple %99, 8 : i32
    %101 = arith.index_cast %100 : i32 to index
    %c0_38 = arith.constant 0 : index
    %102 = vector.load %arg7[%101, %c0_38] : memref<64x384xf32, #tpu.memory_space<vmem>>, vector<8x384xf32>
    %cst_39 = arith.constant dense<0.000000e+00> : vector<8x384xf32>
    %103 = tpu.matmul %91, %10, %cst_39 {dimension_numbers = #tpu.dot_dimension_numbers<[1], [0], [0], [1], [0, 0, 1, 1], [], []>} : vector<8x128xf32>, vector<128x384xf32>, vector<8x384xf32> -> vector<8x384xf32>
    %104 = vector.broadcast %12 : vector<1x384xf32> to vector<8x384xf32>
    %105 = arith.addf %103, %104 : vector<8x384xf32>
    %106 = vector.extract_strided_slice %102 {offsets = [0, 0], sizes = [8, 128], strides = [1, 1]} : vector<8x384xf32> to vector<8x128xf32>
    %107 = vector.extract_strided_slice %105 {offsets = [0, 0], sizes = [8, 128], strides = [1, 1]} : vector<8x384xf32> to vector<8x128xf32>
    %108 = arith.addf %106, %107 : vector<8x128xf32>
    %109 = arith.negf %108 : vector<8x128xf32>
    %110 = math.exp %109 : vector<8x128xf32>
    %cst_40 = arith.constant 1.000000e+00 : f32
    %111 = vector.broadcast %cst_40 : f32 to vector<8x128xf32>
    %112 = arith.addf %111, %110 : vector<8x128xf32>
    %113 = arith.divf %111, %112 : vector<8x128xf32>
    %114 = vector.extract_strided_slice %102 {offsets = [0, 128], sizes = [8, 128], strides = [1, 1]} : vector<8x384xf32> to vector<8x128xf32>
    %115 = vector.extract_strided_slice %105 {offsets = [0, 128], sizes = [8, 128], strides = [1, 1]} : vector<8x384xf32> to vector<8x128xf32>
    %116 = arith.addf %114, %115 : vector<8x128xf32>
    %117 = arith.negf %116 : vector<8x128xf32>
    %118 = math.exp %117 : vector<8x128xf32>
    %cst_41 = arith.constant 1.000000e+00 : f32
    %119 = vector.broadcast %cst_41 : f32 to vector<8x128xf32>
    %120 = arith.addf %119, %118 : vector<8x128xf32>
    %121 = arith.divf %119, %120 : vector<8x128xf32>
    %122 = vector.extract_strided_slice %102 {offsets = [0, 256], sizes = [8, 128], strides = [1, 1]} : vector<8x384xf32> to vector<8x128xf32>
    %123 = vector.extract_strided_slice %105 {offsets = [0, 256], sizes = [8, 128], strides = [1, 1]} : vector<8x384xf32> to vector<8x128xf32>
    %124 = arith.mulf %113, %123 : vector<8x128xf32>
    %125 = arith.addf %122, %124 : vector<8x128xf32>
    %126 = math.tanh %125 : vector<8x128xf32>
    %cst_42 = arith.constant 1.000000e+00 : f32
    %127 = vector.broadcast %cst_42 : f32 to vector<8x128xf32>
    %128 = arith.subf %127, %121 : vector<8x128xf32>
    %129 = arith.mulf %128, %126 : vector<8x128xf32>
    %130 = arith.mulf %121, %91 : vector<8x128xf32>
    %131 = arith.addf %129, %130 : vector<8x128xf32>
    %132 = arith.index_cast %100 : i32 to index
    %c0_43 = arith.constant 0 : index
    %133 = vector.load %arg6[%132, %c0_43] : memref<64x128xf32, #tpu.memory_space<vmem>>, vector<8x128xf32>
    tpu.vector_store %arg6[%132, %c0_43], %131 {strides = array<i32>} : memref<64x128xf32, #tpu.memory_space<vmem>>, vector<8x128xf32>,
    %c3_i32 = arith.constant 3 : i32
    %c7_i32_44 = arith.constant 7 : i32
    %134 = arith.muli %arg0, %c7_i32_44 : i32
    %c2_i32_45 = arith.constant 2 : i32
    %135 = arith.muli %c2_i32_45, %arg0 : i32
    %c1_i32_46 = arith.constant 1 : i32
    %136 = arith.subi %c1_i32_46, %135 : i32
    %137 = arith.muli %136, %c3_i32 : i32
    %138 = arith.addi %134, %137 : i32
    %c8_i32_47 = arith.constant 8 : i32
    %139 = arith.muli %138, %c8_i32_47 : i32
    %140 = tpu.assume_multiple %139, 8 : i32
    %141 = arith.index_cast %140 : i32 to index
    %c0_48 = arith.constant 0 : index
    %142 = vector.load %arg7[%141, %c0_48] : memref<64x384xf32, #tpu.memory_space<vmem>>, vector<8x384xf32>
    %cst_49 = arith.constant dense<0.000000e+00> : vector<8x384xf32>
    %143 = tpu.matmul %131, %10, %cst_49 {dimension_numbers = #tpu.dot_dimension_numbers<[1], [0], [0], [1], [0, 0, 1, 1], [], []>} : vector<8x128xf32>, vector<128x384xf32>, vector<8x384xf32> -> vector<8x384xf32>
    %144 = vector.broadcast %12 : vector<1x384xf32> to vector<8x384xf32>
    %145 = arith.addf %143, %144 : vector<8x384xf32>
    %146 = vector.extract_strided_slice %142 {offsets = [0, 0], sizes = [8, 128], strides = [1, 1]} : vector<8x384xf32> to vector<8x128xf32>
    %147 = vector.extract_strided_slice %145 {offsets = [0, 0], sizes = [8, 128], strides = [1, 1]} : vector<8x384xf32> to vector<8x128xf32>
    %148 = arith.addf %146, %147 : vector<8x128xf32>
    %149 = arith.negf %148 : vector<8x128xf32>
    %150 = math.exp %149 : vector<8x128xf32>
    %cst_50 = arith.constant 1.000000e+00 : f32
    %151 = vector.broadcast %cst_50 : f32 to vector<8x128xf32>
    %152 = arith.addf %151, %150 : vector<8x128xf32>
    %153 = arith.divf %151, %152 : vector<8x128xf32>
    %154 = vector.extract_strided_slice %142 {offsets = [0, 128], sizes = [8, 128], strides = [1, 1]} : vector<8x384xf32> to vector<8x128xf32>
    %155 = vector.extract_strided_slice %145 {offsets = [0, 128], sizes = [8, 128], strides = [1, 1]} : vector<8x384xf32> to vector<8x128xf32>
    %156 = arith.addf %154, %155 : vector<8x128xf32>
    %157 = arith.negf %156 : vector<8x128xf32>
    %158 = math.exp %157 : vector<8x128xf32>
    %cst_51 = arith.constant 1.000000e+00 : f32
    %159 = vector.broadcast %cst_51 : f32 to vector<8x128xf32>
    %160 = arith.addf %159, %158 : vector<8x128xf32>
    %161 = arith.divf %159, %160 : vector<8x128xf32>
    %162 = vector.extract_strided_slice %142 {offsets = [0, 256], sizes = [8, 128], strides = [1, 1]} : vector<8x384xf32> to vector<8x128xf32>
    %163 = vector.extract_strided_slice %145 {offsets = [0, 256], sizes = [8, 128], strides = [1, 1]} : vector<8x384xf32> to vector<8x128xf32>
    %164 = arith.mulf %153, %163 : vector<8x128xf32>
    %165 = arith.addf %162, %164 : vector<8x128xf32>
    %166 = math.tanh %165 : vector<8x128xf32>
    %cst_52 = arith.constant 1.000000e+00 : f32
    %167 = vector.broadcast %cst_52 : f32 to vector<8x128xf32>
    %168 = arith.subf %167, %161 : vector<8x128xf32>
    %169 = arith.mulf %168, %166 : vector<8x128xf32>
    %170 = arith.mulf %161, %131 : vector<8x128xf32>
    %171 = arith.addf %169, %170 : vector<8x128xf32>
    %172 = arith.index_cast %140 : i32 to index
    %c0_53 = arith.constant 0 : index
    %173 = vector.load %arg6[%172, %c0_53] : memref<64x128xf32, #tpu.memory_space<vmem>>, vector<8x128xf32>
    tpu.vector_store %arg6[%172, %c0_53], %171 {strides = array<i32>} : memref<64x128xf32, #tpu.memory_space<vmem>>, vector<8x128xf32>,
    %c4_i32 = arith.constant 4 : i32
    %c7_i32_54 = arith.constant 7 : i32
    %174 = arith.muli %arg0, %c7_i32_54 : i32
    %c2_i32_55 = arith.constant 2 : i32
    %175 = arith.muli %c2_i32_55, %arg0 : i32
    %c1_i32_56 = arith.constant 1 : i32
    %176 = arith.subi %c1_i32_56, %175 : i32
    %177 = arith.muli %176, %c4_i32 : i32
    %178 = arith.addi %174, %177 : i32
    %c8_i32_57 = arith.constant 8 : i32
    %179 = arith.muli %178, %c8_i32_57 : i32
    %180 = tpu.assume_multiple %179, 8 : i32
    %181 = arith.index_cast %180 : i32 to index
    %c0_58 = arith.constant 0 : index
    %182 = vector.load %arg7[%181, %c0_58] : memref<64x384xf32, #tpu.memory_space<vmem>>, vector<8x384xf32>
    %cst_59 = arith.constant dense<0.000000e+00> : vector<8x384xf32>
    %183 = tpu.matmul %171, %10, %cst_59 {dimension_numbers = #tpu.dot_dimension_numbers<[1], [0], [0], [1], [0, 0, 1, 1], [], []>} : vector<8x128xf32>, vector<128x384xf32>, vector<8x384xf32> -> vector<8x384xf32>
    %184 = vector.broadcast %12 : vector<1x384xf32> to vector<8x384xf32>
    %185 = arith.addf %183, %184 : vector<8x384xf32>
    %186 = vector.extract_strided_slice %182 {offsets = [0, 0], sizes = [8, 128], strides = [1, 1]} : vector<8x384xf32> to vector<8x128xf32>
    %187 = vector.extract_strided_slice %185 {offsets = [0, 0], sizes = [8, 128], strides = [1, 1]} : vector<8x384xf32> to vector<8x128xf32>
    %188 = arith.addf %186, %187 : vector<8x128xf32>
    %189 = arith.negf %188 : vector<8x128xf32>
    %190 = math.exp %189 : vector<8x128xf32>
    %cst_60 = arith.constant 1.000000e+00 : f32
    %191 = vector.broadcast %cst_60 : f32 to vector<8x128xf32>
    %192 = arith.addf %191, %190 : vector<8x128xf32>
    %193 = arith.divf %191, %192 : vector<8x128xf32>
    %194 = vector.extract_strided_slice %182 {offsets = [0, 128], sizes = [8, 128], strides = [1, 1]} : vector<8x384xf32> to vector<8x128xf32>
    %195 = vector.extract_strided_slice %185 {offsets = [0, 128], sizes = [8, 128], strides = [1, 1]} : vector<8x384xf32> to vector<8x128xf32>
    %196 = arith.addf %194, %195 : vector<8x128xf32>
    %197 = arith.negf %196 : vector<8x128xf32>
    %198 = math.exp %197 : vector<8x128xf32>
    %cst_61 = arith.constant 1.000000e+00 : f32
    %199 = vector.broadcast %cst_61 : f32 to vector<8x128xf32>
    %200 = arith.addf %199, %198 : vector<8x128xf32>
    %201 = arith.divf %199, %200 : vector<8x128xf32>
    %202 = vector.extract_strided_slice %182 {offsets = [0, 256], sizes = [8, 128], strides = [1, 1]} : vector<8x384xf32> to vector<8x128xf32>
    %203 = vector.extract_strided_slice %185 {offsets = [0, 256], sizes = [8, 128], strides = [1, 1]} : vector<8x384xf32> to vector<8x128xf32>
    %204 = arith.mulf %193, %203 : vector<8x128xf32>
    %205 = arith.addf %202, %204 : vector<8x128xf32>
    %206 = math.tanh %205 : vector<8x128xf32>
    %cst_62 = arith.constant 1.000000e+00 : f32
    %207 = vector.broadcast %cst_62 : f32 to vector<8x128xf32>
    %208 = arith.subf %207, %201 : vector<8x128xf32>
    %209 = arith.mulf %208, %206 : vector<8x128xf32>
    %210 = arith.mulf %201, %171 : vector<8x128xf32>
    %211 = arith.addf %209, %210 : vector<8x128xf32>
    %212 = arith.index_cast %180 : i32 to index
    %c0_63 = arith.constant 0 : index
    %213 = vector.load %arg6[%212, %c0_63] : memref<64x128xf32, #tpu.memory_space<vmem>>, vector<8x128xf32>
    tpu.vector_store %arg6[%212, %c0_63], %211 {strides = array<i32>} : memref<64x128xf32, #tpu.memory_space<vmem>>, vector<8x128xf32>,
    %c5_i32 = arith.constant 5 : i32
    %c7_i32_64 = arith.constant 7 : i32
    %214 = arith.muli %arg0, %c7_i32_64 : i32
    %c2_i32_65 = arith.constant 2 : i32
    %215 = arith.muli %c2_i32_65, %arg0 : i32
    %c1_i32_66 = arith.constant 1 : i32
    %216 = arith.subi %c1_i32_66, %215 : i32
    %217 = arith.muli %216, %c5_i32 : i32
    %218 = arith.addi %214, %217 : i32
    %c8_i32_67 = arith.constant 8 : i32
    %219 = arith.muli %218, %c8_i32_67 : i32
    %220 = tpu.assume_multiple %219, 8 : i32
    %221 = arith.index_cast %220 : i32 to index
    %c0_68 = arith.constant 0 : index
    %222 = vector.load %arg7[%221, %c0_68] : memref<64x384xf32, #tpu.memory_space<vmem>>, vector<8x384xf32>
    %cst_69 = arith.constant dense<0.000000e+00> : vector<8x384xf32>
    %223 = tpu.matmul %211, %10, %cst_69 {dimension_numbers = #tpu.dot_dimension_numbers<[1], [0], [0], [1], [0, 0, 1, 1], [], []>} : vector<8x128xf32>, vector<128x384xf32>, vector<8x384xf32> -> vector<8x384xf32>
    %224 = vector.broadcast %12 : vector<1x384xf32> to vector<8x384xf32>
    %225 = arith.addf %223, %224 : vector<8x384xf32>
    %226 = vector.extract_strided_slice %222 {offsets = [0, 0], sizes = [8, 128], strides = [1, 1]} : vector<8x384xf32> to vector<8x128xf32>
    %227 = vector.extract_strided_slice %225 {offsets = [0, 0], sizes = [8, 128], strides = [1, 1]} : vector<8x384xf32> to vector<8x128xf32>
    %228 = arith.addf %226, %227 : vector<8x128xf32>
    %229 = arith.negf %228 : vector<8x128xf32>
    %230 = math.exp %229 : vector<8x128xf32>
    %cst_70 = arith.constant 1.000000e+00 : f32
    %231 = vector.broadcast %cst_70 : f32 to vector<8x128xf32>
    %232 = arith.addf %231, %230 : vector<8x128xf32>
    %233 = arith.divf %231, %232 : vector<8x128xf32>
    %234 = vector.extract_strided_slice %222 {offsets = [0, 128], sizes = [8, 128], strides = [1, 1]} : vector<8x384xf32> to vector<8x128xf32>
    %235 = vector.extract_strided_slice %225 {offsets = [0, 128], sizes = [8, 128], strides = [1, 1]} : vector<8x384xf32> to vector<8x128xf32>
    %236 = arith.addf %234, %235 : vector<8x128xf32>
    %237 = arith.negf %236 : vector<8x128xf32>
    %238 = math.exp %237 : vector<8x128xf32>
    %cst_71 = arith.constant 1.000000e+00 : f32
    %239 = vector.broadcast %cst_71 : f32 to vector<8x128xf32>
    %240 = arith.addf %239, %238 : vector<8x128xf32>
    %241 = arith.divf %239, %240 : vector<8x128xf32>
    %242 = vector.extract_strided_slice %222 {offsets = [0, 256], sizes = [8, 128], strides = [1, 1]} : vector<8x384xf32> to vector<8x128xf32>
    %243 = vector.extract_strided_slice %225 {offsets = [0, 256], sizes = [8, 128], strides = [1, 1]} : vector<8x384xf32> to vector<8x128xf32>
    %244 = arith.mulf %233, %243 : vector<8x128xf32>
    %245 = arith.addf %242, %244 : vector<8x128xf32>
    %246 = math.tanh %245 : vector<8x128xf32>
    %cst_72 = arith.constant 1.000000e+00 : f32
    %247 = vector.broadcast %cst_72 : f32 to vector<8x128xf32>
    %248 = arith.subf %247, %241 : vector<8x128xf32>
    %249 = arith.mulf %248, %246 : vector<8x128xf32>
    %250 = arith.mulf %241, %211 : vector<8x128xf32>
    %251 = arith.addf %249, %250 : vector<8x128xf32>
    %252 = arith.index_cast %220 : i32 to index
    %c0_73 = arith.constant 0 : index
    %253 = vector.load %arg6[%252, %c0_73] : memref<64x128xf32, #tpu.memory_space<vmem>>, vector<8x128xf32>
    tpu.vector_store %arg6[%252, %c0_73], %251 {strides = array<i32>} : memref<64x128xf32, #tpu.memory_space<vmem>>, vector<8x128xf32>,
    %c6_i32 = arith.constant 6 : i32
    %c7_i32_74 = arith.constant 7 : i32
    %254 = arith.muli %arg0, %c7_i32_74 : i32
    %c2_i32_75 = arith.constant 2 : i32
    %255 = arith.muli %c2_i32_75, %arg0 : i32
    %c1_i32_76 = arith.constant 1 : i32
    %256 = arith.subi %c1_i32_76, %255 : i32
    %257 = arith.muli %256, %c6_i32 : i32
    %258 = arith.addi %254, %257 : i32
    %c8_i32_77 = arith.constant 8 : i32
    %259 = arith.muli %258, %c8_i32_77 : i32
    %260 = tpu.assume_multiple %259, 8 : i32
    %261 = arith.index_cast %260 : i32 to index
    %c0_78 = arith.constant 0 : index
    %262 = vector.load %arg7[%261, %c0_78] : memref<64x384xf32, #tpu.memory_space<vmem>>, vector<8x384xf32>
    %cst_79 = arith.constant dense<0.000000e+00> : vector<8x384xf32>
    %263 = tpu.matmul %251, %10, %cst_79 {dimension_numbers = #tpu.dot_dimension_numbers<[1], [0], [0], [1], [0, 0, 1, 1], [], []>} : vector<8x128xf32>, vector<128x384xf32>, vector<8x384xf32> -> vector<8x384xf32>
    %264 = vector.broadcast %12 : vector<1x384xf32> to vector<8x384xf32>
    %265 = arith.addf %263, %264 : vector<8x384xf32>
    %266 = vector.extract_strided_slice %262 {offsets = [0, 0], sizes = [8, 128], strides = [1, 1]} : vector<8x384xf32> to vector<8x128xf32>
    %267 = vector.extract_strided_slice %265 {offsets = [0, 0], sizes = [8, 128], strides = [1, 1]} : vector<8x384xf32> to vector<8x128xf32>
    %268 = arith.addf %266, %267 : vector<8x128xf32>
    %269 = arith.negf %268 : vector<8x128xf32>
    %270 = math.exp %269 : vector<8x128xf32>
    %cst_80 = arith.constant 1.000000e+00 : f32
    %271 = vector.broadcast %cst_80 : f32 to vector<8x128xf32>
    %272 = arith.addf %271, %270 : vector<8x128xf32>
    %273 = arith.divf %271, %272 : vector<8x128xf32>
    %274 = vector.extract_strided_slice %262 {offsets = [0, 128], sizes = [8, 128], strides = [1, 1]} : vector<8x384xf32> to vector<8x128xf32>
    %275 = vector.extract_strided_slice %265 {offsets = [0, 128], sizes = [8, 128], strides = [1, 1]} : vector<8x384xf32> to vector<8x128xf32>
    %276 = arith.addf %274, %275 : vector<8x128xf32>
    %277 = arith.negf %276 : vector<8x128xf32>
    %278 = math.exp %277 : vector<8x128xf32>
    %cst_81 = arith.constant 1.000000e+00 : f32
    %279 = vector.broadcast %cst_81 : f32 to vector<8x128xf32>
    %280 = arith.addf %279, %278 : vector<8x128xf32>
    %281 = arith.divf %279, %280 : vector<8x128xf32>
    %282 = vector.extract_strided_slice %262 {offsets = [0, 256], sizes = [8, 128], strides = [1, 1]} : vector<8x384xf32> to vector<8x128xf32>
    %283 = vector.extract_strided_slice %265 {offsets = [0, 256], sizes = [8, 128], strides = [1, 1]} : vector<8x384xf32> to vector<8x128xf32>
    %284 = arith.mulf %273, %283 : vector<8x128xf32>
    %285 = arith.addf %282, %284 : vector<8x128xf32>
    %286 = math.tanh %285 : vector<8x128xf32>
    %cst_82 = arith.constant 1.000000e+00 : f32
    %287 = vector.broadcast %cst_82 : f32 to vector<8x128xf32>
    %288 = arith.subf %287, %281 : vector<8x128xf32>
    %289 = arith.mulf %288, %286 : vector<8x128xf32>
    %290 = arith.mulf %281, %251 : vector<8x128xf32>
    %291 = arith.addf %289, %290 : vector<8x128xf32>
    %292 = arith.index_cast %260 : i32 to index
    %c0_83 = arith.constant 0 : index
    %293 = vector.load %arg6[%292, %c0_83] : memref<64x128xf32, #tpu.memory_space<vmem>>, vector<8x128xf32>
    tpu.vector_store %arg6[%292, %c0_83], %291 {strides = array<i32>} : memref<64x128xf32, #tpu.memory_space<vmem>>, vector<8x128xf32>,
    %c7_i32_84 = arith.constant 7 : i32
    %c7_i32_85 = arith.constant 7 : i32
    %294 = arith.muli %arg0, %c7_i32_85 : i32
    %c2_i32_86 = arith.constant 2 : i32
    %295 = arith.muli %c2_i32_86, %arg0 : i32
    %c1_i32_87 = arith.constant 1 : i32
    %296 = arith.subi %c1_i32_87, %295 : i32
    %297 = arith.muli %296, %c7_i32_84 : i32
    %298 = arith.addi %294, %297 : i32
    %c8_i32_88 = arith.constant 8 : i32
    %299 = arith.muli %298, %c8_i32_88 : i32
    %300 = tpu.assume_multiple %299, 8 : i32
    %301 = arith.index_cast %300 : i32 to index
    %c0_89 = arith.constant 0 : index
    %302 = vector.load %arg7[%301, %c0_89] : memref<64x384xf32, #tpu.memory_space<vmem>>, vector<8x384xf32>
    %cst_90 = arith.constant dense<0.000000e+00> : vector<8x384xf32>
    %303 = tpu.matmul %291, %10, %cst_90 {dimension_numbers = #tpu.dot_dimension_numbers<[1], [0], [0], [1], [0, 0, 1, 1], [], []>} : vector<8x128xf32>, vector<128x384xf32>, vector<8x384xf32> -> vector<8x384xf32>
    %304 = vector.broadcast %12 : vector<1x384xf32> to vector<8x384xf32>
    %305 = arith.addf %303, %304 : vector<8x384xf32>
    %306 = vector.extract_strided_slice %302 {offsets = [0, 0], sizes = [8, 128], strides = [1, 1]} : vector<8x384xf32> to vector<8x128xf32>
    %307 = vector.extract_strided_slice %305 {offsets = [0, 0], sizes = [8, 128], strides = [1, 1]} : vector<8x384xf32> to vector<8x128xf32>
    %308 = arith.addf %306, %307 : vector<8x128xf32>
    %309 = arith.negf %308 : vector<8x128xf32>
    %310 = math.exp %309 : vector<8x128xf32>
    %cst_91 = arith.constant 1.000000e+00 : f32
    %311 = vector.broadcast %cst_91 : f32 to vector<8x128xf32>
    %312 = arith.addf %311, %310 : vector<8x128xf32>
    %313 = arith.divf %311, %312 : vector<8x128xf32>
    %314 = vector.extract_strided_slice %302 {offsets = [0, 128], sizes = [8, 128], strides = [1, 1]} : vector<8x384xf32> to vector<8x128xf32>
    %315 = vector.extract_strided_slice %305 {offsets = [0, 128], sizes = [8, 128], strides = [1, 1]} : vector<8x384xf32> to vector<8x128xf32>
    %316 = arith.addf %314, %315 : vector<8x128xf32>
    %317 = arith.negf %316 : vector<8x128xf32>
    %318 = math.exp %317 : vector<8x128xf32>
    %cst_92 = arith.constant 1.000000e+00 : f32
    %319 = vector.broadcast %cst_92 : f32 to vector<8x128xf32>
    %320 = arith.addf %319, %318 : vector<8x128xf32>
    %321 = arith.divf %319, %320 : vector<8x128xf32>
    %322 = vector.extract_strided_slice %302 {offsets = [0, 256], sizes = [8, 128], strides = [1, 1]} : vector<8x384xf32> to vector<8x128xf32>
    %323 = vector.extract_strided_slice %305 {offsets = [0, 256], sizes = [8, 128], strides = [1, 1]} : vector<8x384xf32> to vector<8x128xf32>
    %324 = arith.mulf %313, %323 : vector<8x128xf32>
    %325 = arith.addf %322, %324 : vector<8x128xf32>
    %326 = math.tanh %325 : vector<8x128xf32>
    %cst_93 = arith.constant 1.000000e+00 : f32
    %327 = vector.broadcast %cst_93 : f32 to vector<8x128xf32>
    %328 = arith.subf %327, %321 : vector<8x128xf32>
    %329 = arith.mulf %328, %326 : vector<8x128xf32>
    %330 = arith.mulf %321, %291 : vector<8x128xf32>
    %331 = arith.addf %329, %330 : vector<8x128xf32>
    %332 = arith.index_cast %300 : i32 to index
    %c0_94 = arith.constant 0 : index
    %333 = vector.load %arg6[%332, %c0_94] : memref<64x128xf32, #tpu.memory_space<vmem>>, vector<8x128xf32>
    tpu.vector_store %arg6[%332, %c0_94], %331 {strides = array<i32>} : memref<64x128xf32, #tpu.memory_space<vmem>>, vector<8x128xf32>,
    %c8_i32_95 = arith.constant 8 : i32
    return
  }
  func.func @transform_0(%arg0: i32) -> (i32, i32) {
    %c0_i32 = arith.constant 0 : i32
    %c0_i32_0 = arith.constant 0 : i32
    %c0_i32_1 = arith.constant 0 : i32
    return %c0_i32, %c0_i32_0 : i32, i32
  }
  func.func @transform_1(%arg0: i32) -> (i32, i32, i32) {
    %c0_i32 = arith.constant 0 : i32
    %c0_i32_0 = arith.constant 0 : i32
    %c0_i32_1 = arith.constant 0 : i32
    return %arg0, %c0_i32, %c0_i32_0 : i32, i32, i32
  }
  func.func @transform_2(%arg0: i32) -> (i32, i32, i32) {
    %c0_i32 = arith.constant 0 : i32
    %c0_i32_0 = arith.constant 0 : i32
    %c0_i32_1 = arith.constant 0 : i32
    return %arg0, %c0_i32, %c0_i32_0 : i32, i32, i32
  }
  func.func @transform_3(%arg0: i32) -> (i32, i32, i32) {
    %c0_i32 = arith.constant 0 : i32
    %c0_i32_0 = arith.constant 0 : i32
    %c0_i32_1 = arith.constant 0 : i32
    return %arg0, %c0_i32, %c0_i32_0 : i32, i32, i32
  }
  func.func @transform_4(%arg0: i32) -> (i32, i32, i32) {
    %c0_i32 = arith.constant 0 : i32
    %c0_i32_0 = arith.constant 0 : i32
    %c0_i32_1 = arith.constant 0 : i32
    return %arg0, %c0_i32, %c0_i32_0 : i32, i32, i32
  }
  func.func @transform_5(%arg0: i32) -> (i32, i32) {
    %c0_i32 = arith.constant 0 : i32
    %c0_i32_0 = arith.constant 0 : i32
    return %c0_i32, %arg0 : i32, i32
  }
}

</mosaic_0001>

<bundles_post_ra>
// kernel: tpu_custom_call.1
= control target key start
LH: loop header
LB: loop body
LE: loop exit
PB: predicated region body
PF: predicated region fallthrough
CT: control target
= control target key end

     0   :  { %s3760_s0 = inlined_call_operand.vmem [shape: f32[64,300], index: 0, kind: input, shape index: {}]   ;;  %s3761_s1 = inlined_call_operand.vmem [shape: f32[2,300,384], index: 1, kind: input, shape index: {}]   ;;  %s3762_s2 = inlined_call_operand.vmem [shape: f32[2,128,384], index: 2, kind: input, shape index: {}]   ;;  %s3763_s3 = inlined_call_operand.vmem [shape: f32[2,1,384], index: 3, kind: input, shape index: {}]   ;;  %s3764_s4 = inlined_call_operand.vmem [shape: f32[2,1,384], index: 4, kind: input, shape index: {}]   ;;  %s3765_s5 = inlined_call_operand.hbm [shape: f32[64,256], index: 5, kind: output, shape index: {}]  }
   0x1   :  { %3784 = sst [smem:[#allocation14_spill]] %s3760_s0 }
   0x2   :  { %10 = vsyncpa [#allocation4], 0 }
   0x3   :  { %12 = vsyncpa [#allocation4 + $0x1], 0  ;;  %s2384_s18 = smov 0   ;;  %s2386_s19 = smov 0  }
   0x4   :  { %s2388_s20 = smov 0   ;;  %s2390_s21 = smov 0  }
   0x5 LB: > { %s2405_s22 = sadd.s32 4294967295, %s2348_s21   ;;  %s2032_s23 = sadd.s32 4294967294, %s2348_s21   ;;  %s2348_s21 = sphi %s2390_s21, %s3819_s21   ;;  %s2344_s20 = sphi %s2388_s20, %s3818_s20   ;;  %s2340_s19 = sphi %s2386_s19, %s3817_s19   ;;  %s2336_s18 = sphi %s2384_s18, %s3816_s18  }
   0x6   : > { %s2409_s24 = sadd.s32 1, %s2348_s21   ;;  %s150_s25 = sadd.s32 1, %s2344_s20 }
   0x7   : > { %s147_s26 = ssub.s32 %s2348_s21, %s2409_s24  ;;  %p160_p0 = scmp.ne.s32.totalorder %s2344_s20, %s2340_s19 }
   0x8   : > { %p148_p1 = scmp.eq.s32.totalorder %s147_s26, 0  ;;  %p161_p2 = scmp.eq.s32.totalorder %s2405_s22, 1 }
   0x9   : > { %p166_p3 = scmp.ne.s32.totalorder %s2340_s19, %s2336_s18  ;;  %p167_p4 = scmp.eq.s32.totalorder %s2032_s23, 1 }
   0xa   : > { %s2420_s27 = scalar_select %p148_p1, %s2344_s20, %s150_s25  }
   0xb   : > { %p2422_p5 = por %p161_p2, %p160_p0  ;;  %p2426_p6 = por %p167_p4, %p166_p3 }
   0xc   : > { %p2035_p7 = scmp.ge.s32.totalorder %s2348_s21, 1  ;;  %p218_p8 = scmp.lt.s32.totalorder %s2348_s21, 3 }
   0xe   : > { %p219_p9 = pnand %p2035_p7, %p218_p8 }
  0x10   : > { %222 = sbr.rel (%p219_p9) target bundleno = 1651 (0x673), region = 40 }
  0x15   : > { %p259_p10 = scmp.lt.s32.totalorder %s2405_s22, 1  ;;  %vm448_vm0 = vcmask 1043456   ;;  %s3787_s0 = sld [smem:[#allocation14_spill]]  ;;  %vm423_vm1 = vcmask 359424  }
  0x16   : > { %s2069_s8 = sshll.u32 %s2405_s22, 1  ;;  %s3058_s11 = smul.u32 7, %s2405_s22 }
  0x17   : > { %s2434_s30 = scalar_select %p259_p10, %s2405_s22, 1 }
  0x18   : > { %s3049_s10 = ssub.s32 1, %s2069_s8 }
  0x19   : > { %s2112_s6 = smul.u32 912, %s2434_s30  ;;  %s2074_s12 = sshll.u32 %s3049_s10, 1 }
  0x1a   : > { %s2113_s16 = smul.u32 384, %s2434_s30  ;;  %s3069_s14 = sadd.s32 %s2074_s12, %s3058_s11 }
  0x1b   : > { %s2440_s9 = scalar_lea.vmem %s3761_s1, %s2112_s6  ;;  %v2463_v17 = vld [vmem:[%s3787_s0 + $0x10] sm:$0xff]  ;;  %v2483_v31 = vld [vmem:[%s3787_s0 + $0x28] sm:$0xff]  ;;  %v2505_v47 = vld [vmem:[%s3787_s0 + $0x40] sm:$0xff]  ;;  %s1267_s13 = smul.u32 3, %s3049_s10 }
  0x1c   : > { %v346_v0 = vld [vmem:[%s2440_s9 + $0x168] sm:$0xff]  ;;  %v412_v1 = vld [vmem:[%s2440_s9 + $0x378] sm:$0xf]  ;;  %v343_v2 = vld [vmem:[%s2440_s9 + $0x150] sm:$0xff]  ;;  %s2732_s25 = scalar_lea.vmem %s3762_s2, %s2113_s16  ;;  %s2083_s16 = sshll.u32 %s3049_s10, 2 }
  0x1d   : > { %458 = vmatpush.msra.mxu0 %v346_v0  ;;  %2039 = vmatpush.msk.msra.mxu2 %vm448_vm0, %v412_v1  ;;  %v394_v3 = vld [vmem:[%s2440_s9 + $0x2e8] sm:$0xff]  ;;  %v409_v4 = vld [vmem:[%s2440_s9 + $0x360] sm:$0xff]  ;;  %v340_v5 = vld [vmem:[%s2440_s9 + $0x138] sm:$0xff]  ;;  %s3078_s15 = sadd.s32 %s1267_s13, %s3058_s11  ;;  %s3096_s17 = sadd.s32 %s2083_s16, %s3058_s11 }
  0x1e   : > { %499 = vmatpush.msra.mxu1 %v394_v3  ;;  %v391_v6 = vld [vmem:[%s2440_s9 + $0x2d0] sm:$0xff]  ;;  %v406_v7 = vld [vmem:[%s2440_s9 + $0x348] sm:$0xff]  ;;  %v388_v8 = vld [vmem:[%s2440_s9 + $0x2b8] sm:$0xff]  ;;  %s1507_s23 = smul.u32 5, %s3049_s10 }
  0x1f   : > { %459 = vmatpush.msra.mxu0 %v343_v2  ;;  %551 = vmatpush.msra.mxu2 %v409_v4  ;;  %v337_v9 = vld [vmem:[%s2440_s9 + $0x120] sm:$0xff]  ;;  %v403_v10 = vld [vmem:[%s2440_s9 + $0x330] sm:$0xff]  ;;  %v334_v12 = vld [vmem:[%s2440_s9 + $0x108] sm:$0xff]  ;;  %s1627_s6 = smul.u32 6, %s3049_s10 }
  0x20   : > { %500 = vmatpush.msra.mxu1 %v391_v6  ;;  %v385_v11 = vld [vmem:[%s2440_s9 + $0x2a0] sm:$0xff]  ;;  %v400_v13 = vld [vmem:[%s2440_s9 + $0x318] sm:$0xff]  ;;  %v382_v14 = vld [vmem:[%s2440_s9 + $0x288] sm:$0xff]  ;;  %s3108_s26 = sadd.s32 %s1507_s23, %s3058_s11  ;;  %s1747_s8 = smul.u32 7, %s3049_s10 }
  0x21   : > { %460 = vmatpush.msra.mxu0 %v340_v5  ;;  %552 = vmatpush.msra.mxu2 %v406_v7  ;;  %v331_v15 = vld [vmem:[%s2440_s9 + $0xf0] sm:$0xff]  ;;  %v397_v16 = vld [vmem:[%s2440_s9 + $0x300] sm:$0xff]  ;;  %v328_v20 = vld [vmem:[%s2440_s9 + $0xd8] sm:$0xff]  ;;  %s900_s13 = smul.u32 56, %s2405_s22 }
  0x22   : > { %501 = vmatpush.msra.mxu1 %v388_v8  ;;  %v379_v18 = vld [vmem:[%s2440_s9 + $0x270] sm:$0xff]  ;;  %v376_v21 = vld [vmem:[%s2440_s9 + $0x258] sm:$0xff]  ;;  %v325_v22 = vld [vmem:[%s2440_s9 + $0xc0] sm:$0xff]  ;;  %s3131_s12 = sadd.s32 %s1747_s8, %s3058_s11 }
  0x23   : > { %461 = vmatpush.msra.mxu0 %v337_v9  ;;  %553 = vmatpush.msra.mxu2 %v403_v10  ;;  %v395_v19 = vld [vmem:[%s2440_s9 + $0x2f0] sm:$0xff]  ;;  %v392_v23 = vld [vmem:[%s2440_s9 + $0x2d8] sm:$0xff]  ;;  %v373_v24 = vld [vmem:[%s2440_s9 + $0x240] sm:$0xff]  ;;  %s901_s8 = sshra.s32 %s900_s13, 3 }
  0x24   : > { %502 = vmatpush.msra.mxu1 %v385_v11  ;;  %v322_v25 = vld [vmem:[%s2440_s9 + $0xa8] sm:$0xff]  ;;  %v389_v26 = vld [vmem:[%s2440_s9 + $0x2c0] sm:$0xff]  ;;  %v319_v28 = vld [vmem:[%s2440_s9 + $0x90] sm:$0xff] }
  0x25   : > { %462 = vmatpush.msra.mxu0 %v334_v12  ;;  %554 = vmatpush.msra.mxu2 %v400_v13  ;;  %v370_v27 = vld [vmem:[%s2440_s9 + $0x228] sm:$0xff]  ;;  %v347_v30 = vld [vmem:[%s2440_s9 + $0x170] sm:$0xff]  ;;  %v316_v33 = vld [vmem:[%s2440_s9 + $0x78] sm:$0xff] }
  0x26   : > { %503 = vmatpush.msra.mxu1 %v382_v14  ;;  %v386_v29 = vld [vmem:[%s2440_s9 + $0x2a8] sm:$0xff]  ;;  %v367_v32 = vld [vmem:[%s2440_s9 + $0x210] sm:$0xff]  ;;  %581 = vmatpush.msra.mxu3 %v347_v30  ;;  %v364_v35 = vld [vmem:[%s2440_s9 + $0x1f8] sm:$0xff] }
  0x27   : > { %463 = vmatpush.msra.mxu0 %v331_v15  ;;  %555 = vmatpush.msra.mxu2 %v397_v16  ;;  %v383_v34 = vld [vmem:[%s2440_s9 + $0x290] sm:$0xff]  ;;  %v344_v36 = vld [vmem:[%s2440_s9 + $0x158] sm:$0xff]  ;;  %v313_v37 = vld [vmem:[%s2440_s9 + $0x60] sm:$0xff] }
  0x28   : > { %2040 = vmatmul.msk.f32.vlgmr.msra.gmra.mxu2 %vm423_vm1, %v2463_v17  ;;  %504 = vmatpush.msra.mxu1 %v379_v18  ;;  %v380_v38 = vld [vmem:[%s2440_s9 + $0x278] sm:$0xff]  ;;  %v361_v39 = vld [vmem:[%s2440_s9 + $0x1e0] sm:$0xff]  ;;  %v310_v41 = vld [vmem:[%s2440_s9 + $0x48] sm:$0xff] }
  0x29   : > { %622 = vmatpush.msrb.mxu2 %v395_v19  ;;  %464 = vmatpush.msra.mxu0 %v328_v20  ;;  %v341_v40 = vld [vmem:[%s2440_s9 + $0x140] sm:$0xff]  ;;  %v358_v43 = vld [vmem:[%s2440_s9 + $0x1c8] sm:$0xff]  ;;  %v307_v45 = vld [vmem:[%s2440_s9 + $0x30] sm:$0xff] }
  0x2a   : > { %505 = vmatpush.msra.mxu1 %v376_v21  ;;  %v377_v42 = vld [vmem:[%s2440_s9 + $0x260] sm:$0xff]  ;;  %582 = vmatpush.msra.mxu3 %v344_v36  ;;  %v338_v44 = vld [vmem:[%s2440_s9 + $0x128] sm:$0xff]  ;;  %v355_v48 = vld [vmem:[%s2440_s9 + $0x1b0] sm:$0xff] }
  0x2b   : > { %465 = vmatpush.msra.mxu0 %v325_v22  ;;  %623 = vmatpush.msrb.mxu2 %v392_v23  ;;  %v374_v46 = vld [vmem:[%s2440_s9 + $0x248] sm:$0xff]  ;;  %v304_v49 = vld [vmem:[%s2440_s9 + $0x18] sm:$0xff]  ;;  %v371_v50 = vld [vmem:[%s2440_s9 + $0x230] sm:$0xff] }
  0x2c   : > { %506 = vmatpush.msra.mxu1 %v373_v24  ;;  %583 = vmatpush.msra.mxu3 %v341_v40  ;;  %v352_v51 = vld [vmem:[%s2440_s9 + $0x198] sm:$0xff]  ;;  %v335_v52 = vld [vmem:[%s2440_s9 + $0x110] sm:$0xff]  ;;  %v301_v53 = vld [vmem:[%s2440_s9] sm:$0xff] }
  0x2d   : > { %466 = vmatpush.msra.mxu0 %v322_v25  ;;  %624 = vmatpush.msrb.mxu2 %v389_v26  ;;  %v368_v54 = vld [vmem:[%s2440_s9 + $0x218] sm:$0xff]  ;;  %v2519_v55 = vld [vmem:[%s3787_s0] sm:$0xff]  ;;  %v2525_v57 = vld [vmem:[%s3787_s0 + $0x8] sm:$0xff] }
  0x2e   : > { %507 = vmatpush.msra.mxu1 %v370_v27  ;;  %584 = vmatpush.msra.mxu3 %v338_v44  ;;  %v349_v56 = vld [vmem:[%s2440_s9 + $0x180] sm:$0xff]  ;;  %v332_v59 = vld [vmem:[%s2440_s9 + $0xf8] sm:$0xff]  ;;  %v362_v60 = vld [vmem:[%s2440_s9 + $0x1e8] sm:$0xff] }
  0x2f   : > { %467 = vmatpush.msra.mxu0 %v319_v28  ;;  %625 = vmatpush.msrb.mxu2 %v386_v29  ;;  %v365_v58 = vld [vmem:[%s2440_s9 + $0x200] sm:$0xff]  ;;  %v2535_v61 = vld [vmem:[%s3787_s0 + $0x58] sm:$0xff]  ;;  %v359_v63 = vld [vmem:[%s2440_s9 + $0x1d0] sm:$0xff] }
  0x30   : > { %2041 = vmatmul.msk.f32.gmra.mxu2 %vm423_vm1, %v2483_v31  ;;  %508 = vmatpush.msra.mxu1 %v367_v32  ;;  %v329_v62 = vld [vmem:[%s2440_s9 + $0xe0] sm:$0xff]  ;;  %v326_v0 = vld [vmem:[%s2440_s9 + $0xc8] sm:$0xff]  ;;  %v356_v1 = vld [vmem:[%s2440_s9 + $0x1b8] sm:$0xff] }
  0x31   : > { %468 = vmatpush.msra.mxu0 %v316_v33  ;;  %626 = vmatpush.msrb.mxu2 %v383_v34  ;;  %v2546_v2 = vld [vmem:[%s3787_s0 + $0x18] sm:$0xff]  ;;  %v323_v3 = vld [vmem:[%s2440_s9 + $0xb0] sm:$0xff]  ;;  %v2552_v4 = vld [vmem:[%s3787_s0 + $0x20] sm:$0xff] }
  0x32   : > { %509 = vmatpush.msra.mxu1 %v364_v35  ;;  %585 = vmatpush.msra.mxu3 %v335_v52  ;;  %v353_v5 = vld [vmem:[%s2440_s9 + $0x1a0] sm:$0xff]  ;;  %v320_v6 = vld [vmem:[%s2440_s9 + $0x98] sm:$0xff]  ;;  %v350_v7 = vld [vmem:[%s2440_s9 + $0x188] sm:$0xff] }
  0x33   : > { %469 = vmatpush.msra.mxu0 %v313_v37  ;;  %627 = vmatpush.msrb.mxu2 %v380_v38  ;;  %v2562_v8 = vld [vmem:[%s3787_s0 + $0x70] sm:$0xff]  ;;  %v317_v9 = vld [vmem:[%s2440_s9 + $0x80] sm:$0xff]  ;;  %v314_v10 = vld [vmem:[%s2440_s9 + $0x68] sm:$0xff] }
  0x34   : > { %510 = vmatpush.msra.mxu1 %v361_v39  ;;  %586 = vmatpush.msra.mxu3 %v332_v59  ;;  %v414_v11 = vld [vmem:[%s2440_s9 + $0x388] sm:$0xf]  ;;  %v348_v12 = vld [vmem:[%s2440_s9 + $0x178] sm:$0xff]  ;;  %v2573_v13 = vld [vmem:[%s3787_s0 + $0x30] sm:$0xff] }
  0x35   : > { %470 = vmatpush.msra.mxu0 %v310_v41  ;;  %628 = vmatpush.msrb.mxu2 %v377_v42  ;;  %v311_v14 = vld [vmem:[%s2440_s9 + $0x50] sm:$0xff]  ;;  %v2580_v15 = vld [vmem:[%s3787_s0 + $0x38] sm:$0xff]  ;;  %v2587_v18 = vld [vmem:[%s3787_s0 + $0x88] sm:$0xff] }
  0x36   : > { %511 = vmatpush.msra.mxu1 %v358_v43  ;;  %587 = vmatpush.msra.mxu3 %v329_v62  ;;  %v308_v16 = vld [vmem:[%s2440_s9 + $0x38] sm:$0xff]  ;;  %v305_v19 = vld [vmem:[%s2440_s9 + $0x20] sm:$0xff]  ;;  %v302_v22 = vld [vmem:[%s2440_s9 + $0x8] sm:$0xff] }
  0x37   : > { %471 = vmatpush.msra.mxu0 %v307_v45  ;;  %629 = vmatpush.msrb.mxu2 %v374_v46  ;;  %v413_v20 = vld [vmem:[%s2440_s9 + $0x380] sm:$0xf]  ;;  %v342_v23 = vld [vmem:[%s2440_s9 + $0x148] sm:$0xff]  ;;  %v396_v26 = vld [vmem:[%s2440_s9 + $0x2f8] sm:$0xff] }
  0x38   : > { %2042 = vmatmul.msk.f32.gmra.mxu2 %vm423_vm1, %v2505_v47  ;;  %512 = vmatpush.msra.mxu1 %v355_v48  ;;  %v345_v21 = vld [vmem:[%s2440_s9 + $0x160] sm:$0xff]  ;;  %v410_v24 = vld [vmem:[%s2440_s9 + $0x368] sm:$0xff]  ;;  %v411_v27 = vld [vmem:[%s2440_s9 + $0x370] sm:$0xff] }
  0x39   : > { %472 = vmatpush.msra.mxu0 %v304_v49  ;;  %630 = vmatpush.msrb.mxu2 %v371_v50  ;;  %v2602_v25 = vld [vmem:[%s3787_s0 + $0x48] sm:$0xff]  ;;  %v2609_v28 = vld [vmem:[%s3787_s0 + $0x50] sm:$0xff]  ;;  %v393_v29 = vld [vmem:[%s2440_s9 + $0x2e0] sm:$0xff] }
  0x3a   : > { %513 = vmatpush.msra.mxu1 %v352_v51  ;;  %588 = vmatpush.msra.mxu3 %v326_v0  ;;  %v2617_v30 = vld [vmem:[%s3787_s0 + $0xa0] sm:$0xff]  ;;  %v407_v32 = vld [vmem:[%s2440_s9 + $0x350] sm:$0xff]  ;;  %v390_v33 = vld [vmem:[%s2440_s9 + $0x2c8] sm:$0xff] }
  0x3b   : > { %473 = vmatpush.msra.mxu0 %v301_v53  ;;  %631 = vmatpush.msrb.mxu2 %v368_v54  ;;  %v339_v34 = vld [vmem:[%s2440_s9 + $0x130] sm:$0xff]  ;;  %v404_v35 = vld [vmem:[%s2440_s9 + $0x338] sm:$0xff]  ;;  %v401_v37 = vld [vmem:[%s2440_s9 + $0x320] sm:$0xff] }
  0x3c   : > { %474 = vmatmul.f32.vlgmr.msra.gmra.mxu0 %v2519_v55  ;;  %514 = vmatpush.msra.mxu1 %v349_v56  ;;  %v387_v36 = vld [vmem:[%s2440_s9 + $0x2b0] sm:$0xff]  ;;  %v336_v38 = vld [vmem:[%s2440_s9 + $0x118] sm:$0xff]  ;;  %v2632_v39 = vld [vmem:[%s3787_s0 + $0x60] sm:$0xff] }
  0x3d   : > { %515 = vmatmul.f32.vlgmr.msra.gmra.mxu1 %v2525_v57  ;;  %632 = vmatpush.msrb.mxu2 %v365_v58  ;;  %v384_v40 = vld [vmem:[%s2440_s9 + $0x298] sm:$0xff]  ;;  %v398_v41 = vld [vmem:[%s2440_s9 + $0x308] sm:$0xff]  ;;  %v381_v43 = vld [vmem:[%s2440_s9 + $0x280] sm:$0xff] }
  0x3e   : > { %589 = vmatpush.msra.mxu3 %v323_v3  ;;  %704 = vmatpush.msrb.mxu1 %v348_v12  ;;  %v2639_v42 = vld [vmem:[%s3787_s0 + $0x68] sm:$0xff]  ;;  %v333_v44 = vld [vmem:[%s2440_s9 + $0x100] sm:$0xff]  ;;  %v408_v45 = vld [vmem:[%s2440_s9 + $0x358] sm:$0xff] }
  0x3f   : > { %633 = vmatpush.msrb.mxu2 %v362_v60  ;;  %2048 = vmatpush.msk.msrb.mxu0 %vm448_vm0, %v413_v20  ;;  %v2650_v46 = vld [vmem:[%s3787_s0 + $0xb8] sm:$0xff]  ;;  %v378_v48 = vld [vmem:[%s2440_s9 + $0x268] sm:$0xff]  ;;  %v375_v50 = vld [vmem:[%s2440_s9 + $0x250] sm:$0xff] }
  0x40   : > { %2043 = vmatmul.msk.f32.gmra.mxu2 %vm423_vm1, %v2535_v61  ;;  %590 = vmatpush.msra.mxu3 %v320_v6  ;;  %v330_v49 = vld [vmem:[%s2440_s9 + $0xe8] sm:$0xff]  ;;  %v2660_v51 = vld [vmem:[%s3787_s0 + $0x78] sm:$0xff]  ;;  %v2665_v52 = vld [vmem:[%s3787_s0 + $0x80] sm:$0xff] }
  0x41   : > { %634 = vmatpush.msrb.mxu2 %v359_v63  ;;  %705 = vmatpush.msrb.mxu1 %v345_v21  ;;  %v327_v53 = vld [vmem:[%s2440_s9 + $0xd0] sm:$0xff]  ;;  %v372_v54 = vld [vmem:[%s2440_s9 + $0x238] sm:$0xff]  ;;  %v405_v56 = vld [vmem:[%s2440_s9 + $0x340] sm:$0xff] }
  0x42   : > { %591 = vmatpush.msra.mxu3 %v317_v9  ;;  %674 = vmatpush.msrb.mxu0 %v410_v24  ;;  %v324_v58 = vld [vmem:[%s2440_s9 + $0xb8] sm:$0xff]  ;;  %v369_v59 = vld [vmem:[%s2440_s9 + $0x220] sm:$0xff]  ;;  %v2679_v60 = vld [vmem:[%s3787_s0 + $0x90] sm:$0xff] }
  0x43   : > { %635 = vmatpush.msrb.mxu2 %v356_v1  ;;  %706 = vmatpush.msrb.mxu1 %v342_v23  ;;  %v2684_v62 = vld [vmem:[%s3787_s0 + $0x98] sm:$0xff]  ;;  %v321_v63 = vld [vmem:[%s2440_s9 + $0xa0] sm:$0xff]  ;;  %v366_v0 = vld [vmem:[%s2440_s9 + $0x208] sm:$0xff] }
  0x44   : > { %477 = vmatmul.f32.gmra.mxu0 %v2546_v2  ;;  %592 = vmatpush.msra.mxu3 %v314_v10  ;;  %v318_v1 = vld [vmem:[%s2440_s9 + $0x88] sm:$0xff]  ;;  %v363_v3 = vld [vmem:[%s2440_s9 + $0x1f0] sm:$0xff]  ;;  %v360_v10 = vld [vmem:[%s2440_s9 + $0x1d8] sm:$0xff] }
  0x45   : > { %518 = vmatmul.f32.gmra.mxu1 %v2552_v4  ;;  %636 = vmatpush.msrb.mxu2 %v353_v5  ;;  %v402_v5 = vld [vmem:[%s2440_s9 + $0x328] sm:$0xff]  ;;  %v315_v9 = vld [vmem:[%s2440_s9 + $0x70] sm:$0xff]  ;;  %v357_v12 = vld [vmem:[%s2440_s9 + $0x1c0] sm:$0xff] }
  0x46   : > { %593 = vmatpush.msra.mxu3 %v311_v14  ;;  %675 = vmatpush.msrb.mxu0 %v407_v32  ;;  %v2698_v6 = vld [vmem:[%s3787_s0 + $0xa8] sm:$0xff]  ;;  %v309_v14 = vld [vmem:[%s2440_s9 + $0x40] sm:$0xff]  ;;  %v351_v21 = vld [vmem:[%s2440_s9 + $0x190] sm:$0xff] }
  0x47   : > { %637 = vmatpush.msrb.mxu2 %v350_v7  ;;  %707 = vmatpush.msrb.mxu1 %v339_v34  ;;  %v2703_v7 = vld [vmem:[%s3787_s0 + $0xb0] sm:$0xff]  ;;  %v306_v20 = vld [vmem:[%s2440_s9 + $0x28] sm:$0xff]  ;;  %v2753_v24 = vld [vmem:[%s2732_s25 + $0x138] sm:$0xff]  ;;  %s2104_s0 = smul.u32 24, %s901_s8 }
  0x48   : > { %2044 = vmatmul.msk.f32.gmra.mxu2 %vm423_vm1, %v2562_v8  ;;  %594 = vmatpush.msra.mxu3 %v308_v16  ;;  %v354_v16 = vld [vmem:[%s2440_s9 + $0x1a8] sm:$0xff]  ;;  %v2809_v32 = vld [vmem:[%s2732_s25 + $0x110] sm:$0xff] }
  0x49   : > { %2057 = vmatpush.msk.msra.mxu2 %vm448_vm0, %v414_v11  ;;  %676 = vmatpush.msrb.mxu0 %v404_v35  ;;  %v312_v11 = vld [vmem:[%s2440_s9 + $0x58] sm:$0xff]  ;;  %v2738_v23 = vld [vmem:[%s2732_s25 + $0x168] sm:$0xff] }
  0x4a   : > { %595 = vmatpush.msra.mxu3 %v305_v19  ;;  %708 = vmatpush.msrb.mxu1 %v336_v38  ;;  %v399_v19 = vld [vmem:[%s2440_s9 + $0x310] sm:$0xff]  ;;  %v2839_v35 = vld [vmem:[%s2732_s25 + $0xa8] sm:$0xff] }
  0x4b   : > { %797 = vmatpush.msra.mxu2 %v411_v27  ;;  %677 = vmatpush.msrb.mxu0 %v401_v37  ;;  %v2780_v27 = vld [vmem:[%s2732_s25 + $0x140] sm:$0xff]  ;;  %v2854_v38 = vld [vmem:[%s2732_s25 + $0x130] sm:$0xff] }
  0x4c   : > { %480 = vmatmul.f32.gmra.mxu0 %v2573_v13  ;;  %596 = vmatpush.msra.mxu3 %v302_v22  ;;  %v303_v22 = vld [vmem:[%s2440_s9 + $0x10] sm:$0xff]  ;;  %s2114_s9 = smul.u32 3, %s2434_s30  ;;  %v2847_v37 = vld [vmem:[%s2732_s25 + $0xe0] sm:$0xff]  ;;  %s3210_s30 = scalar_lea.vmem [#allocation2], %s2104_s0 }
  0x4d   : > { %521 = vmatmul.f32.gmra.mxu1 %v2580_v15  ;;  %597 = vmatmul.f32.vlgmr.msra.gmra.mxu3 %v2519_v55  ;;  %s256_s0 = sand.u32 1, %s2340_s19  }
  0x4e   : > { %745 = vmatpush.msrb.mxu3 %v396_v26  ;;  %678 = vmatpush.msrb.mxu0 %v398_v41  ;;  %v2756_v26 = vld [vmem:[%s2732_s25 + $0x170] sm:$0xff]  ;;  %s272_s7 = scalar_lea.vmem %s3763_s3, %s2114_s9 }
  0x4f   : > { %798 = vmatpush.msra.mxu2 %v408_v45  ;;  %709 = vmatpush.msrb.mxu1 %v333_v44  ;;  %v2879_v44 = vld [vmem:[%s2732_s25 + $0x118] sm:$0xff] }
  0x50   : > { %2045 = vmatmul.msk.f32.gmra.mxu2 %vm423_vm1, %v2587_v18  ;;  %746 = vmatpush.msrb.mxu3 %v393_v29  ;;  %v2801_v29 = vld [vmem:[%s2732_s25 + $0xd8] sm:$0xff] }
  0x51   : > { %710 = vmatpush.msrb.mxu1 %v330_v49  ;;  %799 = vmatpush.msra.mxu2 %v405_v56 }
  0x52   : > { %747 = vmatpush.msrb.mxu3 %v390_v33  ;;  %916 = vmatpush.msra.mxu0 %v2738_v23  ;;  %v2813_v33 = vld [vmem:[%s2732_s25 + $0xc0] sm:$0xff] }
  0x53   : > { %711 = vmatpush.msrb.mxu1 %v327_v53  ;;  %800 = vmatpush.msra.mxu2 %v402_v5 }
  0x54   : > { %483 = vmatmul.f32.gmra.mxu0 %v2602_v25  ;;  %748 = vmatpush.msrb.mxu3 %v387_v36  ;;  %v2842_v36 = vld [vmem:[%s2732_s25 + $0x148] sm:$0xff] }
  0x55   : > { %524 = vmatmul.f32.gmra.mxu1 %v2609_v28  ;;  %600 = vmatmul.f32.gmra.mxu3 %v2546_v2 }
  0x56   : > { %749 = vmatpush.msrb.mxu3 %v384_v40  ;;  %712 = vmatpush.msrb.mxu1 %v324_v58  ;;  %v2857_v40 = vld [vmem:[%s272_s7] sm:$0x7]  ;;  %v2907_v58 = vld [vmem:[%s2732_s25 + $0x48] sm:$0xff]  ;;  %s3122_s7 = sadd.s32 %s1627_s6, %s3058_s11  ;;  %s276_s6 = scalar_lea.vmem %s3764_s4, %s2114_s9 }
  0x57   : > { %801 = vmatpush.msra.mxu2 %v399_v19  ;;  %v2867_v41 = vperm.slane %v2857_v40, 0  ;;  %s2036_s9 = sshll.u32 %s256_s0, 6 }
  0x58   : > { %2046 = vmatmul.msk.f32.gmra.mxu2 %vm423_vm1, %v2617_v30  ;;  %750 = vmatpush.msrb.mxu3 %v381_v43  ;;  %v2876_v43 = vld [vmem:[%s2732_s25 + $0x78] sm:$0xff]  ;;  %s3221_s16 = scalar_lea.vmem [#allocation3], %s2036_s9 }
  0x59   : > { %713 = vmatpush.msrb.mxu1 %v321_v63  ;;  %v2915_v63 = vld [vmem:[%s2732_s25 + $0x80] sm:$0xff]  ;;  %s1023_s23 = scalar_lea.vmem %s3221_s16, %s900_s13 [#allocation3]  ;;  %s1028_s13 = sadd.s32 %s3049_s10, %s3058_s11 }
  0x5a   : > { %751 = vmatpush.msrb.mxu3 %v378_v48  ;;  %v2884_v48 = vld [vmem:[%s2732_s25 + $0xb0] sm:$0xff]  ;;  %s2075_s11 = sshll.u32 %s3069_s14, 3  ;;  %s2079_s14 = sshll.u32 %s3078_s15, 3 }
  0x5b   : > { %714 = vmatpush.msrb.mxu1 %v318_v1  ;;  %s2084_s15 = sshll.u32 %s3096_s17, 3  ;;  %s2088_s17 = sshll.u32 %s3108_s26, 3 }
  0x5c   : > { %486 = vmatmul.f32.gmra.mxu0 %v2632_v39  ;;  %752 = vmatpush.msrb.mxu3 %v375_v50 }
  0x5d   : > { %527 = vmatmul.f32.gmra.mxu1 %v2639_v42  ;;  %603 = vmatmul.f32.gmra.mxu3 %v2573_v13 }
  0x5e   : > { %753 = vmatpush.msrb.mxu3 %v372_v54  ;;  %715 = vmatpush.msrb.mxu1 %v315_v9  ;;  %v2931_v9 = vld [vmem:[%s2732_s25 + $0x68] sm:$0xff] }
  0x60   : > { %2047 = vmatmul.msk.f32.gmra.mxu2 %vm423_vm1, %v2650_v46  ;;  %754 = vmatpush.msrb.mxu3 %v369_v59  ;;  %v2910_v59 = vld [vmem:[%s2732_s25 + $0xe8] sm:$0xff] }
  0x61   : > { %716 = vmatpush.msrb.mxu1 %v312_v11  ;;  %v2936_v11 = vld [vmem:[%s2732_s25 + $0x50] sm:$0xff] }
  0x62   : > { %755 = vmatpush.msrb.mxu3 %v366_v0 }
  0x63   : > { %717 = vmatpush.msrb.mxu1 %v309_v14  ;;  %v2948_v14 = vld [vmem:[%s2732_s25 + $0x38] sm:$0xff] }
  0x64   : > { %489 = vmatmul.f32.gmra.mxu0 %v2660_v51  ;;  %756 = vmatpush.msrb.mxu3 %v363_v3  ;;  %v2923_v3 = vld [vmem:[%s2732_s25 + $0xd0] sm:$0xff] }
  0x65   : > { %530 = vmatmul.f32.gmra.mxu1 %v2665_v52  ;;  %606 = vmatmul.f32.gmra.mxu3 %v2602_v25 }
  0x66   : > { %757 = vmatpush.msrb.mxu3 %v360_v10  ;;  %718 = vmatpush.msrb.mxu1 %v306_v20 }
  0x68   : > { %638 = vmatmul.f32.vlgmr.msrb.gmra.mxu2 %v2525_v57  ;;  %758 = vmatpush.msrb.mxu3 %v357_v12  ;;  %v2945_v12 = vld [vmem:[%s2732_s25 + $0xb8] sm:$0xff] }
  0x69   : > { %719 = vmatpush.msrb.mxu1 %v303_v22  ;;  %1158 = vmatpush.msrb.mxu2 %v2738_v23  ;;  %v2961_v22 = vld [vmem:[%s2732_s25 + $0x20] sm:$0xff] }
  0x6a   : > { %759 = vmatpush.msrb.mxu3 %v354_v16  ;;  %3790 = vst [vmem:[#allocation8_spill] sm:$0xff] %v2961_v22 }
  0x6b   : > { %936 = vmatpush.msra.mxu1 %v2756_v26 }
  0x6c   : > { %492 = vmatmul.f32.gmra.mxu0 %v2679_v60  ;;  %760 = vmatpush.msrb.mxu3 %v351_v21  ;;  %v2955_v21 = vld [vmem:[%s2732_s25] sm:$0xff] }
  0x6d   : > { %533 = vmatmul.f32.gmra.mxu1 %v2684_v62  ;;  %609 = vmatmul.f32.gmra.mxu3 %v2632_v39  ;;  %3789 = vst [vmem:[#allocation7_spill] sm:$0xff] %v2955_v21 }
  0x70   : > { %641 = vmatmul.f32.gmra.mxu2 %v2552_v4 }
  0x74   : > { %495 = vmatmul.f32.gmra.mxu0 %v2698_v6 }
  0x75   : > { %536 = vmatmul.f32.gmra.mxu1 %v2703_v7  ;;  %612 = vmatmul.f32.gmra.mxu3 %v2660_v51 }
  0x78   : > { %644 = vmatmul.f32.gmra.mxu2 %v2580_v15 }
  0x7c   : > { %2049 = vmatmul.msk.f32.vlgmr.msrb.gmra.mxu0 %vm423_vm1, %v2463_v17 }
  0x7d   : > { %615 = vmatmul.f32.gmra.mxu3 %v2679_v60  ;;  %720 = vmatmul.f32.vlgmr.msrb.gmra.mxu1 %v2519_v55  ;;  %v2745_v55 = vld [vmem:[%s2732_s25 + $0x150] sm:$0xff] }
  0x7e   : > { %917 = vmatpush.msra.mxu0 %v2745_v55  ;;  %1159 = vmatpush.msrb.mxu2 %v2745_v55 }
  0x80   : > { %647 = vmatmul.f32.gmra.mxu2 %v2609_v28  ;;  %918 = vmatpush.msra.mxu0 %v2753_v24 }
  0x81   : > { %1160 = vmatpush.msrb.mxu2 %v2753_v24 }
  0x84   : > { %2050 = vmatmul.msk.f32.gmra.mxu0 %vm423_vm1, %v2483_v31 }
  0x85   : > { %618 = vmatmul.f32.gmra.mxu3 %v2698_v6  ;;  %723 = vmatmul.f32.gmra.mxu1 %v2546_v2  ;;  %v2774_v2 = vld [vmem:[%s2732_s25 + $0x158] sm:$0xff] }
  0x86   : > { %937 = vmatpush.msra.mxu1 %v2774_v2 }
  0x88   : > { %650 = vmatmul.f32.gmra.mxu2 %v2639_v42  ;;  %938 = vmatpush.msra.mxu1 %v2780_v27 }
  0x8c   : > { %2051 = vmatmul.msk.f32.gmra.mxu0 %vm423_vm1, %v2505_v47 }
  0x8d   : > { %761 = vmatmul.f32.vlgmr.msrb.gmra.mxu3 %v2525_v57  ;;  %726 = vmatmul.f32.gmra.mxu1 %v2573_v13  ;;  %v2764_v57 = vld [vmem:[%s2732_s25 + $0x120] sm:$0xff]  ;;  %v2777_v13 = vld [vmem:[%s2732_s25 + $0x108] sm:$0xff] }
  0x8e   : > { %919 = vmatpush.msra.mxu0 %v2764_v57  ;;  %1161 = vmatpush.msrb.mxu2 %v2764_v57 }
  0x90   : > { %653 = vmatmul.f32.gmra.mxu2 %v2665_v52  ;;  %920 = vmatpush.msra.mxu0 %v2777_v13 }
  0x91   : > { %1162 = vmatpush.msrb.mxu2 %v2777_v13 }
  0x94   : > { %2052 = vmatmul.msk.f32.gmra.mxu0 %vm423_vm1, %v2535_v61 }
  0x95   : > { %764 = vmatmul.f32.gmra.mxu3 %v2552_v4  ;;  %729 = vmatmul.f32.gmra.mxu1 %v2602_v25  ;;  %v2785_v4 = vld [vmem:[%s2732_s25 + $0xf0] sm:$0xff]  ;;  %v2798_v25 = vld [vmem:[%s2732_s25 + $0x128] sm:$0xff] }
  0x96   : > { %1163 = vmatpush.msrb.mxu2 %v2785_v4  ;;  %921 = vmatpush.msra.mxu0 %v2785_v4 }
  0x97   : > { %939 = vmatpush.msra.mxu1 %v2798_v25 }
  0x98   : > { %656 = vmatmul.f32.gmra.mxu2 %v2684_v62  ;;  %922 = vmatpush.msra.mxu0 %v2801_v29 }
  0x99   : > { %1164 = vmatpush.msrb.mxu2 %v2801_v29  ;;  %940 = vmatpush.msra.mxu1 %v2809_v32 }
  0x9a   : > { %923 = vmatpush.msra.mxu0 %v2813_v33 }
  0x9b   : > { %1165 = vmatpush.msrb.mxu2 %v2813_v33 }
  0x9c   : > { %2053 = vmatmul.msk.f32.gmra.mxu0 %vm423_vm1, %v2562_v8 }
  0x9d   : > { %767 = vmatmul.f32.gmra.mxu3 %v2580_v15  ;;  %732 = vmatmul.f32.gmra.mxu1 %v2632_v39  ;;  %v2804_v15 = vld [vmem:[%s2732_s25 + $0x178] sm:$0xff] }
  0x9e   : > { %956 = vmatpush.msra.mxu3 %v2804_v15  ;;  %924 = vmatpush.msra.mxu0 %v2839_v35 }
  0x9f   : > { %1166 = vmatpush.msrb.mxu2 %v2839_v35 }
  0xa0   : > { %659 = vmatmul.f32.gmra.mxu2 %v2703_v7 }
  0xa4   : > { %2054 = vmatmul.msk.f32.gmra.mxu0 %vm423_vm1, %v2587_v18 }
  0xa5   : > { %770 = vmatmul.f32.gmra.mxu3 %v2609_v28  ;;  %735 = vmatmul.f32.gmra.mxu1 %v2660_v51  ;;  %v2836_v28 = vld [vmem:[%s2732_s25 + $0xf8] sm:$0xff]  ;;  %v2892_v51 = vld [vmem:[%s2732_s25 + $0x100] sm:$0xff] }
  0xa6   : > { %941 = vmatpush.msra.mxu1 %v2836_v28 }
  0xa8   : > { %2058 = vmatmul.msk.f32.vlgmr.msra.gmra.mxu2 %vm423_vm1, %v2463_v17  ;;  %v2816_v17 = vld [vmem:[%s2732_s25 + $0x160] sm:$0xff]  ;;  %942 = vmatpush.msra.mxu1 %v2847_v37 }
  0xa9   : > { %957 = vmatpush.msra.mxu3 %v2816_v17 }
  0xab   : > { %v557_v34 = vpop.f32.mrf.mxu2  ;;  %958 = vmatpush.msra.mxu3 %v2842_v36 }
  0xac   : > { %2055 = vmatmul.msk.f32.gmra.mxu0 %vm423_vm1, %v2617_v30 }
  0xad   : > { %773 = vmatmul.f32.gmra.mxu3 %v2639_v42  ;;  %738 = vmatmul.f32.gmra.mxu1 %v2679_v60  ;;  %v2873_v42 = vld [vmem:[%s2732_s25 + $0xc8] sm:$0xff] }
  0xae   : > { %959 = vmatpush.msra.mxu3 %v2854_v38  ;;  %943 = vmatpush.msra.mxu1 %v2873_v42 }
  0xb0   : > { %2059 = vmatmul.msk.f32.gmra.mxu2 %vm423_vm1, %v2483_v31  ;;  %v2851_v31 = vld [vmem:[%s2732_s25 + $0x90] sm:$0xff]  ;;  %960 = vmatpush.msra.mxu3 %v2879_v44 }
  0xb1   : > { %925 = vmatpush.msra.mxu0 %v2851_v31  ;;  %1167 = vmatpush.msrb.mxu2 %v2851_v31 }
  0xb2   : > { %944 = vmatpush.msra.mxu1 %v2884_v48  ;;  %961 = vmatpush.msra.mxu3 %v2892_v51 }
  0xb3   : > { %v560_v39 = vpop.f32.mrf.mxu2  ;;  %926 = vmatpush.msra.mxu0 %v2876_v43  ;;  %1168 = vmatpush.msrb.mxu2 %v2876_v43 }
  0xb4   : > { %2056 = vmatmul.msk.f32.gmra.mxu0 %vm423_vm1, %v2650_v46  ;;  %962 = vmatpush.msra.mxu3 %v2910_v59 }
  0xb5   : > { %776 = vmatmul.f32.gmra.mxu3 %v2665_v52  ;;  %741 = vmatmul.f32.gmra.mxu1 %v2698_v6  ;;  %v2904_v52 = vld [vmem:[%s2732_s25 + $0x98] sm:$0xff] }
  0xb6   : > { %945 = vmatpush.msra.mxu1 %v2904_v52  ;;  %963 = vmatpush.msra.mxu3 %v2923_v3 }
  0xb8   : > { %2060 = vmatmul.msk.f32.gmra.mxu2 %vm423_vm1, %v2505_v47  ;;  %v2889_v47 = vld [vmem:[%s2732_s25 + $0x60] sm:$0xff]  ;;  %946 = vmatpush.msra.mxu1 %v2915_v63 }
  0xb9   : > { %v475_v45 = vpop.f32.mrf.mxu0  ;;  %927 = vmatpush.msra.mxu0 %v2889_v47  ;;  %1169 = vmatpush.msrb.mxu2 %v2889_v47 }
  0xba   : > { %v476_v49 = vadd.f32 %v475_v45, %v2867_v41  ;;  %v516_v50 = vpop.f32.mrf.mxu1  ;;  %947 = vmatpush.msra.mxu1 %v2931_v9  ;;  %964 = vmatpush.msra.mxu3 %v2945_v12  ;;  %v2969_v45 = vld [vmem:[%s2732_s25 + $0x8] sm:$0xff] }
  0xbb   : > { %v563_v53 = vpop.f32.mrf.mxu2  ;;  %928 = vmatpush.msra.mxu0 %v2907_v58  ;;  %1170 = vmatpush.msrb.mxu2 %v2907_v58  ;;  %3791 = vst [vmem:[#allocation9_spill] sm:$0xff] %v2969_v45 }
  0xbc   : > { %v517_v54 = vadd.f32 %v516_v50, %v476_v49  ;;  %948 = vmatpush.msra.mxu1 %v2936_v11  ;;  %v2350_v50 = vmov 0.0  }
  0xbd   : > { %779 = vmatmul.f32.gmra.mxu3 %v2684_v62  ;;  %v2942_v62 = vld [vmem:[%s2732_s25 + $0x18] sm:$0xff] }
  0xbe   : > { %v558_v56 = vadd.f32 %v557_v34, %v517_v54  ;;  %3788 = vst [vmem:[#allocation6_spill] sm:$0xff] %v2942_v62  ;;  %949 = vmatpush.msra.mxu1 %v2948_v14 }
  0xc0   : > { %827 = vst [vmem:[#allocation2] sm:$0xff] %v558_v56  ;;  %2061 = vmatmul.msk.f32.gmra.mxu2 %vm423_vm1, %v2535_v61  ;;  %v2920_v61 = vld [vmem:[%s2732_s25 + $0x30] sm:$0xff]  ;;  %950 = vmatpush.msra.mxu1 %v2961_v22 }
  0xc1   : > { %v478_v60 = vpop.f32.mrf.mxu0  ;;  %929 = vmatpush.msra.mxu0 %v2920_v61  ;;  %1171 = vmatpush.msrb.mxu2 %v2920_v61 }
  0xc2   : > { %v479_v0 = vadd.f32 %v478_v60, %v2867_v41  ;;  %v519_v1 = vpop.f32.mrf.mxu1  ;;  %951 = vmatpush.msra.mxu1 %v2969_v45  ;;  %v2987_v60 = vld [vmem:[%s2732_s25 + $0x70] sm:$0xff] }
  0xc3   : > { %v566_v5 = vpop.f32.mrf.mxu2  ;;  %930 = vmatpush.msra.mxu0 %v2942_v62  ;;  %1172 = vmatpush.msrb.mxu2 %v2942_v62 }
  0xc4   : > { %v520_v6 = vadd.f32 %v519_v1, %v479_v0  ;;  %952 = vmatmul.f32.vlgmr.msra.gmra.mxu1 %v2350_v50 }
  0xc5   : > { %782 = vmatmul.f32.gmra.mxu3 %v2703_v7  ;;  %931 = vmatpush.msra.mxu0 %v2955_v21  ;;  %v2980_v7 = vld [vmem:[%s2732_s25 + $0x88] sm:$0xff] }
  0xc6   : > { %v561_v10 = vadd.f32 %v560_v39, %v520_v6  ;;  %1173 = vmatpush.msrb.mxu2 %v2955_v21  ;;  %932 = vmatmul.f32.vlgmr.msra.gmra.mxu0 %v2350_v50 }
  0xc7   : > { %1038 = vmatpush.msrb.mxu0 %v2738_v23  ;;  %1058 = vmatpush.msrb.mxu1 %v2756_v26 }
  0xc8   : > { %830 = vst [vmem:[#allocation2 + $0x18] sm:$0xff] %v561_v10  ;;  %2062 = vmatmul.msk.f32.gmra.mxu2 %vm423_vm1, %v2562_v8  ;;  %v2958_v8 = vld [vmem:[%s2732_s25 + $0xa0] sm:$0xff]  ;;  %v3004_v10 = vld [vmem:[%s2732_s25 + $0x58] sm:$0xff] }
  0xc9   : > { %v481_v16 = vpop.f32.mrf.mxu0  ;;  %965 = vmatpush.msra.mxu3 %v2958_v8  ;;  %1039 = vmatpush.msrb.mxu0 %v2745_v55 }
  0xca   : > { %v482_v19 = vadd.f32 %v481_v16, %v2867_v41  ;;  %v522_v20 = vpop.f32.mrf.mxu1  ;;  %1059 = vmatpush.msrb.mxu1 %v2774_v2  ;;  %1298 = vmatpush.msra.mxu2 %v2756_v26 }
  0xcb   : > { %v569_v34 = vpop.f32.mrf.mxu2  ;;  %966 = vmatpush.msra.mxu3 %v2980_v7  ;;  %1040 = vmatpush.msrb.mxu0 %v2753_v24 }
  0xcc   : > { %v523_v39 = vadd.f32 %v522_v20, %v482_v19  ;;  %1060 = vmatpush.msrb.mxu1 %v2780_v27  ;;  %1299 = vmatpush.msra.mxu2 %v2774_v2 }
  0xcd   : > { %967 = vmatpush.msra.mxu3 %v2987_v60  ;;  %1041 = vmatpush.msrb.mxu0 %v2764_v57 }
  0xce   : > { %v564_v49 = vadd.f32 %v563_v53, %v523_v39  ;;  %1061 = vmatpush.msrb.mxu1 %v2798_v25  ;;  %1300 = vmatpush.msra.mxu2 %v2780_v27  ;;  %v3016_v39 = vld [vmem:[%s2732_s25 + $0x40] sm:$0xff] }
  0xcf   : > { %1042 = vmatpush.msrb.mxu0 %v2777_v13  ;;  %968 = vmatpush.msra.mxu3 %v3004_v10 }
  0xd0   : > { %833 = vst [vmem:[#allocation2 + $0x30] sm:$0xff] %v564_v49  ;;  %2063 = vmatmul.msk.f32.gmra.mxu2 %vm423_vm1, %v2587_v18  ;;  %v2996_v6 = vpop.f32.mrf.mxu3  ;;  %1062 = vmatpush.msrb.mxu1 %v2809_v32  ;;  %v3019_v49 = vld [vmem:[%s2732_s25 + $0x28] sm:$0xff] }
  0xd1   : > { %v484_v54 = vpop.f32.mrf.mxu0  ;;  %1043 = vmatpush.msrb.mxu0 %v2785_v4  ;;  %1301 = vmatpush.msra.mxu2 %v2798_v25 }
  0xd2   : > { %v485_v53 = vadd.f32 %v484_v54, %v2867_v41  ;;  %v525_v56 = vpop.f32.mrf.mxu1  ;;  %1063 = vmatpush.msrb.mxu1 %v2836_v28  ;;  %969 = vmatpush.msra.mxu3 %v3016_v39 }
  0xd3   : > { %v572_v18 = vpop.f32.mrf.mxu2  ;;  %1044 = vmatpush.msrb.mxu0 %v2801_v29  ;;  %1302 = vmatpush.msra.mxu2 %v2809_v32 }
  0xd4   : > { %v526_v0 = vadd.f32 %v525_v56, %v485_v53  ;;  %1064 = vmatpush.msrb.mxu1 %v2847_v37  ;;  %970 = vmatpush.msra.mxu3 %v3019_v49 }
  0xd5   : > { %1045 = vmatpush.msrb.mxu0 %v2813_v33  ;;  %1303 = vmatpush.msra.mxu2 %v2836_v28 }
  0xd6   : > { %v567_v1 = vadd.f32 %v566_v5, %v526_v0  ;;  %1065 = vmatpush.msrb.mxu1 %v2873_v42 }
  0xd7   : > { %1046 = vmatpush.msrb.mxu0 %v2839_v35  ;;  %1304 = vmatpush.msra.mxu2 %v2847_v37 }
  0xd8   : > { %836 = vst [vmem:[#allocation2 + $0x48] sm:$0xff] %v567_v1  ;;  %2064 = vmatmul.msk.f32.gmra.mxu2 %vm423_vm1, %v2617_v30  ;;  %v3025_v53 = vpop.f32.mrf.mxu3  ;;  %1066 = vmatpush.msrb.mxu1 %v2884_v48 }
  0xd9   : > { %v487_v16 = vpop.f32.mrf.mxu0  ;;  %1047 = vmatpush.msrb.mxu0 %v2851_v31  ;;  %1305 = vmatpush.msra.mxu2 %v2873_v42 }
  0xda   : > { %v488_v5 = vadd.f32 %v487_v16, %v2867_v41  ;;  %v528_v19 = vpop.f32.mrf.mxu1  ;;  %1067 = vmatpush.msrb.mxu1 %v2904_v52  ;;  %v3043_v16 = vld [vmem:[%s2732_s25 + $0x10] sm:$0xff] }
  0xdb   : > { %v3012_v20 = vpop.f32.mrf.mxu2  ;;  %1048 = vmatpush.msrb.mxu0 %v2876_v43  ;;  %3792 = vst [vmem:[#allocation10_spill] sm:$0xff] %v3043_v16  ;;  %971 = vmatpush.msra.mxu3 %v3043_v16 }
  0xdc   : > { %v529_v30 = vadd.f32 %v528_v19, %v488_v5  ;;  %1068 = vmatpush.msrb.mxu1 %v2915_v63  ;;  %972 = vmatmul.f32.vlgmr.msra.gmra.mxu3 %v2350_v50 }
  0xdd   : > { %1049 = vmatpush.msrb.mxu0 %v2889_v47  ;;  %1078 = vmatpush.msrb.mxu3 %v2804_v15 }
  0xde   : > { %v570_v54 = vadd.f32 %v569_v34, %v529_v30  ;;  %1069 = vmatpush.msrb.mxu1 %v2931_v9  ;;  %1306 = vmatpush.msra.mxu2 %v2884_v48 }
  0xdf   : > { %1050 = vmatpush.msrb.mxu0 %v2907_v58  ;;  %1079 = vmatpush.msrb.mxu3 %v2816_v17 }
  0xe0   : > { %839 = vst [vmem:[#allocation2 + $0x60] sm:$0xff] %v570_v54  ;;  %2065 = vmatmul.msk.f32.gmra.mxu2 %vm423_vm1, %v2650_v46  ;;  %v3051_v19 = vpop.f32.mrf.mxu3  ;;  %1070 = vmatpush.msrb.mxu1 %v2936_v11 }
  0xe1   : > { %v490_v56 = vpop.f32.mrf.mxu0  ;;  %1051 = vmatpush.msrb.mxu0 %v2920_v61  ;;  %1307 = vmatpush.msra.mxu2 %v2904_v52 }
  0xe2   : > { %v491_v34 = vadd.f32 %v490_v56, %v2867_v41  ;;  %v531_v0 = vpop.f32.mrf.mxu1  ;;  %1071 = vmatpush.msrb.mxu1 %v2948_v14  ;;  %1080 = vmatpush.msrb.mxu3 %v2842_v36 }
  0xe3   : > { %v3038_v1 = vpop.f32.mrf.mxu2  ;;  %1052 = vmatpush.msrb.mxu0 %v2942_v62  ;;  %1308 = vmatpush.msra.mxu2 %v2915_v63 }
  0xe4   : > { %v532_v46 = vadd.f32 %v531_v0, %v491_v34  ;;  %1072 = vmatpush.msrb.mxu1 %v2961_v22  ;;  %1081 = vmatpush.msrb.mxu3 %v2854_v38 }
  0xe5   : > { %1053 = vmatpush.msrb.mxu0 %v2955_v21  ;;  %1309 = vmatpush.msra.mxu2 %v2931_v9 }
  0xe6   : > { %v573_v5 = vadd.f32 %v572_v18, %v532_v46  ;;  %1073 = vmatpush.msrb.mxu1 %v2969_v45  ;;  %1082 = vmatpush.msrb.mxu3 %v2879_v44 }
  0xe7   : > { %1178 = vmatpush.msra.mxu0 %v2756_v26  ;;  %v3090_v26 = vperm.slane %v2857_v40, 1  ;;  %1310 = vmatpush.msra.mxu2 %v2936_v11 }
  0xe8   : > { %842 = vst [vmem:[#allocation2 + $0x78] sm:$0xff] %v573_v5  ;;  %v3082_v0 = vpop.f32.mrf.mxu3  ;;  %1198 = vmatpush.msra.mxu1 %v2804_v15  ;;  %1083 = vmatpush.msrb.mxu3 %v2892_v51 }
  0xe9   : > { %v493_v18 = vpop.f32.mrf.mxu0  ;;  %1179 = vmatpush.msra.mxu0 %v2774_v2  ;;  %1311 = vmatpush.msra.mxu2 %v2948_v14 }
  0xea   : > { %v494_v50 = vadd.f32 %v493_v18, %v2867_v41  ;;  %v534_v30 = vpop.f32.mrf.mxu1  ;;  %1199 = vmatpush.msra.mxu1 %v2816_v17  ;;  %1084 = vmatpush.msrb.mxu3 %v2910_v59 }
  0xeb   : > { %v639_v54 = vpop.f32.mrf.mxu2  ;;  %1180 = vmatpush.msra.mxu0 %v2780_v27  ;;  %1312 = vmatpush.msra.mxu2 %v2961_v22 }
  0xec   : > { %v535_v56 = vadd.f32 %v534_v30, %v494_v50  ;;  %1200 = vmatpush.msra.mxu1 %v2842_v36  ;;  %v599_v50 = vadd.f32 %v2996_v6, %v3090_v26  ;;  %1085 = vmatpush.msrb.mxu3 %v2923_v3 }
  0xed   : > { %1181 = vmatpush.msra.mxu0 %v2798_v25  ;;  %1313 = vmatpush.msra.mxu2 %v2969_v45 }
  0xee   : > { %v576_v34 = vadd.f32 %v3012_v20, %v535_v56  ;;  %1201 = vmatpush.msra.mxu1 %v2854_v38  ;;  %1086 = vmatpush.msrb.mxu3 %v2945_v12  ;;  %v640_v6 = vadd.f32 %v639_v54, %v599_v50  ;;  %v602_v54 = vadd.f32 %v3025_v53, %v3090_v26 }
  0xef   : > { %1182 = vmatpush.msra.mxu0 %v2809_v32 }
  0xf0   : > { %845 = vst [vmem:[#allocation2 + $0x90] sm:$0xff] %v576_v34  ;;  %v3116_v56 = vpop.f32.mrf.mxu3  ;;  %1202 = vmatpush.msra.mxu1 %v2879_v44  ;;  %1087 = vmatpush.msrb.mxu3 %v2958_v8 }
  0xf1   : > { %v496_v20 = vpop.f32.mrf.mxu0  ;;  %1183 = vmatpush.msra.mxu0 %v2836_v28 }
  0xf2   : > { %v497_v46 = vadd.f32 %v496_v20, %v2867_v41  ;;  %v537_v5 = vpop.f32.mrf.mxu1  ;;  %1203 = vmatpush.msra.mxu1 %v2892_v51  ;;  %1088 = vmatpush.msrb.mxu3 %v2980_v7 }
  0xf3   : > { %v642_v18 = vpop.f32.mrf.mxu2  ;;  %1184 = vmatpush.msra.mxu0 %v2847_v37 }
  0xf4   : > { %v538_v30 = vadd.f32 %v537_v5, %v497_v46  ;;  %1204 = vmatpush.msra.mxu1 %v2910_v59  ;;  %1089 = vmatpush.msrb.mxu3 %v2987_v60  ;;  %v643_v5 = vadd.f32 %v642_v18, %v602_v54 }
  0xf5   : > { %1185 = vmatpush.msra.mxu0 %v2873_v42 }
  0xf6   : > { %v579_v41 = vadd.f32 %v3038_v1, %v538_v30  ;;  %1205 = vmatpush.msra.mxu1 %v2923_v3  ;;  %1090 = vmatpush.msrb.mxu3 %v3004_v10 }
  0xf7   : > { %1186 = vmatpush.msra.mxu0 %v2884_v48 }
  0xf8   : > { %848 = vst [vmem:[#allocation2 + $0xa8] sm:$0xff] %v579_v41  ;;  %v613_v46 = vpop.f32.mrf.mxu3  ;;  %1206 = vmatpush.msra.mxu1 %v2945_v12  ;;  %1091 = vmatpush.msrb.mxu3 %v3016_v39  ;;  %v605_v41 = vadd.f32 %v3051_v19, %v3090_v26 }
  0xf9   : > { %v680_v1 = vpop.f32.mrf.mxu0  ;;  %1187 = vmatpush.msra.mxu0 %v2904_v52 }
  0xfa   : > { %v681_v34 = vadd.f32 %v680_v1, %v640_v6  ;;  %1207 = vmatpush.msra.mxu1 %v2958_v8  ;;  %1092 = vmatpush.msrb.mxu3 %v3019_v49 }
  0xfb   : > { %v645_v20 = vpop.f32.mrf.mxu2  ;;  %1188 = vmatpush.msra.mxu0 %v2915_v63 }
  0xfc   : > { %828 = vst [vmem:[#allocation2 + $0x8] sm:$0xff] %v681_v34  ;;  %1208 = vmatpush.msra.mxu1 %v2980_v7  ;;  %1093 = vmatpush.msrb.mxu3 %v3043_v16  ;;  %v646_v6 = vadd.f32 %v645_v20, %v605_v41 }
  0xfd   : > { %1189 = vmatpush.msra.mxu0 %v2931_v9 }
  0xfe   : > { %1209 = vmatpush.msra.mxu1 %v2987_v60  ;;  %1278 = vmatpush.msra.mxu3 %v2738_v23  ;;  %v608_v23 = vadd.f32 %v3082_v0, %v3090_v26  ;;  %v611_v0 = vadd.f32 %v3116_v56, %v3090_v26 }
  0xff   : > { %1190 = vmatpush.msra.mxu0 %v2936_v11 }
 0x100   : > { %v616_v18 = vpop.f32.mrf.mxu3  ;;  %1210 = vmatpush.msra.mxu1 %v3004_v10  ;;  %1279 = vmatpush.msra.mxu3 %v2745_v55 }
 0x101   : > { %v683_v50 = vpop.f32.mrf.mxu0  ;;  %1191 = vmatpush.msra.mxu0 %v2948_v14 }
 0x102   : > { %v684_v53 = vadd.f32 %v683_v50, %v643_v5  ;;  %1211 = vmatpush.msra.mxu1 %v3016_v39  ;;  %1280 = vmatpush.msra.mxu3 %v2753_v24  ;;  %v721_v50 = vpop.f32.mrf.mxu1 }
 0x103   : > { %v648_v30 = vpop.f32.mrf.mxu2  ;;  %1192 = vmatpush.msra.mxu0 %v2961_v22 }
 0x104   : > { %831 = vst [vmem:[#allocation2 + $0x20] sm:$0xff] %v684_v53  ;;  %1212 = vmatpush.msra.mxu1 %v3019_v49  ;;  %1281 = vmatpush.msra.mxu3 %v2764_v57  ;;  %v649_v20 = vadd.f32 %v648_v30, %v608_v23  ;;  %v3181_v23 = vperm.slane %v2857_v40, 2 }
 0x105   : > { %1193 = vmatpush.msra.mxu0 %v2969_v45 }
 0x106   : > { %1213 = vmatpush.msra.mxu1 %v3043_v16  ;;  %1282 = vmatpush.msra.mxu3 %v2777_v13 }
 0x108   : > { %v619_v55 = vpop.f32.mrf.mxu3  ;;  %1283 = vmatpush.msra.mxu3 %v2785_v4 }
 0x109   : > { %v686_v19 = vpop.f32.mrf.mxu0  ;;  %v620_v16 = vadd.f32 %v619_v55, %v3090_v26 }
 0x10a   : > { %v687_v1 = vadd.f32 %v686_v19, %v646_v6  ;;  %1284 = vmatpush.msra.mxu3 %v2801_v29  ;;  %v614_v19 = vadd.f32 %v613_v46, %v3090_v26  ;;  %v724_v56 = vpop.f32.mrf.mxu1  ;;  %v617_v46 = vadd.f32 %v616_v18, %v3090_v26 }
 0x10b   : > { %v651_v34 = vpop.f32.mrf.mxu2 }
 0x10c   : > { %834 = vst [vmem:[#allocation2 + $0x38] sm:$0xff] %v687_v1  ;;  %1285 = vmatpush.msra.mxu3 %v2813_v33  ;;  %v652_v53 = vadd.f32 %v651_v34, %v611_v0  ;;  %v722_v0 = vadd.f32 %v721_v50, %v3181_v23 }
 0x10e   : > { %1286 = vmatpush.msra.mxu3 %v2839_v35 }
 0x110   : > { %v762_v57 = vpop.f32.mrf.mxu3  ;;  %1287 = vmatpush.msra.mxu3 %v2851_v31 }
 0x111   : > { %v689_v54 = vpop.f32.mrf.mxu0 }
 0x112   : > { %v690_v5 = vadd.f32 %v689_v54, %v649_v20  ;;  %1288 = vmatpush.msra.mxu3 %v2876_v43 }
 0x113   : > { %v654_v24 = vpop.f32.mrf.mxu2 }
 0x114   : > { %837 = vst [vmem:[#allocation2 + $0x50] sm:$0xff] %v690_v5  ;;  %1289 = vmatpush.msra.mxu3 %v2889_v47  ;;  %v655_v1 = vadd.f32 %v654_v24, %v614_v19 }
 0x116   : > { %1290 = vmatpush.msra.mxu3 %v2907_v58 }
 0x118   : > { %1291 = vmatpush.msra.mxu3 %v2920_v61  ;;  %v765_v20 = vpop.f32.mrf.mxu3 }
 0x119   : > { %v692_v30 = vpop.f32.mrf.mxu0 }
 0x11a   : > { %v693_v41 = vadd.f32 %v692_v30, %v652_v53  ;;  %1292 = vmatpush.msra.mxu3 %v2942_v62  ;;  %v727_v53 = vpop.f32.mrf.mxu1  ;;  %v763_v30 = vadd.f32 %v762_v57, %v722_v0 }
 0x11b   : > { %v657_v6 = vpop.f32.mrf.mxu2  ;;  %v728_v57 = vadd.f32 %v727_v53, %v3181_v23 }
 0x11c   : > { %840 = vst [vmem:[#allocation2 + $0x68] sm:$0xff] %v693_v41  ;;  %1293 = vmatpush.msra.mxu3 %v2955_v21  ;;  %v658_v24 = vadd.f32 %v657_v6, %v617_v46 }
 0x120   : > { %v768_v45 = vpop.f32.mrf.mxu3 }
 0x121   : > { %v695_v34 = vpop.f32.mrf.mxu0  ;;  %v769_v0 = vadd.f32 %v768_v45, %v728_v57 }
 0x122   : > { %v696_v54 = vadd.f32 %v695_v34, %v655_v1  ;;  %v725_v34 = vadd.f32 %v724_v56, %v3181_v23  ;;  %v730_v50 = vpop.f32.mrf.mxu1 }
 0x123   : > { %v660_v5 = vpop.f32.mrf.mxu2 }
 0x124   : > { %843 = vst [vmem:[#allocation2 + $0x80] sm:$0xff] %v696_v54  ;;  %v661_v18 = vadd.f32 %v660_v5, %v620_v16  ;;  %v766_v54 = vadd.f32 %v765_v20, %v725_v34 }
 0x128   : > { %v771_v46 = vpop.f32.mrf.mxu3 }
 0x129   : > { %v698_v40 = vpop.f32.mrf.mxu0 }
 0x12a   : > { %v699_v41 = vadd.f32 %v698_v40, %v658_v24  ;;  %v733_v26 = vpop.f32.mrf.mxu1 }
 0x12b   : > { %v803_v19 = vpop.f32.mrf.mxu2 }
 0x12c   : > { %846 = vst [vmem:[#allocation2 + $0x98] sm:$0xff] %v699_v41  ;;  %v804_v1 = vadd.f32 %v803_v19, %v763_v30  ;;  %v731_v30 = vadd.f32 %v730_v50, %v3181_v23 }
 0x12e   : > { %829 = vst [vmem:[#allocation2 + $0x10] sm:$0xff] %v804_v1  ;;  %v772_v16 = vadd.f32 %v771_v46, %v731_v30 }
 0x130   : > { %v774_v56 = vpop.f32.mrf.mxu3 }
 0x131   : > { %v701_v22 = vpop.f32.mrf.mxu0 }
 0x132   : > { %v702_v62 = vadd.f32 %v701_v22, %v661_v18  ;;  %v734_v22 = vadd.f32 %v733_v26, %v3181_v23  ;;  %v736_v40 = vpop.f32.mrf.mxu1 }
 0x133   : > { %v806_v21 = vpop.f32.mrf.mxu2  ;;  %v737_v45 = vadd.f32 %v736_v40, %v3181_v23 }
 0x134   : > { %849 = vst [vmem:[#allocation2 + $0xb0] sm:$0xff] %v702_v62  ;;  %v807_v6 = vadd.f32 %v806_v21, %v766_v54  ;;  %v775_v62 = vadd.f32 %v774_v56, %v734_v22  ;;  %v899_v56 = vld [vmem:[%s276_s6] sm:$0x7]  ;;  %s3297_s6 = sshll.u32 %s1028_s13, 3 }
 0x135   : > { %s1030_s8 = sshra.s32 %s3297_s6, 3  ;;  %s1145_s10 = scalar_lea.vmem %s3221_s16, %s3297_s6 [#allocation3] }
 0x136   : > { %832 = vst [vmem:[#allocation2 + $0x28] sm:$0xff] %v807_v6 }
 0x138   : > { %v777_v21 = vpop.f32.mrf.mxu3 }
 0x139   : > { %v778_v1 = vadd.f32 %v777_v21, %v737_v45 }
 0x13a   : > { %v739_v19 = vpop.f32.mrf.mxu1 }
 0x13b   : > { %v809_v24 = vpop.f32.mrf.mxu2  ;;  %v740_v50 = vadd.f32 %v739_v19, %v3181_v23 }
 0x13c   : > { %v810_v55 = vadd.f32 %v809_v24, %v769_v0 }
 0x13e   : > { %835 = vst [vmem:[#allocation2 + $0x40] sm:$0xff] %v810_v55 }
 0x140   : > { %v780_v18 = vpop.f32.mrf.mxu3 }
 0x141   : > { %v781_v6 = vadd.f32 %v780_v18, %v740_v50 }
 0x142   : > { %v742_v57 = vpop.f32.mrf.mxu1 }
 0x143   : > { %v812_v20 = vpop.f32.mrf.mxu2  ;;  %v743_v24 = vadd.f32 %v742_v57, %v3181_v23  ;;  %v933_v23 = vpop.f32.mrf.mxu0 }
 0x144   : > { %v813_v5 = vadd.f32 %v812_v20, %v772_v16  ;;  %v3204_v20 = vperm.slane %v899_v56, 0 }
 0x146   : > { %838 = vst [vmem:[#allocation2 + $0x58] sm:$0xff] %v813_v5  ;;  %v3206_v5 = vperm.slane %v899_v56, 1  ;;  %v934_v40 = vadd.f32 %v933_v23, %v3204_v20 }
 0x147   : > { %3793 = vst [vmem:[#allocation11_spill] sm:$0xff] %v3204_v20 }
 0x148   : > { %v783_v26 = vpop.f32.mrf.mxu3  ;;  %3794 = vst [vmem:[#allocation12_spill] sm:$0xff] %v3206_v5 }
 0x149   : > { %v784_v55 = vadd.f32 %v783_v26, %v743_v24  ;;  %v3214_v24 = vperm.slane %v899_v56, 2 }
 0x14a   : > { %v953_v22 = vpop.f32.mrf.mxu1 }
 0x14b   : > { %v815_v53 = vpop.f32.mrf.mxu2 }
 0x14c   : > { %v816_v41 = vadd.f32 %v815_v53, %v775_v62  ;;  %v954_v62 = vadd.f32 %v953_v22, %v3206_v5 }
 0x14e   : > { %841 = vst [vmem:[#allocation2 + $0x70] sm:$0xff] %v816_v41 }
 0x153   : > { %v818_v34 = vpop.f32.mrf.mxu2 }
 0x154   : > { %v819_v54 = vadd.f32 %v818_v34, %v778_v1 }
 0x156   : > { %844 = vst [vmem:[#allocation2 + $0x88] sm:$0xff] %v819_v54 }
 0x15b   : > { %v821_v46 = vpop.f32.mrf.mxu2 }
 0x15c   : > { %v822_v0 = vadd.f32 %v821_v46, %v781_v6 }
 0x15e   : > { %847 = vst [vmem:[#allocation2 + $0xa0] sm:$0xff] %v822_v0 }
 0x163   : > { %v824_v30 = vpop.f32.mrf.mxu2 }
 0x164   : > { %v825_v16 = vadd.f32 %v824_v30, %v784_v55  ;;  %v973_v30 = vpop.f32.mrf.mxu3 }
 0x166   : > { %850 = vst [vmem:[#allocation2 + $0xb8] sm:$0xff] %v825_v16 }
 0x16d   : > { %v906_v21 = vld [vmem:[%s3210_s30] sm:$0xff]  ;;  %v907_v53 = vld [vmem:[%s3210_s30 + $0x8] sm:$0xff] }
 0x16e   : > { %v976_v41 = vadd.f32 %v934_v40, %v906_v21  ;;  %v996_v45 = vadd.f32 %v954_v62, %v907_v53  ;;  %v974_v62 = vadd.f32 %v973_v30, %v3214_v24 }
 0x170   : > { %v2067_v19 = vmul.f32 -1.442695, %v976_v41  ;;  %v2068_v1 = vmul.f32 -1.442695, %v996_v45 }
 0x172   : > { %2158 = vpow2.f32 %v2067_v19 }
 0x173   : > { %2160 = vpow2.f32 %v2068_v1 }
 0x178   : > { %v2159_v34 = vpop.eup %2158 }
 0x179   : > { %v2161_v18 = vpop.eup %2160  ;;  %v980_v54 = vadd.f32 1.0, %v2159_v34  ;;  %v908_v34 = vld [vmem:[%s3210_s30 + $0x10] sm:$0xff]  ;;  %s2105_s30 = smul.u32 24, %s1030_s8  ;;  %s1265_s8 = scalar_lea.vmem %s3221_s16, %s2075_s11 [#allocation3] }
 0x17a   : > { %v1000_v50 = vadd.f32 1.0, %v2161_v18 }
 0x17b   : > { %2162 = vrcp.f32 %v980_v54  ;;  %v992_v16 = vand.u32 2147483648, %v980_v54  ;;  %v990_v22 = vand.u32 2147483647, %v980_v54  ;;  %vm986_vm3 = vweird.f32 %v980_v54  ;;  %s3302_s9 = scalar_lea.vmem [#allocation2], %s2105_s30  ;;  %s1270_s30 = sshra.s32 %s2079_s14, 3 }
 0x17c   : > { %2164 = vrcp.f32 %v1000_v50  ;;  %v1012_v19 = vand.u32 2147483648, %v1000_v50  ;;  %vm1006_vm7 = vweird.f32 %v1000_v50  ;;  %v1010_v18 = vand.u32 2147483647, %v1000_v50 }
 0x17d   : > { %v993_v53 = vor.u32 1.1754944e-38, %v992_v16  ;;  %vm991_vm5 = vcmp.eq.f32.partialorder %v990_v22, 8.507059e+37  ;;  %v3243_v22 = vld [vmem:[%s2732_s25 + $0x150] sm:$0xff] }
 0x17e   : > { %vm1011_vm9 = vcmp.eq.f32.partialorder %v1010_v18, 8.507059e+37 }
 0x181   : > { %v2163_v6 = vpop.eup %2162 }
 0x182   : > { %v2165_v57 = vpop.eup %2164  ;;  %v982_v46 = vmul.f32 %v2163_v6, %v980_v54  ;;  %vm987_vm2 = vweird.f32 %v2163_v6  ;;  %v1013_v54 = vor.u32 1.1754944e-38, %v1012_v19  ;;  %v1037_v19 = vld [vmem:[%s3302_s9 + $0x10] sm:$0xff] }
 0x183   : > { %v1002_v0 = vmul.f32 %v2165_v57, %v1000_v50  ;;  %vm988_vm4 = vmor %vm986_vm3, %vm987_vm2  ;;  %vm1007_vm6 = vweird.f32 %v2165_v57 }
 0x184   : > { %v983_v26 = vsub.f32 1.0, %v982_v46  ;;  %vm1008_vm8 = vmor %vm1006_vm7, %vm1007_vm6 }
 0x185   : > { %v1003_v55 = vsub.f32 1.0, %v1002_v0 }
 0x186   : > { %v984_v23 = vmul.f32 %v2163_v6, %v983_v26 }
 0x187   : > { %v1004_v40 = vmul.f32 %v2165_v57, %v1003_v55 }
 0x188   : > { %v985_v21 = vadd.f32 %v2163_v6, %v984_v23  ;;  %v3238_v23 = vld [vmem:[%s2732_s25 + $0x170] sm:$0xff] }
 0x189   : > { %v1005_v45 = vadd.f32 %v2165_v57, %v1004_v40  ;;  %v3249_v40 = vld [vmem:[%s2732_s25 + $0x138] sm:$0xff] }
 0x18a   : > { %v989_v41 = vsel %vm988_vm4, %v2163_v6, %v985_v21 }
 0x18b   : > { %v994_v56 = vsel %vm991_vm5, %v993_v53, %v989_v41  ;;  %v1009_v0 = vsel %vm1008_vm8, %v2165_v57, %v1005_v45  ;;  %v3234_v57 = vld [vmem:[%s2732_s25 + $0x168] sm:$0xff] }
 0x18c   : > { %v1016_v1 = vmul.f32 %v994_v56, %v974_v62  ;;  %v1014_v6 = vsel %vm1011_vm9, %v1013_v54, %v1009_v0 }
 0x18d   : > { %v1019_v26 = vsub.f32 1.0, %v1014_v6  ;;  %v1021_v16 = vmul.f32 0.0, %v1014_v6 }
 0x18e   : > { %v1017_v46 = vadd.f32 %v1016_v1, %v908_v34 }
 0x190   : > { %2166 = vtanh.f32 %v1017_v46 }
 0x196   : > { %v2167_v55 = vpop.eup %2166 }
 0x197   : > { %v1020_v30 = vmul.f32 %v2167_v55, %v1019_v26 }
 0x199   : > { %v3226_v50 = vadd.f32 %v1021_v16, %v1020_v30  ;;  %v3318_v16 = vld [vmem:[%s2732_s25 + $0x178] sm:$0xff] }
 0x19b   : > { %1024 = vst [vmem:[%s1023_s23] sm:$0xff] %v3226_v50  ;;  %1054 = vmatmul.f32.vlgmr.msrb.gmra.mxu0 %v3226_v50  ;;  %1074 = vmatmul.f32.vlgmr.msrb.gmra.mxu1 %v3226_v50  ;;  %s1150_s23 = sshra.s32 %s2075_s11, 3  ;;  %s1390_s11 = sshra.s32 %s2084_s15, 3 }
 0x19c   : > { %1094 = vmatmul.f32.vlgmr.msrb.gmra.mxu3 %v3226_v50  ;;  %1318 = vmatpush.msrb.mxu0 %v2804_v15  ;;  %v3255_v15 = vld [vmem:[%s2732_s25 + $0x120] sm:$0xff]  ;;  %s2106_s13 = smul.u32 24, %s1150_s23 }
 0x19d   : > { %1398 = vmatpush.msrb.mxu1 %v3234_v57  ;;  %1418 = vmatpush.msrb.mxu3 %v3238_v23  ;;  %s2108_s23 = smul.u32 24, %s1390_s11 }
 0x19e   : > { %1319 = vmatpush.msrb.mxu0 %v2816_v17  ;;  %s3480_s6 = scalar_lea.vmem [#allocation2], %s2106_s13 }
 0x19f   : > { %1399 = vmatpush.msrb.mxu1 %v3243_v22  ;;  %1419 = vmatpush.msrb.mxu3 %v2774_v2  ;;  %v3795_v2 = vld [vmem:[#allocation6_spill] sm:$0xff]  ;;  %s3636_s13 = scalar_lea.vmem [#allocation2], %s2108_s23  ;;  %s2096_s23 = sshll.u32 %s3131_s12, 3 }
 0x1a0   : > { %1320 = vmatpush.msrb.mxu0 %v2842_v36  ;;  %s2306_s12 = scalar_lea.hbm %s3765_s5, 128 }
 0x1a1   : > { %1400 = vmatpush.msrb.mxu1 %v3249_v40  ;;  %1420 = vmatpush.msrb.mxu3 %v2780_v27  ;;  %v3797_v27 = vld [vmem:[#allocation10_spill] sm:$0xff] }
 0x1a2   : > { %1321 = vmatpush.msrb.mxu0 %v2854_v38 }
 0x1a3   : > { %1401 = vmatpush.msrb.mxu1 %v3255_v15  ;;  %1421 = vmatpush.msrb.mxu3 %v2798_v25  ;;  %v3799_v25 = vld [vmem:[#allocation9_spill] sm:$0xff] }
 0x1a4   : > { %1322 = vmatpush.msrb.mxu0 %v2879_v44 }
 0x1a5   : > { %1402 = vmatpush.msrb.mxu1 %v2777_v13  ;;  %1422 = vmatpush.msrb.mxu3 %v2809_v32  ;;  %v3796_v13 = vld [vmem:[#allocation8_spill] sm:$0xff] }
 0x1a6   : > { %1323 = vmatpush.msrb.mxu0 %v2892_v51 }
 0x1a7   : > { %1403 = vmatpush.msrb.mxu1 %v2785_v4  ;;  %1423 = vmatpush.msrb.mxu3 %v2836_v28  ;;  %v3798_v4 = vld [vmem:[#allocation7_spill] sm:$0xff]  ;;  %v1035_v28 = vld [vmem:[%s3302_s9] sm:$0xff] }
 0x1a8   : > { %1324 = vmatpush.msrb.mxu0 %v2910_v59 }
 0x1a9   : > { %1404 = vmatpush.msrb.mxu1 %v2801_v29  ;;  %1424 = vmatpush.msrb.mxu3 %v2847_v37 }
 0x1aa   : > { %1325 = vmatpush.msrb.mxu0 %v2923_v3 }
 0x1ab   : > { %1405 = vmatpush.msrb.mxu1 %v2813_v33  ;;  %1425 = vmatpush.msrb.mxu3 %v2873_v42 }
 0x1ac   : > { %1326 = vmatpush.msrb.mxu0 %v2945_v12 }
 0x1ad   : > { %1406 = vmatpush.msrb.mxu1 %v2839_v35  ;;  %1426 = vmatpush.msrb.mxu3 %v2884_v48  ;;  %v1036_v35 = vld [vmem:[%s3302_s9 + $0x8] sm:$0xff]  ;;  %s2107_s9 = smul.u32 24, %s1270_s30 }
 0x1ae   : > { %1327 = vmatpush.msrb.mxu0 %v2958_v8 }
 0x1af   : > { %1407 = vmatpush.msrb.mxu1 %v2851_v31  ;;  %1427 = vmatpush.msrb.mxu3 %v2904_v52 }
 0x1b0   : > { %1328 = vmatpush.msrb.mxu0 %v2980_v7 }
 0x1b1   : > { %1408 = vmatpush.msrb.mxu1 %v2876_v43  ;;  %1428 = vmatpush.msrb.mxu3 %v2915_v63 }
 0x1b2   : > { %1329 = vmatpush.msrb.mxu0 %v2987_v60 }
 0x1b3   : > { %1409 = vmatpush.msrb.mxu1 %v2889_v47  ;;  %1429 = vmatpush.msrb.mxu3 %v2931_v9 }
 0x1b4   : > { %1330 = vmatpush.msrb.mxu0 %v3004_v10 }
 0x1b5   : > { %1410 = vmatpush.msrb.mxu1 %v2907_v58  ;;  %1430 = vmatpush.msrb.mxu3 %v2936_v11 }
 0x1b6   : > { %1331 = vmatpush.msrb.mxu0 %v3016_v39 }
 0x1b7   : > { %1411 = vmatpush.msrb.mxu1 %v2920_v61  ;;  %1431 = vmatpush.msrb.mxu3 %v2948_v14 }
 0x1b8   : > { %1332 = vmatpush.msrb.mxu0 %v3019_v49 }
 0x1b9   : > { %1412 = vmatpush.msrb.mxu1 %v3795_v2  ;;  %1432 = vmatpush.msrb.mxu3 %v3796_v13  ;;  %v3329_v2 = vld [vmem:[%s2732_s25 + $0x158] sm:$0xff]  ;;  %v3333_v13 = vld [vmem:[%s2732_s25 + $0x148] sm:$0xff] }
 0x1ba   : > { %1333 = vmatpush.msrb.mxu0 %v3797_v27 }
 0x1bb   : > { %1413 = vmatpush.msrb.mxu1 %v3798_v4  ;;  %1433 = vmatpush.msrb.mxu3 %v3799_v25  ;;  %v3338_v4 = vld [vmem:[%s2732_s25 + $0x140] sm:$0xff]  ;;  %v3342_v25 = vld [vmem:[%s2732_s25 + $0x130] sm:$0xff] }
 0x218   : > { %v1055_v29 = vpop.f32.mrf.mxu0  ;;  %v1075_v32 = vpop.f32.mrf.mxu1 }
 0x219   : > { %v1056_v33 = vadd.f32 %v1055_v29, %v3204_v20  ;;  %v1076_v17 = vadd.f32 %v1075_v32, %v3206_v5  ;;  %v3347_v29 = vld [vmem:[%s2732_s25 + $0x128] sm:$0xff]  ;;  %v3351_v32 = vld [vmem:[%s2732_s25 + $0x118] sm:$0xff] }
 0x21b   : > { %v1098_v36 = vadd.f32 %v1056_v33, %v1035_v28  ;;  %v1118_v37 = vadd.f32 %v1076_v17, %v1036_v35  ;;  %v3355_v33 = vld [vmem:[%s2732_s25 + $0x108] sm:$0xff]  ;;  %v3359_v17 = vld [vmem:[%s2732_s25 + $0x110] sm:$0xff]  ;;  %v3363_v28 = vld [vmem:[%s2732_s25 + $0x100] sm:$0xff] }
 0x21c   : > { %v3367_v35 = vld [vmem:[%s2732_s25 + $0xf0] sm:$0xff] }
 0x21d   : > { %v2072_v31 = vmul.f32 -1.442695, %v1098_v36  ;;  %v2073_v38 = vmul.f32 -1.442695, %v1118_v37  ;;  %v3371_v36 = vld [vmem:[%s2732_s25 + $0xf8] sm:$0xff]  ;;  %v3375_v37 = vld [vmem:[%s2732_s25 + $0xe8] sm:$0xff] }
 0x21f   : > { %2168 = vpow2.f32 %v2072_v31  ;;  %v1095_v12 = vpop.f32.mrf.mxu3  ;;  %v3379_v31 = vld [vmem:[%s2732_s25 + $0xd8] sm:$0xff] }
 0x220   : > { %2170 = vpow2.f32 %v2073_v38  ;;  %v1096_v62 = vadd.f32 %v1095_v12, %v3214_v24  ;;  %v3383_v38 = vld [vmem:[%s2732_s25 + $0xe0] sm:$0xff]  ;;  %v3455_v12 = vld [vmem:[%s2732_s25 + $0x38] sm:$0xff] }
 0x225   : > { %v2169_v42 = vpop.eup %2168 }
 0x226   : > { %v2171_v43 = vpop.eup %2170  ;;  %v1102_v44 = vadd.f32 1.0, %v2169_v42  ;;  %v3387_v42 = vld [vmem:[%s2732_s25 + $0xd0] sm:$0xff] }
 0x227   : > { %v1122_v48 = vadd.f32 1.0, %v2171_v43  ;;  %v3391_v43 = vld [vmem:[%s2732_s25 + $0xc0] sm:$0xff] }
 0x228   : > { %2172 = vrcp.f32 %v1102_v44  ;;  %v1114_v61 = vand.u32 2147483648, %v1102_v44  ;;  %v1112_v9 = vand.u32 2147483647, %v1102_v44  ;;  %vm1108_vm11 = vweird.f32 %v1102_v44 }
 0x229   : > { %2174 = vrcp.f32 %v1122_v48  ;;  %v1134_v56 = vand.u32 2147483648, %v1122_v48  ;;  %vm1128_vm15 = vweird.f32 %v1122_v48  ;;  %v1132_v1 = vand.u32 2147483647, %v1122_v48 }
 0x22a   : > { %v1115_v8 = vor.u32 1.1754944e-38, %v1114_v61  ;;  %vm1113_vm13 = vcmp.eq.f32.partialorder %v1112_v9, 8.507059e+37  ;;  %v3428_v61 = vld [vmem:[%s2732_s25 + $0x80] sm:$0xff]  ;;  %v3437_v9 = vld [vmem:[%s2732_s25 + $0x68] sm:$0xff] }
 0x22b   : > { %v1135_v46 = vor.u32 1.1754944e-38, %v1134_v56  ;;  %vm1133_vm1 = vcmp.eq.f32.partialorder %v1132_v1, 8.507059e+37 }
 0x22e   : > { %v2173_v47 = vpop.eup %2172 }
 0x22f   : > { %v2175_v51 = vpop.eup %2174  ;;  %v1104_v52 = vmul.f32 %v2173_v47, %v1102_v44  ;;  %vm1109_vm10 = vweird.f32 %v2173_v47  ;;  %v3395_v44 = vld [vmem:[%s2732_s25 + $0xc8] sm:$0xff] }
 0x230   : > { %v1124_v58 = vmul.f32 %v2175_v51, %v1122_v48  ;;  %vm1110_vm12 = vmor %vm1108_vm11, %vm1109_vm10  ;;  %vm1129_vm14 = vweird.f32 %v2175_v51  ;;  %v3399_v48 = vld [vmem:[%s2732_s25 + $0xb8] sm:$0xff] }
 0x231   : > { %v1105_v59 = vsub.f32 1.0, %v1104_v52  ;;  %vm1130_vm0 = vmor %vm1128_vm15, %vm1129_vm14  ;;  %v3411_v52 = vld [vmem:[%s2732_s25 + $0xa0] sm:$0xff] }
 0x232   : > { %v1125_v63 = vsub.f32 1.0, %v1124_v58  ;;  %v3415_v58 = vld [vmem:[%s2732_s25 + $0x90] sm:$0xff] }
 0x233   : > { %v1106_v3 = vmul.f32 %v2173_v47, %v1105_v59  ;;  %v3419_v59 = vld [vmem:[%s2732_s25 + $0x98] sm:$0xff] }
 0x234   : > { %v1126_v11 = vmul.f32 %v2175_v51, %v1125_v63  ;;  %v3424_v63 = vld [vmem:[%s2732_s25 + $0x78] sm:$0xff] }
 0x235   : > { %v1107_v14 = vadd.f32 %v2173_v47, %v1106_v3  ;;  %v3433_v3 = vld [vmem:[%s2732_s25 + $0x60] sm:$0xff] }
 0x236   : > { %v1127_v41 = vadd.f32 %v2175_v51, %v1126_v11  ;;  %v3446_v11 = vld [vmem:[%s2732_s25 + $0x50] sm:$0xff] }
 0x237   : > { %v1111_v21 = vsel %vm1110_vm12, %v2173_v47, %v1107_v14  ;;  %v3403_v47 = vld [vmem:[%s2732_s25 + $0xa8] sm:$0xff]  ;;  %v3464_v14 = vld [vmem:[%s2732_s25 + $0x20] sm:$0xff] }
 0x238   : > { %v1116_v53 = vsel %vm1113_vm13, %v1115_v8, %v1111_v21  ;;  %v1131_v18 = vsel %vm1130_vm0, %v2175_v51, %v1127_v41  ;;  %v3407_v51 = vld [vmem:[%s2732_s25 + $0xb0] sm:$0xff]  ;;  %3801 = vst [vmem:[#allocation8_spill] sm:$0xff] %v3464_v14  ;;  %v3473_v8 = vld [vmem:[%s2732_s25 + $0x8] sm:$0xff] }
 0x239   : > { %v1138_v45 = vmul.f32 %v1116_v53, %v1096_v62  ;;  %v1136_v0 = vsel %vm1133_vm1, %v1135_v46, %v1131_v18  ;;  %3803 = vst [vmem:[#allocation7_spill] sm:$0xff] %v3473_v8 }
 0x23a   : > { %v1141_v54 = vsub.f32 1.0, %v1136_v0  ;;  %v1143_v55 = vmul.f32 %v1136_v0, %v3226_v50  ;;  %v3324_v50 = vld [vmem:[%s2732_s25 + $0x160] sm:$0xff] }
 0x23b   : > { %v1139_v34 = vadd.f32 %v1138_v45, %v1037_v19  ;;  %v1155_v45 = vld [vmem:[%s3480_s6] sm:$0xff] }
 0x23d   : > { %2176 = vtanh.f32 %v1139_v34 }
 0x243   : > { %v2177_v6 = vpop.eup %2176 }
 0x244   : > { %v1142_v26 = vmul.f32 %v2177_v6, %v1141_v54 }
 0x246   : > { %v3311_v30 = vadd.f32 %v1143_v55, %v1142_v26 }
 0x248   : > { %1146 = vst [vmem:[%s1145_s10] sm:$0xff] %v3311_v30  ;;  %1174 = vmatmul.f32.vlgmr.msrb.gmra.mxu2 %v3311_v30  ;;  %1194 = vmatmul.f32.vlgmr.msra.gmra.mxu0 %v3311_v30  ;;  %s3568_s10 = scalar_lea.vmem [#allocation2], %s2107_s9  ;;  %s1625_s9 = scalar_lea.vmem %s3221_s16, %s2088_s17 [#allocation3] }
 0x249   : > { %1214 = vmatmul.f32.vlgmr.msra.gmra.mxu1 %v3311_v30  ;;  %1438 = vmatpush.msrb.mxu2 %v3318_v16 }
 0x24a   : > { %1518 = vmatpush.msra.mxu0 %v3234_v57  ;;  %1538 = vmatpush.msra.mxu1 %v3238_v23 }
 0x24b   : > { %1439 = vmatpush.msrb.mxu2 %v3324_v50 }
 0x24c   : > { %1519 = vmatpush.msra.mxu0 %v3243_v22  ;;  %1539 = vmatpush.msra.mxu1 %v3329_v2 }
 0x24d   : > { %1440 = vmatpush.msrb.mxu2 %v3333_v13 }
 0x24e   : > { %1520 = vmatpush.msra.mxu0 %v3249_v40  ;;  %1540 = vmatpush.msra.mxu1 %v3338_v4 }
 0x24f   : > { %1441 = vmatpush.msrb.mxu2 %v3342_v25 }
 0x250   : > { %1521 = vmatpush.msra.mxu0 %v3255_v15  ;;  %1541 = vmatpush.msra.mxu1 %v3347_v29 }
 0x251   : > { %1442 = vmatpush.msrb.mxu2 %v3351_v32 }
 0x252   : > { %1522 = vmatpush.msra.mxu0 %v3355_v33  ;;  %1542 = vmatpush.msra.mxu1 %v3359_v17 }
 0x253   : > { %1443 = vmatpush.msrb.mxu2 %v3363_v28 }
 0x254   : > { %1523 = vmatpush.msra.mxu0 %v3367_v35  ;;  %1543 = vmatpush.msra.mxu1 %v3371_v36 }
 0x255   : > { %1444 = vmatpush.msrb.mxu2 %v3375_v37 }
 0x256   : > { %1524 = vmatpush.msra.mxu0 %v3379_v31  ;;  %1544 = vmatpush.msra.mxu1 %v3383_v38 }
 0x257   : > { %1445 = vmatpush.msrb.mxu2 %v3387_v42 }
 0x258   : > { %1525 = vmatpush.msra.mxu0 %v3391_v43  ;;  %1545 = vmatpush.msra.mxu1 %v3395_v44 }
 0x259   : > { %1446 = vmatpush.msrb.mxu2 %v3399_v48 }
 0x25a   : > { %1526 = vmatpush.msra.mxu0 %v3403_v47  ;;  %1546 = vmatpush.msra.mxu1 %v3407_v51 }
 0x25b   : > { %1447 = vmatpush.msrb.mxu2 %v3411_v52 }
 0x25c   : > { %1527 = vmatpush.msra.mxu0 %v3415_v58  ;;  %1547 = vmatpush.msra.mxu1 %v3419_v59 }
 0x25d   : > { %1448 = vmatpush.msrb.mxu2 %v2980_v7  ;;  %v3442_v7 = vld [vmem:[%s2732_s25 + $0x48] sm:$0xff] }
 0x25e   : > { %1528 = vmatpush.msra.mxu0 %v3424_v63  ;;  %1548 = vmatpush.msra.mxu1 %v3428_v61 }
 0x25f   : > { %1449 = vmatpush.msrb.mxu2 %v2987_v60  ;;  %v3451_v60 = vld [vmem:[%s2732_s25 + $0x30] sm:$0xff] }
 0x260   : > { %1529 = vmatpush.msra.mxu0 %v3433_v3  ;;  %1549 = vmatpush.msra.mxu1 %v3437_v9 }
 0x261   : > { %1450 = vmatpush.msrb.mxu2 %v3004_v10  ;;  %v3460_v10 = vld [vmem:[%s2732_s25 + $0x18] sm:$0xff] }
 0x262   : > { %1530 = vmatpush.msra.mxu0 %v3442_v7  ;;  %1550 = vmatpush.msra.mxu1 %v3446_v11  ;;  %3800 = vst [vmem:[#allocation6_spill] sm:$0xff] %v3460_v10 }
 0x263   : > { %1451 = vmatpush.msrb.mxu2 %v3016_v39  ;;  %v3469_v39 = vld [vmem:[%s2732_s25] sm:$0xff] }
 0x264   : > { %1531 = vmatpush.msra.mxu0 %v3451_v60  ;;  %1551 = vmatpush.msra.mxu1 %v3455_v12  ;;  %3802 = vst [vmem:[#allocation10_spill] sm:$0xff] %v3469_v39 }
 0x265   : > { %1452 = vmatpush.msrb.mxu2 %v3019_v49 }
 0x266   : > { %1532 = vmatpush.msra.mxu0 %v3460_v10  ;;  %1552 = vmatpush.msra.mxu1 %v3464_v14 }
 0x267   : > { %1453 = vmatpush.msrb.mxu2 %v3797_v27  ;;  %v1156_v27 = vld [vmem:[%s3480_s6 + $0x8] sm:$0xff] }
 0x268   : > { %1533 = vmatpush.msra.mxu0 %v3469_v39  ;;  %1553 = vmatpush.msra.mxu1 %v3473_v8 }
 0x2c5   : > { %v1195_v49 = vpop.f32.mrf.mxu0 }
 0x2c6   : > { %v1196_v62 = vadd.f32 %v1195_v49, %v3206_v5 }
 0x2c8   : > { %v1238_v21 = vadd.f32 %v1196_v62, %v1156_v27 }
 0x2ca   : > { %v2078_v53 = vmul.f32 -1.442695, %v1238_v21 }
 0x2cb   : > { %v1175_v41 = vpop.f32.mrf.mxu2 }
 0x2cc   : > { %2178 = vpow2.f32 %v2078_v53  ;;  %v1176_v56 = vadd.f32 %v1175_v41, %v3204_v20 }
 0x2ce   : > { %v1218_v19 = vadd.f32 %v1176_v56, %v1155_v45  ;;  %v1215_v56 = vpop.f32.mrf.mxu1 }
 0x2d0   : > { %v2077_v1 = vmul.f32 -1.442695, %v1218_v19 }
 0x2d2   : > { %v2179_v34 = vpop.eup %2178  ;;  %2180 = vpow2.f32 %v2077_v1  ;;  %v1216_v1 = vadd.f32 %v1215_v56, %v3214_v24 }
 0x2d3   : > { %v1242_v18 = vadd.f32 1.0, %v2179_v34 }
 0x2d5   : > { %2182 = vrcp.f32 %v1242_v18  ;;  %vm1248_vm7 = vweird.f32 %v1242_v18  ;;  %v1252_v20 = vand.u32 2147483647, %v1242_v18 }
 0x2d7   : > { %vm1253_vm9 = vcmp.eq.f32.partialorder %v1252_v20, 8.507059e+37  ;;  %v3528_v20 = vld [vmem:[%s2732_s25 + $0x88] sm:$0xff] }
 0x2d8   : > { %v2181_v46 = vpop.eup %2180 }
 0x2d9   : > { %v1222_v0 = vadd.f32 1.0, %v2181_v46 }
 0x2db   : > { %2184 = vrcp.f32 %v1222_v0  ;;  %v2183_v54 = vpop.eup %2182  ;;  %v1234_v27 = vand.u32 2147483648, %v1222_v0  ;;  %v1232_v53 = vand.u32 2147483647, %v1222_v0  ;;  %vm1228_vm3 = vweird.f32 %v1222_v0 }
 0x2dc   : > { %v1244_v6 = vmul.f32 %v2183_v54, %v1242_v18  ;;  %vm1249_vm6 = vweird.f32 %v2183_v54 }
 0x2dd   : > { %v1235_v19 = vor.u32 1.1754944e-38, %v1234_v27  ;;  %vm1233_vm5 = vcmp.eq.f32.partialorder %v1232_v53, 8.507059e+37  ;;  %vm1250_vm8 = vmor %vm1248_vm7, %vm1249_vm6 }
 0x2de   : > { %v1245_v49 = vsub.f32 1.0, %v1244_v6  ;;  %v1254_v6 = vand.u32 2147483648, %v1242_v18  ;;  %v3546_v18 = vld [vmem:[%s2732_s25 + $0x40] sm:$0xff] }
 0x2e0   : > { %v1246_v41 = vmul.f32 %v2183_v54, %v1245_v49 }
 0x2e1   : > { %v2185_v26 = vpop.eup %2184 }
 0x2e2   : > { %v1224_v55 = vmul.f32 %v2185_v26, %v1222_v0  ;;  %vm1229_vm2 = vweird.f32 %v2185_v26  ;;  %v1247_v5 = vadd.f32 %v2183_v54, %v1246_v41  ;;  %v1255_v0 = vor.u32 1.1754944e-38, %v1254_v6 }
 0x2e3   : > { %vm1230_vm4 = vmor %vm1228_vm3, %vm1229_vm2 }
 0x2e4   : > { %v1225_v62 = vsub.f32 1.0, %v1224_v55 }
 0x2e6   : > { %v1226_v21 = vmul.f32 %v2185_v26, %v1225_v62  ;;  %v1157_v62 = vld [vmem:[%s3480_s6 + $0x10] sm:$0xff]  ;;  %s1505_s6 = scalar_lea.vmem %s3221_s16, %s2084_s15 [#allocation3] }
 0x2e8   : > { %v1227_v45 = vadd.f32 %v2185_v26, %v1226_v21  ;;  %v1251_v21 = vsel %vm1250_vm8, %v2183_v54, %v1247_v5  ;;  %v3534_v5 = vld [vmem:[%s2732_s25 + $0x70] sm:$0xff]  ;;  %v3552_v54 = vld [vmem:[%s2732_s25 + $0x28] sm:$0xff] }
 0x2e9   : > { %v1256_v27 = vsel %vm1253_vm9, %v1255_v0, %v1251_v21  ;;  %3804 = vst [vmem:[#allocation9_spill] sm:$0xff] %v3552_v54  ;;  %v1276_v21 = vld [vmem:[%s3568_s10 + $0x8] sm:$0xff] }
 0x2ea   : > { %v1231_v34 = vsel %vm1230_vm4, %v2185_v26, %v1227_v45  ;;  %v1261_v56 = vsub.f32 1.0, %v1256_v27  ;;  %v1263_v45 = vmul.f32 %v1256_v27, %v3311_v30  ;;  %v3540_v30 = vld [vmem:[%s2732_s25 + $0x58] sm:$0xff] }
 0x2eb   : > { %v1236_v46 = vsel %vm1233_vm5, %v1235_v19, %v1231_v34  ;;  %v3558_v19 = vld [vmem:[%s2732_s25 + $0x10] sm:$0xff]  ;;  %s1385_s25 = scalar_lea.vmem %s3221_s16, %s2079_s14 [#allocation3] }
 0x2ec   : > { %v1258_v55 = vmul.f32 %v1236_v46, %v1216_v1  ;;  %3805 = vst [vmem:[#allocation13_spill] sm:$0xff] %v3558_v19  ;;  %v3806_v46 = vld [vmem:[#allocation11_spill] sm:$0xff] }
 0x2ee   : > { %v1259_v49 = vadd.f32 %v1258_v55, %v1157_v62  ;;  %v3807_v55 = vld [vmem:[#allocation12_spill] sm:$0xff] }
 0x2f0   : > { %2186 = vtanh.f32 %v1259_v49  ;;  %v1275_v49 = vld [vmem:[%s3568_s10] sm:$0xff] }
 0x2f6   : > { %v2187_v26 = vpop.eup %2186 }
 0x2f7   : > { %v1262_v53 = vmul.f32 %v2187_v26, %v1261_v56 }
 0x2f9   : > { %v3491_v41 = vadd.f32 %v1263_v45, %v1262_v53 }
 0x2fb   : > { %1266 = vst [vmem:[%s1265_s8] sm:$0xff] %v3491_v41  ;;  %1294 = vmatmul.f32.vlgmr.msra.gmra.mxu3 %v3491_v41  ;;  %1314 = vmatmul.f32.vlgmr.msra.gmra.mxu2 %v3491_v41  ;;  %s1510_s8 = sshra.s32 %s2088_s17, 3  ;;  %s2101_s17 = sshll.u32 %s2405_s22, 3 }
 0x2fc   : > { %1334 = vmatmul.f32.vlgmr.msrb.gmra.mxu0 %v3491_v41  ;;  %1558 = vmatpush.msra.mxu3 %v3318_v16  ;;  %s2109_s14 = smul.u32 24, %s1510_s8  ;;  %s1868_s22 = scalar_lea.sflag [#allocation4], %s256_s0 }
 0x2fd   : > { %1638 = vmatpush.msra.mxu2 %v3234_v57  ;;  %1658 = vmatpush.msrb.mxu0 %v3238_v23 }
 0x2fe   : > { %1559 = vmatpush.msra.mxu3 %v3324_v50  ;;  %s3674_s30 = scalar_lea.vmem [#allocation2], %s2109_s14 }
 0x2ff   : > { %1639 = vmatpush.msra.mxu2 %v3243_v22  ;;  %1659 = vmatpush.msrb.mxu0 %v3329_v2 }
 0x300   : > { %1560 = vmatpush.msra.mxu3 %v3333_v13 }
 0x301   : > { %1640 = vmatpush.msra.mxu2 %v3249_v40  ;;  %1660 = vmatpush.msrb.mxu0 %v3338_v4 }
 0x302   : > { %1561 = vmatpush.msra.mxu3 %v3342_v25 }
 0x303   : > { %1641 = vmatpush.msra.mxu2 %v3255_v15  ;;  %1661 = vmatpush.msrb.mxu0 %v3347_v29 }
 0x304   : > { %1562 = vmatpush.msra.mxu3 %v3351_v32 }
 0x305   : > { %1642 = vmatpush.msra.mxu2 %v3355_v33  ;;  %1662 = vmatpush.msrb.mxu0 %v3359_v17 }
 0x306   : > { %1563 = vmatpush.msra.mxu3 %v3363_v28 }
 0x307   : > { %1643 = vmatpush.msra.mxu2 %v3367_v35  ;;  %1663 = vmatpush.msrb.mxu0 %v3371_v36 }
 0x308   : > { %1564 = vmatpush.msra.mxu3 %v3375_v37 }
 0x309   : > { %1644 = vmatpush.msra.mxu2 %v3379_v31  ;;  %1664 = vmatpush.msrb.mxu0 %v3383_v38 }
 0x30a   : > { %1565 = vmatpush.msra.mxu3 %v3387_v42 }
 0x30b   : > { %1645 = vmatpush.msra.mxu2 %v3391_v43  ;;  %1665 = vmatpush.msrb.mxu0 %v3395_v44 }
 0x30c   : > { %1566 = vmatpush.msra.mxu3 %v3399_v48 }
 0x30d   : > { %1646 = vmatpush.msra.mxu2 %v3403_v47  ;;  %1666 = vmatpush.msrb.mxu0 %v3407_v51 }
 0x30e   : > { %1567 = vmatpush.msra.mxu3 %v3411_v52 }
 0x30f   : > { %1647 = vmatpush.msra.mxu2 %v3415_v58  ;;  %1667 = vmatpush.msrb.mxu0 %v3419_v59 }
 0x310   : > { %1568 = vmatpush.msra.mxu3 %v3528_v20 }
 0x311   : > { %1648 = vmatpush.msra.mxu2 %v3424_v63  ;;  %1668 = vmatpush.msrb.mxu0 %v3428_v61 }
 0x312   : > { %1569 = vmatpush.msra.mxu3 %v3534_v5 }
 0x313   : > { %1649 = vmatpush.msra.mxu2 %v3433_v3  ;;  %1669 = vmatpush.msrb.mxu0 %v3437_v9 }
 0x314   : > { %1570 = vmatpush.msra.mxu3 %v3540_v30 }
 0x315   : > { %1650 = vmatpush.msra.mxu2 %v3442_v7  ;;  %1670 = vmatpush.msrb.mxu0 %v3446_v11 }
 0x316   : > { %1571 = vmatpush.msra.mxu3 %v3546_v18 }
 0x317   : > { %1651 = vmatpush.msra.mxu2 %v3451_v60  ;;  %1671 = vmatpush.msrb.mxu0 %v3455_v12 }
 0x318   : > { %1572 = vmatpush.msra.mxu3 %v3552_v54 }
 0x319   : > { %1652 = vmatpush.msra.mxu2 %v3460_v10  ;;  %1672 = vmatpush.msrb.mxu0 %v3464_v14 }
 0x31a   : > { %1573 = vmatpush.msra.mxu3 %v3558_v19 }
 0x31b   : > { %1653 = vmatpush.msra.mxu2 %v3469_v39  ;;  %1673 = vmatpush.msrb.mxu0 %v3473_v8 }
 0x37e   : > { %v1295_v1 = vpop.f32.mrf.mxu3  ;;  %v1315_v34 = vpop.f32.mrf.mxu2 }
 0x37f   : > { %v1296_v6 = vadd.f32 %v1295_v1, %v3806_v46  ;;  %v1316_v62 = vadd.f32 %v1315_v34, %v3807_v55 }
 0x381   : > { %v1338_v0 = vadd.f32 %v1296_v6, %v1275_v49  ;;  %v1358_v27 = vadd.f32 %v1316_v62, %v1276_v21  ;;  %v1335_v62 = vpop.f32.mrf.mxu0 }
 0x383   : > { %v2081_v56 = vmul.f32 -1.442695, %v1338_v0  ;;  %v2082_v26 = vmul.f32 -1.442695, %v1358_v27  ;;  %v1336_v27 = vadd.f32 %v1335_v62, %v3214_v24 }
 0x385   : > { %2188 = vpow2.f32 %v2081_v56 }
 0x386   : > { %2190 = vpow2.f32 %v2082_v26 }
 0x38b   : > { %v2189_v53 = vpop.eup %2188 }
 0x38c   : > { %v2191_v45 = vpop.eup %2190  ;;  %v1342_v8 = vadd.f32 1.0, %v2189_v53 }
 0x38d   : > { %v1362_v39 = vadd.f32 1.0, %v2191_v45 }
 0x38e   : > { %2192 = vrcp.f32 %v1342_v8  ;;  %v1354_v14 = vand.u32 2147483648, %v1342_v8  ;;  %v1352_v6 = vand.u32 2147483647, %v1342_v8  ;;  %vm1348_vm11 = vweird.f32 %v1342_v8 }
 0x38f   : > { %2194 = vrcp.f32 %v1362_v39  ;;  %vm1368_vm15 = vweird.f32 %v1362_v39  ;;  %v1372_v45 = vand.u32 2147483647, %v1362_v39 }
 0x390   : > { %v1355_v0 = vor.u32 1.1754944e-38, %v1354_v14  ;;  %vm1353_vm13 = vcmp.eq.f32.partialorder %v1352_v6, 8.507059e+37 }
 0x391   : > { %vm1373_vm1 = vcmp.eq.f32.partialorder %v1372_v45, 8.507059e+37 }
 0x394   : > { %v2193_v1 = vpop.eup %2192 }
 0x395   : > { %v2195_v34 = vpop.eup %2194  ;;  %v1344_v55 = vmul.f32 %v2193_v1, %v1342_v8  ;;  %vm1349_vm10 = vweird.f32 %v2193_v1 }
 0x396   : > { %v1364_v46 = vmul.f32 %v2195_v34, %v1362_v39  ;;  %vm1350_vm12 = vmor %vm1348_vm11, %vm1349_vm10  ;;  %vm1369_vm14 = vweird.f32 %v2195_v34 }
 0x397   : > { %v1345_v19 = vsub.f32 1.0, %v1344_v55  ;;  %vm1370_vm0 = vmor %vm1368_vm15, %vm1369_vm14 }
 0x398   : > { %v1365_v10 = vsub.f32 1.0, %v1364_v46  ;;  %v1277_v46 = vld [vmem:[%s3568_s10 + $0x10] sm:$0xff]  ;;  %s2092_s10 = sshll.u32 %s3122_s7, 3 }
 0x399   : > { %v1346_v54 = vmul.f32 %v2193_v1, %v1345_v19  ;;  %v1374_v19 = vand.u32 2147483648, %v1362_v39  ;;  %s1745_s26 = scalar_lea.vmem %s3221_s16, %s2092_s10 [#allocation3] }
 0x39a   : > { %v1366_v49 = vmul.f32 %v2195_v34, %v1365_v10 }
 0x39b   : > { %v1347_v21 = vadd.f32 %v2193_v1, %v1346_v54  ;;  %v1375_v8 = vor.u32 1.1754944e-38, %v1374_v19 }
 0x39c   : > { %v1367_v53 = vadd.f32 %v2195_v34, %v1366_v49 }
 0x39d   : > { %v1351_v56 = vsel %vm1350_vm12, %v2193_v1, %v1347_v21 }
 0x39e   : > { %v1356_v26 = vsel %vm1353_vm13, %v1355_v0, %v1351_v56  ;;  %v1371_v54 = vsel %vm1370_vm0, %v2195_v34, %v1367_v53 }
 0x39f   : > { %v1378_v55 = vmul.f32 %v1356_v26, %v1336_v27  ;;  %v1376_v14 = vsel %vm1373_vm1, %v1375_v8, %v1371_v54 }
 0x3a0   : > { %v1381_v62 = vsub.f32 1.0, %v1376_v14  ;;  %v1383_v21 = vmul.f32 %v1376_v14, %v3491_v41 }
 0x3a1   : > { %v1379_v10 = vadd.f32 %v1378_v55, %v1277_v46 }
 0x3a3   : > { %2196 = vtanh.f32 %v1379_v10  ;;  %v1397_v10 = vld [vmem:[%s3636_s13 + $0x10] sm:$0xff] }
 0x3a9   : > { %v2197_v1 = vpop.eup %2196 }
 0x3aa   : > { %v1382_v6 = vmul.f32 %v2197_v1, %v1381_v62 }
 0x3ac   : > { %v3578_v49 = vadd.f32 %v1383_v21, %v1382_v6 }
 0x3ae   : > { %1386 = vst [vmem:[%s1385_s25] sm:$0xff] %v3578_v49  ;;  %1414 = vmatmul.f32.vlgmr.msrb.gmra.mxu1 %v3578_v49  ;;  %1434 = vmatmul.f32.vlgmr.msrb.gmra.mxu3 %v3578_v49  ;;  %s1630_s25 = sshra.s32 %s2092_s10, 3 }
 0x3af   : > { %1454 = vmatmul.f32.vlgmr.msrb.gmra.mxu2 %v3578_v49  ;;  %1678 = vmatpush.msrb.mxu1 %v3318_v16  ;;  %s2110_s15 = smul.u32 24, %s1630_s25  ;;  %s1865_s25 = scalar_lea.vmem %s3221_s16, %s2096_s23 [#allocation3] }
 0x3b0   : > { %1758 = vmatpush.msrb.mxu3 %v3234_v57  ;;  %1778 = vmatpush.msrb.mxu2 %v3238_v23  ;;  %v3808_v57 = vld [vmem:[#allocation9_spill] sm:$0xff]  ;;  %v3809_v23 = vld [vmem:[#allocation6_spill] sm:$0xff] }
 0x3b1   : > { %1679 = vmatpush.msrb.mxu1 %v3324_v50  ;;  %s3694_s11 = scalar_lea.vmem [#allocation2], %s2110_s15 }
 0x3b2   : > { %1759 = vmatpush.msrb.mxu3 %v3243_v22  ;;  %1779 = vmatpush.msrb.mxu2 %v3329_v2  ;;  %v3810_v22 = vld [vmem:[#allocation8_spill] sm:$0xff]  ;;  %v3813_v2 = vld [vmem:[#allocation7_spill] sm:$0xff] }
 0x3b3   : > { %1680 = vmatpush.msrb.mxu1 %v3333_v13 }
 0x3b4   : > { %1760 = vmatpush.msrb.mxu3 %v3249_v40  ;;  %1780 = vmatpush.msrb.mxu2 %v3338_v4  ;;  %v3811_v40 = vld [vmem:[#allocation13_spill] sm:$0xff] }
 0x3b5   : > { %1681 = vmatpush.msrb.mxu1 %v3342_v25 }
 0x3b6   : > { %1761 = vmatpush.msrb.mxu3 %v3255_v15  ;;  %1781 = vmatpush.msrb.mxu2 %v3347_v29  ;;  %v3812_v15 = vld [vmem:[#allocation10_spill] sm:$0xff]  ;;  %v3814_v29 = vld [vmem:[#allocation11_spill] sm:$0xff] }
 0x3b7   : > { %1682 = vmatpush.msrb.mxu1 %v3351_v32 }
 0x3b8   : > { %1762 = vmatpush.msrb.mxu3 %v3355_v33  ;;  %1782 = vmatpush.msrb.mxu2 %v3359_v17  ;;  %v1395_v17 = vld [vmem:[%s3636_s13] sm:$0xff] }
 0x3b9   : > { %1683 = vmatpush.msrb.mxu1 %v3363_v28 }
 0x3ba   : > { %1763 = vmatpush.msrb.mxu3 %v3367_v35  ;;  %1783 = vmatpush.msrb.mxu2 %v3371_v36 }
 0x3bb   : > { %1684 = vmatpush.msrb.mxu1 %v3375_v37 }
 0x3bc   : > { %1764 = vmatpush.msrb.mxu3 %v3379_v31  ;;  %1784 = vmatpush.msrb.mxu2 %v3383_v38  ;;  %v3815_v38 = vld [vmem:[#allocation12_spill] sm:$0xff] }
 0x3bd   : > { %1685 = vmatpush.msrb.mxu1 %v3387_v42 }
 0x3be   : > { %1765 = vmatpush.msrb.mxu3 %v3391_v43  ;;  %1785 = vmatpush.msrb.mxu2 %v3395_v44  ;;  %v1396_v44 = vld [vmem:[%s3636_s13 + $0x8] sm:$0xff]  ;;  %s1750_s13 = sshra.s32 %s2096_s23, 3 }
 0x3bf   : > { %1686 = vmatpush.msrb.mxu1 %v3399_v48 }
 0x3c0   : > { %1766 = vmatpush.msrb.mxu3 %v3403_v47  ;;  %1786 = vmatpush.msrb.mxu2 %v3407_v51 }
 0x3c1   : > { %1687 = vmatpush.msrb.mxu1 %v3411_v52 }
 0x3c2   : > { %1767 = vmatpush.msrb.mxu3 %v3415_v58  ;;  %1787 = vmatpush.msrb.mxu2 %v3419_v59 }
 0x3c3   : > { %1688 = vmatpush.msrb.mxu1 %v3528_v20 }
 0x3c4   : > { %1768 = vmatpush.msrb.mxu3 %v3424_v63  ;;  %1788 = vmatpush.msrb.mxu2 %v3428_v61 }
 0x3c5   : > { %1689 = vmatpush.msrb.mxu1 %v3534_v5 }
 0x3c6   : > { %1769 = vmatpush.msrb.mxu3 %v3433_v3  ;;  %1789 = vmatpush.msrb.mxu2 %v3437_v9 }
 0x3c7   : > { %1690 = vmatpush.msrb.mxu1 %v3540_v30 }
 0x3c8   : > { %1770 = vmatpush.msrb.mxu3 %v3442_v7  ;;  %1790 = vmatpush.msrb.mxu2 %v3446_v11 }
 0x3c9   : > { %1691 = vmatpush.msrb.mxu1 %v3546_v18 }
 0x3ca   : > { %1771 = vmatpush.msrb.mxu3 %v3451_v60  ;;  %1791 = vmatpush.msrb.mxu2 %v3455_v12 }
 0x3cb   : > { %1692 = vmatpush.msrb.mxu1 %v3808_v57 }
 0x3cc   : > { %1772 = vmatpush.msrb.mxu3 %v3809_v23  ;;  %1792 = vmatpush.msrb.mxu2 %v3810_v22 }
 0x3cd   : > { %1693 = vmatpush.msrb.mxu1 %v3811_v40 }
 0x3ce   : > { %1773 = vmatpush.msrb.mxu3 %v3812_v15  ;;  %1793 = vmatpush.msrb.mxu2 %v3813_v2 }
 0x42b   : > { %v1415_v4 = vpop.f32.mrf.mxu1 }
 0x42c   : > { %v1416_v33 = vadd.f32 %v1415_v4, %v3814_v29 }
 0x42e   : > { %v1458_v35 = vadd.f32 %v1416_v33, %v1395_v17 }
 0x430   : > { %v2086_v36 = vmul.f32 -1.442695, %v1458_v35 }
 0x431   : > { %v1435_v31 = vpop.f32.mrf.mxu3 }
 0x432   : > { %2198 = vpow2.f32 %v2086_v36  ;;  %v1436_v43 = vadd.f32 %v1435_v31, %v3815_v38  ;;  %v1455_v41 = vpop.f32.mrf.mxu2 }
 0x433   : > { %v1456_v26 = vadd.f32 %v1455_v41, %v3214_v24 }
 0x434   : > { %v1478_v47 = vadd.f32 %v1436_v43, %v1396_v44 }
 0x436   : > { %v2087_v51 = vmul.f32 -1.442695, %v1478_v47 }
 0x438   : > { %v2199_v58 = vpop.eup %2198  ;;  %2200 = vpow2.f32 %v2087_v51 }
 0x439   : > { %v1462_v59 = vadd.f32 1.0, %v2199_v58 }
 0x43b   : > { %2202 = vrcp.f32 %v1462_v59  ;;  %v1474_v11 = vand.u32 2147483648, %v1462_v59  ;;  %v1472_v12 = vand.u32 2147483647, %v1462_v59  ;;  %vm1468_vm3 = vweird.f32 %v1462_v59 }
 0x43d   : > { %v1475_v27 = vor.u32 1.1754944e-38, %v1474_v11  ;;  %vm1473_vm5 = vcmp.eq.f32.partialorder %v1472_v12, 8.507059e+37 }
 0x43e   : > { %v2201_v63 = vpop.eup %2200 }
 0x43f   : > { %v1482_v61 = vadd.f32 1.0, %v2201_v63 }
 0x441   : > { %v2203_v3 = vpop.eup %2202  ;;  %2204 = vrcp.f32 %v1482_v61  ;;  %v1494_v46 = vand.u32 2147483648, %v1482_v61  ;;  %v1492_v54 = vand.u32 2147483647, %v1482_v61  ;;  %vm1488_vm7 = vweird.f32 %v1482_v61 }
 0x442   : > { %v1464_v9 = vmul.f32 %v2203_v3, %v1462_v59  ;;  %vm1469_vm2 = vweird.f32 %v2203_v3 }
 0x443   : > { %vm1470_vm4 = vmor %vm1468_vm3, %vm1469_vm2  ;;  %v1495_v62 = vor.u32 1.1754944e-38, %v1494_v46  ;;  %vm1493_vm9 = vcmp.eq.f32.partialorder %v1492_v54, 8.507059e+37 }
 0x444   : > { %v1465_v7 = vsub.f32 1.0, %v1464_v9 }
 0x446   : > { %v1466_v60 = vmul.f32 %v2203_v3, %v1465_v7  ;;  %v1517_v7 = vld [vmem:[%s3674_s30 + $0x10] sm:$0xff] }
 0x447   : > { %v2205_v39 = vpop.eup %2204 }
 0x448   : > { %v1484_v34 = vmul.f32 %v2205_v39, %v1482_v61  ;;  %v1467_v0 = vadd.f32 %v2203_v3, %v1466_v60  ;;  %vm1489_vm6 = vweird.f32 %v2205_v39 }
 0x449   : > { %vm1490_vm8 = vmor %vm1488_vm7, %vm1489_vm6 }
 0x44a   : > { %v1485_v56 = vsub.f32 1.0, %v1484_v34  ;;  %v1471_v53 = vsel %vm1470_vm4, %v2203_v3, %v1467_v0 }
 0x44b   : > { %v1476_v55 = vsel %vm1473_vm5, %v1475_v27, %v1471_v53 }
 0x44c   : > { %v1486_v19 = vmul.f32 %v2205_v39, %v1485_v56  ;;  %v1498_v45 = vmul.f32 %v1476_v55, %v1456_v26 }
 0x44e   : > { %v1487_v8 = vadd.f32 %v2205_v39, %v1486_v19  ;;  %v1499_v14 = vadd.f32 %v1498_v45, %v1397_v10  ;;  %v1636_v19 = vld [vmem:[%s3694_s11 + $0x8] sm:$0xff] }
 0x450   : > { %v1491_v1 = vsel %vm1490_vm8, %v2205_v39, %v1487_v8  ;;  %2206 = vtanh.f32 %v1499_v14  ;;  %v1635_v8 = vld [vmem:[%s3694_s11] sm:$0xff] }
 0x451   : > { %v1496_v6 = vsel %vm1493_vm9, %v1495_v62, %v1491_v1 }
 0x452   : > { %v1501_v21 = vsub.f32 1.0, %v1496_v6  ;;  %v1503_v15 = vmul.f32 %v1496_v6, %v3578_v49 }
 0x456   : > { %v2207_v23 = vpop.eup %2206 }
 0x457   : > { %v1502_v22 = vmul.f32 %v2207_v23, %v1501_v21 }
 0x459   : > { %v3647_v2 = vadd.f32 %v1503_v15, %v1502_v22 }
 0x45b   : > { %1506 = vst [vmem:[%s1505_s6] sm:$0xff] %v3647_v2  ;;  %1534 = vmatmul.f32.vlgmr.msra.gmra.mxu0 %v3647_v2  ;;  %1554 = vmatmul.f32.vlgmr.msra.gmra.mxu1 %v3647_v2  ;;  %s2111_s6 = smul.u32 24, %s1750_s13 }
 0x45c   : > { %1574 = vmatmul.f32.vlgmr.msra.gmra.mxu3 %v3647_v2  ;;  %1798 = vmatpush.msra.mxu0 %v3318_v16 }
 0x45d   : > { %s3716_s7 = scalar_lea.vmem [#allocation2], %s2111_s6 }
 0x45e   : > { %1799 = vmatpush.msra.mxu0 %v3324_v50 }
 0x460   : > { %1800 = vmatpush.msra.mxu0 %v3333_v13 }
 0x462   : > { %1801 = vmatpush.msra.mxu0 %v3342_v25 }
 0x464   : > { %1802 = vmatpush.msra.mxu0 %v3351_v32  ;;  %v1515_v32 = vld [vmem:[%s3674_s30] sm:$0xff] }
 0x466   : > { %1803 = vmatpush.msra.mxu0 %v3363_v28  ;;  %v1516_v28 = vld [vmem:[%s3674_s30 + $0x8] sm:$0xff]  ;;  %s1878_s30 = scalar_lea.hbm %s3765_s5, %s2101_s17 }
 0x467   : > { %s1881_s10 = sshll.u32 %s1878_s30, 4  ;;  %s1882_s10 = int_to_ptr.hbm [resolvable:$true] %s1881_s10 }
 0x468   : > { %1804 = vmatpush.msra.mxu0 %v3375_v37  ;;  %s2300_s15 = sshra.s32 %s1882_s10, 4  ;;  %s2301_s15 = int_to_ptr.hbm [resolvable:$true] %s2300_s15 }
 0x469   : > { %p2307_p0 = scmp.lt.s32.totalorder %s2301_s15, %s3765_s5 }
 0x46a   : > { %1805 = vmatpush.msra.mxu0 %v3387_v42 }
 0x46c   : > { %1806 = vmatpush.msra.mxu0 %v3399_v48 }
 0x46e   : > { %1807 = vmatpush.msra.mxu0 %v3411_v52 }
 0x470   : > { %1808 = vmatpush.msra.mxu0 %v3528_v20 }
 0x472   : > { %1809 = vmatpush.msra.mxu0 %v3534_v5 }
 0x474   : > { %1810 = vmatpush.msra.mxu0 %v3540_v30 }
 0x476   : > { %1811 = vmatpush.msra.mxu0 %v3546_v18 }
 0x478   : > { %1812 = vmatpush.msra.mxu0 %v3808_v57 }
 0x47a   : > { %1813 = vmatpush.msra.mxu0 %v3811_v40 }
 0x4d8   : > { %v1535_v16 = vpop.f32.mrf.mxu0  ;;  %v1555_v50 = vpop.f32.mrf.mxu1 }
 0x4d9   : > { %v1536_v13 = vadd.f32 %v1535_v16, %v3814_v29  ;;  %v1556_v25 = vadd.f32 %v1555_v50, %v3815_v38 }
 0x4db   : > { %v1578_v37 = vadd.f32 %v1536_v13, %v1515_v32  ;;  %v1598_v42 = vadd.f32 %v1556_v25, %v1516_v28 }
 0x4dd   : > { %v2090_v48 = vmul.f32 -1.442695, %v1578_v37  ;;  %v2091_v52 = vmul.f32 -1.442695, %v1598_v42 }
 0x4df   : > { %2208 = vpow2.f32 %v2090_v48  ;;  %v1575_v44 = vpop.f32.mrf.mxu3 }
 0x4e0   : > { %2210 = vpow2.f32 %v2091_v52  ;;  %v1576_v58 = vadd.f32 %v1575_v44, %v3214_v24 }
 0x4e5   : > { %v2209_v20 = vpop.eup %2208 }
 0x4e6   : > { %v2211_v5 = vpop.eup %2210  ;;  %v1582_v30 = vadd.f32 1.0, %v2209_v20 }
 0x4e7   : > { %v1602_v18 = vadd.f32 1.0, %v2211_v5 }
 0x4e8   : > { %2212 = vrcp.f32 %v1582_v30  ;;  %v1594_v35 = vand.u32 2147483648, %v1582_v30  ;;  %v1592_v31 = vand.u32 2147483647, %v1582_v30  ;;  %vm1588_vm11 = vweird.f32 %v1582_v30 }
 0x4e9   : > { %2214 = vrcp.f32 %v1602_v18  ;;  %v1614_v3 = vand.u32 2147483648, %v1602_v18  ;;  %vm1608_vm15 = vweird.f32 %v1602_v18  ;;  %v1612_v11 = vand.u32 2147483647, %v1602_v18 }
 0x4ea   : > { %v1595_v51 = vor.u32 1.1754944e-38, %v1594_v35  ;;  %vm1593_vm13 = vcmp.eq.f32.partialorder %v1592_v31, 8.507059e+37 }
 0x4eb   : > { %v1615_v39 = vor.u32 1.1754944e-38, %v1614_v3  ;;  %vm1613_vm1 = vcmp.eq.f32.partialorder %v1612_v11, 8.507059e+37  ;;  %v1755_v3 = vld [vmem:[%s3716_s7] sm:$0xff] }
 0x4ee   : > { %v2213_v49 = vpop.eup %2212 }
 0x4ef   : > { %v2215_v57 = vpop.eup %2214  ;;  %v1584_v40 = vmul.f32 %v2213_v49, %v1582_v30  ;;  %vm1589_vm10 = vweird.f32 %v2213_v49 }
 0x4f0   : > { %v1604_v4 = vmul.f32 %v2215_v57, %v1602_v18  ;;  %vm1590_vm12 = vmor %vm1588_vm11, %vm1589_vm10  ;;  %vm1609_vm14 = vweird.f32 %v2215_v57 }
 0x4f1   : > { %v1585_v33 = vsub.f32 1.0, %v1584_v40  ;;  %vm1610_vm0 = vmor %vm1608_vm15, %vm1609_vm14  ;;  %v1637_v40 = vld [vmem:[%s3694_s11 + $0x10] sm:$0xff]  ;;  %s2302_s11 = scalar_lea.hbm %s2301_s15, 64 }
 0x4f2   : > { %v1605_v17 = vsub.f32 1.0, %v1604_v4  ;;  %p2303_p11 = scmp.ne.s32.totalorder %s2301_s15, %s2302_s11  ;;  %p2308_p1 = scmp.lt.s32.totalorder %s2306_s12, %s2302_s11 }
 0x4f3   : > { %v1586_v36 = vmul.f32 %v2213_v49, %v1585_v33 }
 0x4f4   : > { %v1606_v43 = vmul.f32 %v2215_v57, %v1605_v17  ;;  %p2304_p12 = pnand %p2303_p11, %p2422_p5  ;;  %p2309_p2 = por %p2308_p1, %p2307_p0 }
 0x4f5   : > { %v1587_v47 = vadd.f32 %v2213_v49, %v1586_v36 }
 0x4f6   : > { %v1607_v61 = vadd.f32 %v2215_v57, %v1606_v43  ;;  %p2305_p13 = pneg %p2304_p12 }
 0x4f7   : > { %v1591_v59 = vsel %vm1590_vm12, %v2213_v49, %v1587_v47 }
 0x4f8   : > { %v1596_v63 = vsel %vm1593_vm13, %v1595_v51, %v1591_v59  ;;  %v1611_v12 = vsel %vm1610_vm0, %v2215_v57, %v1607_v61  ;;  %p2310_p3 = pnand %p2309_p2, %p2305_p13 }
 0x4f9   : > { %v1618_v9 = vmul.f32 %v1596_v63, %v1576_v58  ;;  %v1616_v41 = vsel %vm1613_vm1, %v1615_v39, %v1611_v12 }
 0x4fa   : > { %v1621_v34 = vsub.f32 1.0, %v1616_v41  ;;  %v1623_v56 = vmul.f32 %v1616_v41, %v3647_v2 }
 0x4fb   : > { %v1619_v60 = vadd.f32 %v1618_v9, %v1517_v7  ;;  %v1756_v9 = vld [vmem:[%s3716_s7 + $0x8] sm:$0xff] }
 0x4fd   : > { %2216 = vtanh.f32 %v1619_v60 }
 0x503   : > { %v2217_v0 = vpop.eup %2216 }
 0x504   : > { %v1622_v27 = vmul.f32 %v2217_v0, %v1621_v34 }
 0x506   : > { %v3684_v26 = vadd.f32 %v1623_v56, %v1622_v27 }
 0x508   : > { %1626 = vst [vmem:[%s1625_s9] sm:$0xff] %v3684_v26  ;;  %1654 = vmatmul.f32.vlgmr.msra.gmra.mxu2 %v3684_v26  ;;  %1674 = vmatmul.f32.vlgmr.msrb.gmra.mxu0 %v3684_v26  ;;  %s1879_s9 = sshll.u32 %s3221_s16, 4  ;;  %s1880_s9 = int_to_ptr.vmem [resolvable:$true] %s1879_s9 }
 0x509   : > { %1694 = vmatmul.f32.vlgmr.msrb.gmra.mxu1 %v3684_v26 }
 0x585   : > { %v1675_v53 = vpop.f32.mrf.mxu0 }
 0x586   : > { %v1676_v55 = vadd.f32 %v1675_v53, %v3815_v38  ;;  %v1695_v42 = vpop.f32.mrf.mxu1 }
 0x587   : > { %v1696_v20 = vadd.f32 %v1695_v42, %v3214_v24 }
 0x588   : > { %v1718_v46 = vadd.f32 %v1676_v55, %v1636_v19 }
 0x58a   : > { %v2095_v45 = vmul.f32 -1.442695, %v1718_v46 }
 0x58b   : > { %v1655_v10 = vpop.f32.mrf.mxu2 }
 0x58c   : > { %2218 = vpow2.f32 %v2095_v45  ;;  %v1656_v54 = vadd.f32 %v1655_v10, %v3814_v29 }
 0x58e   : > { %v1698_v14 = vadd.f32 %v1656_v54, %v1635_v8 }
 0x590   : > { %v2094_v62 = vmul.f32 -1.442695, %v1698_v14 }
 0x592   : > { %v2219_v1 = vpop.eup %2218  ;;  %2220 = vpow2.f32 %v2094_v62 }
 0x593   : > { %v1722_v6 = vadd.f32 1.0, %v2219_v1 }
 0x595   : > { %2222 = vrcp.f32 %v1722_v6  ;;  %v1734_v49 = vand.u32 2147483648, %v1722_v6  ;;  %vm1728_vm7 = vweird.f32 %v1722_v6  ;;  %v1732_v4 = vand.u32 2147483647, %v1722_v6 }
 0x597   : > { %v1735_v35 = vor.u32 1.1754944e-38, %v1734_v49  ;;  %vm1733_vm9 = vcmp.eq.f32.partialorder %v1732_v4, 8.507059e+37 }
 0x598   : > { %v2221_v21 = vpop.eup %2220 }
 0x599   : > { %v1702_v23 = vadd.f32 1.0, %v2221_v21 }
 0x59b   : > { %2224 = vrcp.f32 %v1702_v23  ;;  %v2223_v22 = vpop.eup %2222  ;;  %v1714_v25 = vand.u32 2147483648, %v1702_v23  ;;  %v1712_v28 = vand.u32 2147483647, %v1702_v23  ;;  %vm1708_vm3 = vweird.f32 %v1702_v23 }
 0x59c   : > { %v1724_v15 = vmul.f32 %v2223_v22, %v1722_v6  ;;  %vm1729_vm6 = vweird.f32 %v2223_v22 }
 0x59d   : > { %v1715_v52 = vor.u32 1.1754944e-38, %v1714_v25  ;;  %vm1713_vm5 = vcmp.eq.f32.partialorder %v1712_v28, 8.507059e+37  ;;  %vm1730_vm8 = vmor %vm1728_vm7, %vm1729_vm6 }
 0x59e   : > { %v1725_v50 = vsub.f32 1.0, %v1724_v15 }
 0x5a0   : > { %v1726_v37 = vmul.f32 %v2223_v22, %v1725_v50 }
 0x5a1   : > { %v2225_v2 = vpop.eup %2224 }
 0x5a2   : > { %v1704_v16 = vmul.f32 %v2225_v2, %v1702_v23  ;;  %vm1709_vm2 = vweird.f32 %v2225_v2  ;;  %v1727_v18 = vadd.f32 %v2223_v22, %v1726_v37 }
 0x5a3   : > { %vm1710_vm4 = vmor %vm1708_vm3, %vm1709_vm2 }
 0x5a4   : > { %v1705_v13 = vsub.f32 1.0, %v1704_v16  ;;  %v1731_v17 = vsel %vm1730_vm8, %v2223_v22, %v1727_v18  ;;  %v1757_v22 = vld [vmem:[%s3716_s7 + $0x10] sm:$0xff] }
 0x5a5   : > { %v1736_v36 = vsel %vm1733_vm9, %v1735_v35, %v1731_v17 }
 0x5a6   : > { %v1706_v32 = vmul.f32 %v2225_v2, %v1705_v13  ;;  %v1741_v31 = vsub.f32 1.0, %v1736_v36  ;;  %v1743_v47 = vmul.f32 %v1736_v36, %v3684_v26 }
 0x5a8   : > { %v1707_v48 = vadd.f32 %v2225_v2, %v1706_v32 }
 0x5aa   : > { %v1711_v5 = vsel %vm1710_vm4, %v2225_v2, %v1707_v48 }
 0x5ab   : > { %v1716_v30 = vsel %vm1713_vm5, %v1715_v52, %v1711_v5 }
 0x5ac   : > { %v1738_v57 = vmul.f32 %v1716_v30, %v1696_v20 }
 0x5ae   : > { %v1739_v33 = vadd.f32 %v1738_v57, %v1637_v40 }
 0x5b0   : > { %2226 = vtanh.f32 %v1739_v33 }
 0x5b6   : > { %v2227_v43 = vpop.eup %2226 }
 0x5b7   : > { %v1742_v44 = vmul.f32 %v2227_v43, %v1741_v31 }
 0x5b9   : > { %v3705_v51 = vadd.f32 %v1743_v47, %v1742_v44 }
 0x5bb   : > { %1746 = vst [vmem:[%s1745_s26] sm:$0xff] %v3705_v51  ;;  %1774 = vmatmul.f32.vlgmr.msrb.gmra.mxu3 %v3705_v51  ;;  %1794 = vmatmul.f32.vlgmr.msrb.gmra.mxu2 %v3705_v51 }
 0x5bc   : > { %1814 = vmatmul.f32.vlgmr.msra.gmra.mxu0 %v3705_v51 }
 0x639   : > { %v1815_v45 = vpop.f32.mrf.mxu0 }
 0x63a   : > { %v1816_v14 = vadd.f32 %v1815_v45, %v3214_v24 }
 0x63e   : > { %v1775_v58 = vpop.f32.mrf.mxu3  ;;  %v1795_v59 = vpop.f32.mrf.mxu2 }
 0x63f   : > { %v1776_v63 = vadd.f32 %v1775_v58, %v3814_v29  ;;  %v1796_v61 = vadd.f32 %v1795_v59, %v3815_v38 }
 0x641   : > { %v1818_v7 = vadd.f32 %v1776_v63, %v1755_v3  ;;  %v1838_v11 = vadd.f32 %v1796_v61, %v1756_v9 }
 0x643   : > { %v2098_v60 = vmul.f32 -1.442695, %v1818_v7  ;;  %v2099_v12 = vmul.f32 -1.442695, %v1838_v11 }
 0x645   : > { %2228 = vpow2.f32 %v2098_v60 }
 0x646   : > { %2230 = vpow2.f32 %v2099_v12 }
 0x64b   : > { %v2229_v39 = vpop.eup %2228 }
 0x64c   : > { %v2231_v41 = vpop.eup %2230  ;;  %v1822_v34 = vadd.f32 1.0, %v2229_v39 }
 0x64d   : > { %v1842_v0 = vadd.f32 1.0, %v2231_v41 }
 0x64e   : > { %2232 = vrcp.f32 %v1822_v34  ;;  %v1834_v53 = vand.u32 2147483648, %v1822_v34  ;;  %v1832_v46 = vand.u32 2147483647, %v1822_v34  ;;  %vm1828_vm11 = vweird.f32 %v1822_v34 }
 0x64f   : > { %2234 = vrcp.f32 %v1842_v0  ;;  %v1854_v23 = vand.u32 2147483648, %v1842_v0  ;;  %vm1848_vm15 = vweird.f32 %v1842_v0  ;;  %v1852_v15 = vand.u32 2147483647, %v1842_v0 }
 0x650   : > { %v1835_v8 = vor.u32 1.1754944e-38, %v1834_v53  ;;  %vm1833_vm13 = vcmp.eq.f32.partialorder %v1832_v46, 8.507059e+37 }
 0x651   : > { %v1855_v24 = vor.u32 1.1754944e-38, %v1854_v23  ;;  %vm1853_vm1 = vcmp.eq.f32.partialorder %v1852_v15, 8.507059e+37 }
 0x654   : > { %v2233_v29 = vpop.eup %2232 }
 0x655   : > { %v2235_v38 = vpop.eup %2234  ;;  %v1824_v27 = vmul.f32 %v2233_v29, %v1822_v34  ;;  %vm1829_vm10 = vweird.f32 %v2233_v29 }
 0x656   : > { %v1844_v56 = vmul.f32 %v2235_v38, %v1842_v0  ;;  %vm1830_vm12 = vmor %vm1828_vm11, %vm1829_vm10  ;;  %vm1849_vm14 = vweird.f32 %v2235_v38 }
 0x657   : > { %v1825_v26 = vsub.f32 1.0, %v1824_v27  ;;  %vm1850_vm0 = vmor %vm1848_vm15, %vm1849_vm14 }
 0x658   : > { %v1845_v55 = vsub.f32 1.0, %v1844_v56 }
 0x659   : > { %v1826_v19 = vmul.f32 %v2233_v29, %v1825_v26 }
 0x65a   : > { %v1846_v10 = vmul.f32 %v2235_v38, %v1845_v55 }
 0x65b   : > { %v1827_v54 = vadd.f32 %v2233_v29, %v1826_v19 }
 0x65c   : > { %v1847_v6 = vadd.f32 %v2235_v38, %v1846_v10 }
 0x65d   : > { %v1831_v62 = vsel %vm1830_vm12, %v2233_v29, %v1827_v54 }
 0x65e   : > { %v1836_v1 = vsel %vm1833_vm13, %v1835_v8, %v1831_v62  ;;  %v1851_v16 = vsel %vm1850_vm0, %v2235_v38, %v1847_v6 }
 0x65f   : > { %v1858_v21 = vmul.f32 %v1836_v1, %v1816_v14  ;;  %v1856_v50 = vsel %vm1853_vm1, %v1855_v24, %v1851_v16 }
 0x660   : > { %v1861_v13 = vsub.f32 1.0, %v1856_v50  ;;  %v1863_v28 = vmul.f32 %v1856_v50, %v3705_v51 }
 0x661   : > { %v1859_v2 = vadd.f32 %v1858_v21, %v1757_v22 }
 0x663   : > { %2236 = vtanh.f32 %v1859_v2 }
 0x669   : > { %v2237_v25 = vpop.eup %2236 }
 0x66a   : > { %v1862_v32 = vmul.f32 %v2237_v25, %v1861_v13 }
 0x66c   : > { %v1864_v37 = vadd.f32 %v1863_v28, %v1862_v32 }
 0x66e   : > { %1866 = vst [vmem:[%s1865_s25] sm:$0xff] %v1864_v37 }
 0x66f   : > { %2313 = shalt.err (!%p2310_p3)
}
 0x670   : > { %s2351_s0 = smov 128   ;;  %s2352_s6 = smov 256  }
 0x671   : > { %s2353_s7 = smov 8  }
 0x672   : > { %2115 = dma.vmem_to_hbm [thread:$0]  (%p2422_p5), %s1880_s9, 1024, %s1882_s10, %s1868_s22, %s2351_s0, %s2352_s6, %s2353_s7  }
 0x673 PF: > { %p2121_p4 = scmp.ge.s32.totalorder %s2348_s21, 2  ;;  %s1896_s17 = sand.u32 1, %s2336_s18  }
 0x674   : > { %s1897_s8 = scalar_lea.sflag [#allocation4], %s1896_s17 }
 0x675   : > { %p2118_p7 = pnand %p2121_p4, %p2426_p6 }
 0x677   : > { %p2119_p8 = pneg %p2118_p7 }
 0x679   : > { %2331 = dma.done.wait (%p2119_p8), %s1897_s8, 1024  }
 0x67a   : > { %2333 = vsyncadd (%p2119_p8), %s1897_s8, 4294966272  ;;  %p15_p9 = scmp.ge.s32.totalorder %s2409_s24, 4   ;;  %s3816_s18 = smov %s2340_s19 }
 0x67b   : > { %s3817_s19 = smov %s2344_s20  ;;  %s3818_s20 = smov %s2420_s27 }
 0x67c   : > { %s3819_s21 = smov %s2409_s24  ;;  %17 = sbr.rel (!%p15_p9) target bundleno = 5 (0x5), region = 100 }
 0x681   :  { %1903 = vsyncpa [#allocation4], 1 }
 0x682   :  { %1905 = vsyncpa [#allocation4 + $0x1], 1 }

</bundles_post_ra>
